<compile_context>
chip_gen: v7x
topology: tpu7x:2x2x1
jax: 0.10.0
libtpu: 0.0.40
codegen_flags: <defaults>
</compile_context>

<pallas_src>
import functools
import math

import jax
import jax.numpy as jnp
from jax.experimental import pallas as pl
from jax.experimental.pallas import tpu as pltpu


# ----------------------------- helpers ------------------------------------

def _row_tile(n):
    """Row tile for the flattened (B*S, D) slab: whole slab when small, else fixed 512."""
    if n <= 512:
        return n
    return 512  # grid = pl.cdiv(n, 512); Pallas masks the partial tail block.


def _batch_tile(b, s):
    """Sequences per grid step: aim for >=256 rows per step, keep >=2 grid steps when it
    does not shrink the matmul M dim below 128 rows (v7x megacore friendliness)."""
    divs = [d for d in range(1, b + 1) if b % d == 0]
    cand = [d for d in divs if d * s <= 1024] or [1]
    bt = cand[-1]
    for d_ in cand:
        if d_ * s >= 256:
            bt = d_
            break
    if b // bt < 2:
        smaller = [d_ for d_ in cand if b // d_ >= 2 and d_ * s >= 128]
        if smaller:
            bt = smaller[-1]
    return bt


def _compiler_params(semantics, est_vmem_bytes):
    kwargs = dict(dimension_semantics=semantics)
    # Raise the scoped-VMEM cap only when the estimate exceeds the smallest default (v5e 16MiB).
    # Clamp at 64 MiB (v7x physical). TODO(synk): at production D/d_ff on v7x, tile the d_ff
    # reduction axis (extra grid dim) and single-buffer grid-invariant weights instead.
    if est_vmem_bytes > 12 * (1 << 20):
        kwargs["vmem_limit_bytes"] = int(min(max(2 * est_vmem_bytes, 32 << 20), 64 << 20))
    return pltpu.CompilerParams(**kwargs)


def _gelu(x, exact):
    if exact:
        # PyTorch nn.GELU()/F.gelu default: exact erf formulation.
        return 0.5 * x * (1.0 + jax.lax.erf(x * jnp.float32(1.0 / math.sqrt(2.0))))
    c = jnp.float32(math.sqrt(2.0 / math.pi))
    return 0.5 * x * (1.0 + jnp.tanh(c * (x + jnp.float32(0.044715) * x * x * x)))
    # TODO(synk): on v6e/v7x a bf16 GELU path would double EUP throughput; kept f32 for parity.


def _ln(z, g, b, eps):
    mu = jnp.mean(z, axis=-1, keepdims=True)
    zc = z - mu
    var = jnp.mean(zc * zc, axis=-1, keepdims=True)
    return zc * jax.lax.rsqrt(var + eps) * g + b


# ------------------- K1: proj FFN + additive pad mask + LayerNorm -----------

def _proj_mask_ln_kernel(x_ref, w1_ref, b1_ref, w2_ref, w2m_ref, b2_ref, b2m_ref,
                         g_ref, bln_ref, y_ref, m_ref, *, eps, exact_gelu):
    x = x_ref[...]                                                     # (tm, D) f32
    h = jnp.dot(x.astype(jnp.bfloat16), w1_ref[...],
                preferred_element_type=jnp.float32) + b1_ref[...]
    h = _gelu(h, exact_gelu)
    p = jnp.dot(h.astype(jnp.bfloat16), w2_ref[...],
                preferred_element_type=jnp.float32) + b2_ref[...]      # (tm, D)
    # src_key_padding_mask = proj(embeds).mean(-1) == -1  (PyTorch forward).  Computed through
    # an f32 path so bf16 matmul rounding cannot flip the equality:
    #   mean_d(h @ w2 + b2) == h . mean_cols(w2) + mean(b2)
    mu_mask = jnp.sum(h * w2m_ref[...], axis=-1, keepdims=True) + b2m_ref[...]
    m_ref[...] = jnp.where(mu_mask == jnp.float32(-1.0),
                           jnp.float32(-1e30), jnp.float32(0.0))       # additive mask
    mu = jnp.mean(p, axis=-1, keepdims=True)
    zc = p - mu
    var = jnp.mean(zc * zc, axis=-1, keepdims=True)
    y_ref[...] = zc * jax.lax.rsqrt(var + eps) * g_ref[...] + bln_ref[...]


def proj_mask_ln(x, w1, b1, w2, w2m, b2, b2m, g, bln, *, eps=1e-5, exact_gelu=True):
    n, d = x.shape
    dp = w1.shape[1]
    tm = _row_tile(n)
    est = 4 * d * dp + 8 * tm * (d + dp)
    kernel = functools.partial(_proj_mask_ln_kernel, eps=eps, exact_gelu=exact_gelu)
    return pl.pallas_call(
        kernel,
        out_shape=(jax.ShapeDtypeStruct((n, d), jnp.float32),
                   jax.ShapeDtypeStruct((n, 1), jnp.float32)),
        grid=(pl.cdiv(n, tm),),
        in_specs=[
            pl.BlockSpec((tm, d), lambda i: (i, 0)),
            pl.BlockSpec((d, dp), lambda i: (0, 0)),
            pl.BlockSpec((1, dp), lambda i: (0, 0)),
            pl.BlockSpec((dp, d), lambda i: (0, 0)),
            pl.BlockSpec((1, dp), lambda i: (0, 0)),
            pl.BlockSpec((1, d), lambda i: (0, 0)),
            pl.BlockSpec((1, 1), lambda i: (0, 0)),
            pl.BlockSpec((1, d), lambda i: (0, 0)),
            pl.BlockSpec((1, d), lambda i: (0, 0)),
        ],
        out_specs=(pl.BlockSpec((tm, d), lambda i: (i, 0)),
                   pl.BlockSpec((tm, 1), lambda i: (i, 0))),
        compiler_params=_compiler_params(("parallel",), est),
    )(x, w1, b1, w2, w2m, b2, b2m, g, bln)


# -------- K2: fused encoder layer (MHA + out_proj + norm1 + FFN + norm2) ----

def _layer_kernel(x_ref, pad_ref, inw_ref, inb_ref, outw_ref, outb_ref,
                  n1g_ref, n1b_ref, fw1_ref, fb1_ref, fw2_ref, fb2_ref,
                  n2g_ref, n2b_ref, o_ref, *, nhead, eps, exact_gelu):
    bt, s, d = x_ref.shape
    dh = d // nhead
    x = x_ref[...].reshape(bt * s, d)                                  # (R, D) f32
    pad = pad_ref[...]                                                 # (Bt, 1, S) additive

    # ---- self-attention (Q pre-scaled by 1/sqrt(dh) at param-prep time) ----
    qkv = jnp.dot(x.astype(jnp.bfloat16), inw_ref[...],
                  preferred_element_type=jnp.float32) + inb_ref[...]   # (R, 3D)
    qkv = qkv.reshape(bt, s, 3 * d)
    ctx_heads = []
    for h in range(nhead):                                             # static unroll over heads
        lo = h * dh
        qh = qkv[:, :, lo:lo + dh].astype(jnp.bfloat16)
        kh = qkv[:, :, d + lo:d + lo + dh].astype(jnp.bfloat16)
        vh = qkv[:, :, 2 * d + lo:2 * d + lo + dh].astype(jnp.bfloat16)
        sc = jnp.einsum("bqd,bkd->bqk", qh, kh,
                        preferred_element_type=jnp.float32) + pad      # (Bt, S, S)
        sc = sc - jnp.max(sc, axis=-1, keepdims=True)
        p = jnp.exp(sc)
        p = p * pl.reciprocal(jnp.sum(p, axis=-1, keepdims=True), approx=True)
        ctx_heads.append(jnp.einsum("bqk,bkd->bqd", p.astype(jnp.bfloat16), vh,
                                    preferred_element_type=jnp.float32))
    # out_proj as ONE (R,D)x(D,D) matmul on the concatenated heads.
    ctx = jnp.concatenate(ctx_heads, axis=-1).reshape(bt * s, d)
    sa = jnp.dot(ctx.astype(jnp.bfloat16), outw_ref[...],
                 preferred_element_type=jnp.float32) + outb_ref[...]
    h1 = _ln(x + sa, n1g_ref[...], n1b_ref[...], eps)                  # norm1(x + attn)

    # ---- FFN + residual + norm2, same kernel (no HBM round trip) ----
    f = jnp.dot(h1.astype(jnp.bfloat16), fw1_ref[...],
                preferred_element_type=jnp.float32) + fb1_ref[...]
    f = _gelu(f, exact_gelu)
    f = jnp.dot(f.astype(jnp.bfloat16), fw2_ref[...],
                preferred_element_type=jnp.float32) + fb2_ref[...]
    o_ref[...] = _ln(h1 + f, n2g_ref[...], n2b_ref[...], eps).reshape(bt, s, d)


def encoder_layer(x3d, pad_add, lp, *, nhead, eps=1e-5, exact_gelu=True):
    bsz, s, d = x3d.shape
    dff = lp["ff_w1"].shape[1]
    bt = _batch_tile(bsz, s)
    w_bytes = 2 * (3 * d * d + d * d + 2 * d * dff)
    est = 2 * w_bytes + 8 * bt * s * (3 * d + dff)
    kernel = functools.partial(_layer_kernel, nhead=nhead, eps=eps, exact_gelu=exact_gelu)
    return pl.pallas_call(
        kernel,
        out_shape=jax.ShapeDtypeStruct((bsz, s, d), jnp.float32),
        grid=(bsz // bt,),
        in_specs=[
            pl.BlockSpec((bt, s, d), lambda i: (i, 0, 0)),
            pl.BlockSpec((bt, 1, s), lambda i: (i, 0, 0)),
            pl.BlockSpec((d, 3 * d), lambda i: (0, 0)),
            pl.BlockSpec((1, 3 * d), lambda i: (0, 0)),
            pl.BlockSpec((d, d), lambda i: (0, 0)),
            pl.BlockSpec((1, d), lambda i: (0, 0)),
            pl.BlockSpec((1, d), lambda i: (0, 0)),
            pl.BlockSpec((1, d), lambda i: (0, 0)),
            pl.BlockSpec((d, dff), lambda i: (0, 0)),
            pl.BlockSpec((1, dff), lambda i: (0, 0)),
            pl.BlockSpec((dff, d), lambda i: (0, 0)),
            pl.BlockSpec((1, d), lambda i: (0, 0)),
            pl.BlockSpec((1, d), lambda i: (0, 0)),
            pl.BlockSpec((1, d), lambda i: (0, 0)),
        ],
        out_specs=pl.BlockSpec((bt, s, d), lambda i: (i, 0, 0)),
        compiler_params=_compiler_params(("parallel",), est),
    )(x3d, pad_add, lp["in_w"], lp["in_b"], lp["out_w"], lp["out_b"],
      lp["n1_g"], lp["n1_b"], lp["ff_w1"], lp["ff_b1"], lp["ff_w2"], lp["ff_b2"],
      lp["n2_g"], lp["n2_b"])


# ---------- K3: attention pooling + BatchNorm (eval) + final fc -------------

def _pool_head_kernel(x_ref, pad_ref, pw1_ref, pb1_ref, pg_ref, pb_ref,
                      pw2_ref, pb2_ref, bns_ref, bnh_ref, fcw_ref, fcb_ref,
                      o_ref, *, eps, exact_gelu):
    bt, s, d = x_ref.shape
    x = x_ref[...]                                                     # (Bt, S, D) f32
    pad = pad_ref[...]                                                 # (Bt, S, 1) additive
    x2 = x.reshape(bt * s, d)
    t = jnp.dot(x2.astype(jnp.bfloat16), pw1_ref[...],
                preferred_element_type=jnp.float32) + pb1_ref[...]
    t = _ln(t, pg_ref[...], pb_ref[...], eps)
    t = _gelu(t, exact_gelu)
    lg = jnp.sum(t * pw2_ref[...], axis=-1, keepdims=True) + pb2_ref[...]   # (R, 1) logits
    # Padded positions get a large negative additive logit.  NOTE: a fully-padded sequence
    # yields a uniform softmax here instead of PyTorch's NaNs (deliberate, documented).
    lg = lg.reshape(bt, s, 1) + pad
    lg = lg - jnp.max(lg, axis=1, keepdims=True)
    w = jnp.exp(lg)
    w = w * pl.reciprocal(jnp.sum(w, axis=1, keepdims=True), approx=True)
    pooled = jnp.sum(x * w, axis=1)                                    # (Bt, D)
    xb = pooled * bns_ref[...] + bnh_ref[...]                          # BatchNorm1d (eval)
    out = jnp.dot(xb.astype(jnp.bfloat16), fcw_ref[...],
                  preferred_element_type=jnp.float32) + fcb_ref[...]
    o_ref[...] = out.reshape(bt, 1, out.shape[-1])


def pool_head(x3d, pad_col, prep, *, eps=1e-5, exact_gelu=True):
    bsz, s, d = x3d.shape
    c = prep["fc_w"].shape[1]
    bt = _batch_tile(bsz, s)
    est = 4 * (d * d + d * c) + 8 * bt * s * d
    kernel = functools.partial(_pool_head_kernel, eps=eps, exact_gelu=exact_gelu)
    out = pl.pallas_call(
        kernel,
        out_shape=jax.ShapeDtypeStruct((bsz, 1, c), jnp.float32),
        grid=(bsz // bt,),
        in_specs=[
            pl.BlockSpec((bt, s, d), lambda i: (i, 0, 0)),
            pl.BlockSpec((bt, s, 1), lambda i: (i, 0, 0)),
            pl.BlockSpec((d, d), lambda i: (0, 0)),
            pl.BlockSpec((1, d), lambda i: (0, 0)),
            pl.BlockSpec((1, d), lambda i: (0, 0)),
            pl.BlockSpec((1, d), lambda i: (0, 0)),
            pl.BlockSpec((1, d), lambda i: (0, 0)),
            pl.BlockSpec((1, 1), lambda i: (0, 0)),
            pl.BlockSpec((1, d), lambda i: (0, 0)),
            pl.BlockSpec((1, d), lambda i: (0, 0)),
            pl.BlockSpec((d, c), lambda i: (0, 0)),
            pl.BlockSpec((1, c), lambda i: (0, 0)),
        ],
        out_specs=pl.BlockSpec((bt, 1, c), lambda i: (i, 0, 0)),
        compiler_params=_compiler_params(("parallel",), est),
    )(x3d, pad_col, prep["pool_w1"], prep["pool_b1"], prep["pool_ln_g"], prep["pool_ln_b"],
      prep["pool_w2"], prep["pool_b2"], prep["bn_scale"], prep["bn_shift"],
      prep["fc_w"], prep["fc_b"])
    return out.reshape(bsz, c)


# ----------------------------- parameters -----------------------------------

def init_params(key, *, d_model, nhead, num_layers, num_classes, d_proj_hidden, d_ff):
    del nhead
    keys = iter(jax.random.split(key, 256))

    def lin(din, dout):
        w = jax.random.normal(next(keys), (din, dout), jnp.float32) * (1.0 / math.sqrt(din))
        b = jax.random.normal(next(keys), (dout,), jnp.float32) * 0.01
        return w, b

    def norm(d):
        g = 1.0 + 0.02 * jax.random.normal(next(keys), (d,), jnp.float32)
        b = 0.02 * jax.random.normal(next(keys), (d,), jnp.float32)
        return g, b

    p = {}
    p["proj_w1"], p["proj_b1"] = lin(d_model, d_proj_hidden)
    p["proj_w2"], p["proj_b2"] = lin(d_proj_hidden, d_model)
    p["ln_g"], p["ln_b"] = norm(d_model)
    layers = []
    for _ in range(num_layers):
        lp = {}
        lp["in_w"], lp["in_b"] = lin(d_model, 3 * d_model)   # MHA in_proj (q|k|v)
        lp["out_w"], lp["out_b"] = lin(d_model, d_model)     # MHA out_proj
        lp["n1_g"], lp["n1_b"] = norm(d_model)
        lp["ff_w1"], lp["ff_b1"] = lin(d_model, d_ff)
        lp["ff_w2"], lp["ff_b2"] = lin(d_ff, d_model)
        lp["n2_g"], lp["n2_b"] = norm(d_model)
        layers.append(lp)
    p["layers"] = layers
    p["pool_w1"], p["pool_b1"] = lin(d_model, d_model)
    p["pool_ln_g"], p["pool_ln_b"] = norm(d_model)
    p["pool_w2"], p["pool_b2"] = lin(d_model, 1)
    p["bn_g"], p["bn_b"] = norm(d_model)
    p["bn_rm"] = jnp.zeros((d_model,), jnp.float32)   # BatchNorm1d running_mean (fresh init)
    p["bn_rv"] = jnp.ones((d_model,), jnp.float32)    # BatchNorm1d running_var  (fresh init)
    p["fc_w"], p["fc_b"] = lin(d_model, num_classes)
    return p


def prepare_params(params, *, nhead):
    """One-time parameter prep OUTSIDE the jitted forward: bf16 weight casts, fold the
    1/sqrt(dh) scale into the Q slice of in_proj, fold eval-mode BatchNorm into an affine,
    reshape biases/norm params to lane-dense (1, X) rows."""
    bf16 = jnp.bfloat16
    d = params["proj_w1"].shape[0]
    dp = params["proj_w1"].shape[1]
    c = params["fc_w"].shape[1]
    dh = d // nhead
    scale = 1.0 / math.sqrt(dh)
    eps_bn = 1e-5
    bn_scale = params["bn_g"] * jax.lax.rsqrt(params["bn_rv"] + eps_bn)
    bn_shift = params["bn_b"] - params["bn_rm"] * bn_scale

    prep = {
        "proj_w1": params["proj_w1"].astype(bf16),
        "proj_b1": params["proj_b1"].reshape(1, dp),
        "proj_w2": params["proj_w2"].astype(bf16),
        "proj_w2_mean": jnp.mean(params["proj_w2"], axis=1).reshape(1, dp),  # f32 mask path
        "proj_b2": params["proj_b2"].reshape(1, d),
        "proj_b2_mean": jnp.mean(params["proj_b2"]).reshape(1, 1),
        "ln_g": params["ln_g"].reshape(1, d),
        "ln_b": params["ln_b"].reshape(1, d),
        "pool_w1": params["pool_w1"].astype(bf16),
        "pool_b1": params["pool_b1"].reshape(1, d),
        "pool_ln_g": params["pool_ln_g"].reshape(1, d),
        "pool_ln_b": params["pool_ln_b"].reshape(1, d),
        "pool_w2": params["pool_w2"].reshape(1, d),
        "pool_b2": params["pool_b2"].reshape(1, 1),
        "bn_scale": bn_scale.reshape(1, d),
        "bn_shift": bn_shift.reshape(1, d),
        "fc_w": params["fc_w"].astype(bf16),
        "fc_b": params["fc_b"].reshape(1, c),
    }
    layers = []
    for lp in params["layers"]:
        dff = lp["ff_w1"].shape[1]
        in_w = lp["in_w"].at[:, :d].multiply(scale)
        in_b = lp["in_b"].at[:d].multiply(scale)
        layers.append({
            "in_w": in_w.astype(bf16),
            "in_b": in_b.reshape(1, 3 * d),
            "out_w": lp["out_w"].astype(bf16),
            "out_b": lp["out_b"].reshape(1, d),
            "n1_g": lp["n1_g"].reshape(1, d),
            "n1_b": lp["n1_b"].reshape(1, d),
            "ff_w1": lp["ff_w1"].astype(bf16),
            "ff_b1": lp["ff_b1"].reshape(1, dff),
            "ff_w2": lp["ff_w2"].astype(bf16),
            "ff_b2": lp["ff_b2"].reshape(1, d),
            "n2_g": lp["n2_g"].reshape(1, d),
            "n2_b": lp["n2_b"].reshape(1, d),
        })
    prep["layers"] = layers
    return prep


# ------------------------------- forward ------------------------------------

def network_forward(prep, embeds, *, nhead, exact_gelu=True):
    bsz, seq, d = embeds.shape
    n = bsz * seq

    # K1: proj FFN + additive pad mask + LayerNorm
    x2d, m = proj_mask_ln(
        embeds.reshape(n, d),
        prep["proj_w1"], prep["proj_b1"], prep["proj_w2"], prep["proj_w2_mean"],
        prep["proj_b2"], prep["proj_b2_mean"], prep["ln_g"], prep["ln_b"],
        exact_gelu=exact_gelu)
    pad_attn = m.reshape(bsz, 1, seq)   # additive mask broadcast over query rows
    pad_pool = m.reshape(bsz, seq, 1)   # additive mask for pooling logits

    # Transformer encoder (post-norm layers; eval mode -> dropouts are identity)
    x3d = x2d.reshape(bsz, seq, d)
    for lp in prep["layers"]:
        x3d = encoder_layer(x3d, pad_attn, lp, nhead=nhead, exact_gelu=exact_gelu)

    # K3: attention pooling + BatchNorm (eval) + fc
    return pool_head(x3d, pad_pool, prep, exact_gelu=exact_gelu)


if __name__ == "__main__":
    key = jax.random.PRNGKey(0)
    kp, kx = jax.random.split(key)

    # Small, self-consistent hyperparameters (scaled-down version of the defaults).
    B, S = 2, 8
    D, NHEAD, NLAYERS, NCLASSES = 128, 4, 2, 32
    D_PROJ_HIDDEN, D_FF = 4 * D, 256

    params = init_params(kp, d_model=D, nhead=NHEAD, num_layers=NLAYERS,
                         num_classes=NCLASSES, d_proj_hidden=D_PROJ_HIDDEN, d_ff=D_FF)
    prep = prepare_params(params, nhead=NHEAD)   # one-time: bf16 casts, Q-scale, BN fold
    embeds = jax.random.normal(kx, (B, S, D), jnp.float32)

    try:
        fwd = jax.jit(functools.partial(network_forward, nhead=NHEAD, exact_gelu=True))
        out = jax.block_until_ready(fwd(prep, embeds))
    except Exception:
        # TODO(synk): exact erf-based GELU may fail to lower on some Pallas/TPU builds;
        # fall back to tanh-approximate GELU (~1e-3 from PyTorch's exact GELU).
        fwd = jax.jit(functools.partial(network_forward, nhead=NHEAD, exact_gelu=False))
        out = jax.block_until_ready(fwd(prep, embeds))

    assert out.shape == (B, NCLASSES), out.shape
    assert bool(jnp.all(jnp.isfinite(out)))
    print("KERNEL_OK")
</pallas_src>

<mosaic_0001>
module attributes {stable_mosaic.version = 11 : i64} {
  func.func @_proj_mask_ln_kernel(%arg0: i32, %arg1: memref<16x128xf32, #tpu.memory_space<vmem>>, %arg2: memref<128x512xbf16, #tpu.memory_space<vmem>>, %arg3: memref<1x512xf32, #tpu.memory_space<vmem>>, %arg4: memref<512x128xbf16, #tpu.memory_space<vmem>>, %arg5: memref<1x512xf32, #tpu.memory_space<vmem>>, %arg6: memref<1x128xf32, #tpu.memory_space<vmem>>, %arg7: memref<1x1xf32, #tpu.memory_space<vmem>>, %arg8: memref<1x128xf32, #tpu.memory_space<vmem>>, %arg9: memref<1x128xf32, #tpu.memory_space<vmem>>, %arg10: memref<16x128xf32, #tpu.memory_space<vmem>>, %arg11: memref<16x1xf32, #tpu.memory_space<vmem>>) attributes {dimension_semantics = [#tpu.dimension_semantics<parallel>], iteration_bounds = array<i64: 1>, scalar_prefetch = 0 : i64, scratch_operands = 0 : i64, tpu.core_type = #tpu.core_type<tc>, window_params = [{transform_indices = @transform_0, window_bounds = array<i64: 16, 128>}, {pipeline_mode = #tpu.pipeline_mode<synchronous>, transform_indices = @transform_1, window_bounds = array<i64: 128, 512>}, {pipeline_mode = #tpu.pipeline_mode<synchronous>, transform_indices = @transform_2, window_bounds = array<i64: 1, 512>}, {pipeline_mode = #tpu.pipeline_mode<synchronous>, transform_indices = @transform_3, window_bounds = array<i64: 512, 128>}, {pipeline_mode = #tpu.pipeline_mode<synchronous>, transform_indices = @transform_4, window_bounds = array<i64: 1, 512>}, {pipeline_mode = #tpu.pipeline_mode<synchronous>, transform_indices = @transform_5, window_bounds = array<i64: 1, 128>}, {pipeline_mode = #tpu.pipeline_mode<synchronous>, transform_indices = @transform_6, window_bounds = array<i64: 1, 1>}, {pipeline_mode = #tpu.pipeline_mode<synchronous>, transform_indices = @transform_7, window_bounds = array<i64: 1, 128>}, {pipeline_mode = #tpu.pipeline_mode<synchronous>, transform_indices = @transform_8, window_bounds = array<i64: 1, 128>}, {transform_indices = @transform_9, window_bounds = array<i64: 16, 128>}, {transform_indices = @transform_10, window_bounds = array<i64: 16, 1>}]} {
    %c0 = arith.constant 0 : index
    %c0_0 = arith.constant 0 : index
    %0 = vector.load %arg1[%c0, %c0_0] : memref<16x128xf32, #tpu.memory_space<vmem>>, vector<16x128xf32>
    %1 = arith.truncf %0 : vector<16x128xf32> to vector<16x128xbf16>
    %c0_1 = arith.constant 0 : index
    %c0_2 = arith.constant 0 : index
    %2 = vector.load %arg2[%c0_1, %c0_2] : memref<128x512xbf16, #tpu.memory_space<vmem>>, vector<128x512xbf16>
    %cst = arith.constant dense<0.000000e+00> : vector<16x512xf32>
    %3 = tpu.matmul %1, %2, %cst {dimension_numbers = #tpu.dot_dimension_numbers<[1], [0], [0], [1], [0, 0, 1, 1], [], []>} : vector<16x128xbf16>, vector<128x512xbf16>, vector<16x512xf32> -> vector<16x512xf32>
    %c0_3 = arith.constant 0 : index
    %c0_4 = arith.constant 0 : index
    %4 = vector.load %arg3[%c0_3, %c0_4] : memref<1x512xf32, #tpu.memory_space<vmem>>, vector<1x512xf32>
    %5 = vector.broadcast %4 : vector<1x512xf32> to vector<16x512xf32>
    %6 = arith.addf %3, %5 : vector<16x512xf32>
    %cst_5 = arith.constant 5.000000e-01 : f32
    %7 = vector.broadcast %cst_5 : f32 to vector<16x512xf32>
    %8 = arith.mulf %7, %6 : vector<16x512xf32>
    %cst_6 = arith.constant 0.707106769 : f32
    %9 = vector.broadcast %cst_6 : f32 to vector<16x512xf32>
    %10 = arith.mulf %6, %9 : vector<16x512xf32>
    %11 = math.erf %10 : vector<16x512xf32>
    %cst_7 = arith.constant 1.000000e+00 : f32
    %12 = vector.broadcast %cst_7 : f32 to vector<16x512xf32>
    %13 = arith.addf %12, %11 : vector<16x512xf32>
    %14 = arith.mulf %8, %13 : vector<16x512xf32>
    %15 = arith.truncf %14 : vector<16x512xf32> to vector<16x512xbf16>
    %c0_8 = arith.constant 0 : index
    %c0_9 = arith.constant 0 : index
    %16 = vector.load %arg4[%c0_8, %c0_9] : memref<512x128xbf16, #tpu.memory_space<vmem>>, vector<512x128xbf16>
    %cst_10 = arith.constant dense<0.000000e+00> : vector<16x128xf32>
    %17 = tpu.matmul %15, %16, %cst_10 {dimension_numbers = #tpu.dot_dimension_numbers<[1], [0], [0], [1], [0, 0, 1, 1], [], []>} : vector<16x512xbf16>, vector<512x128xbf16>, vector<16x128xf32> -> vector<16x128xf32>
    %c0_11 = arith.constant 0 : index
    %c0_12 = arith.constant 0 : index
    %18 = vector.load %arg6[%c0_11, %c0_12] : memref<1x128xf32, #tpu.memory_space<vmem>>, vector<1x128xf32>
    %19 = vector.broadcast %18 : vector<1x128xf32> to vector<16x128xf32>
    %20 = arith.addf %17, %19 : vector<16x128xf32>
    %c0_13 = arith.constant 0 : index
    %c0_14 = arith.constant 0 : index
    %21 = vector.load %arg5[%c0_13, %c0_14] : memref<1x512xf32, #tpu.memory_space<vmem>>, vector<1x512xf32>
    %22 = vector.broadcast %21 : vector<1x512xf32> to vector<16x512xf32>
    %23 = arith.mulf %14, %22 : vector<16x512xf32>
    %cst_15 = arith.constant dense<0.000000e+00> : vector<16xf32>
    %24 = vector.multi_reduction <add>, %23, %cst_15 [1] : vector<16x512xf32> to vector<16xf32>
    %25 = vector.shape_cast %24 : vector<16xf32> to vector<16x1xf32>
    %c0_16 = arith.constant 0 : index
    %c0_17 = arith.constant 0 : index
    %26 = vector.load %arg7[%c0_16, %c0_17] : memref<1x1xf32, #tpu.memory_space<vmem>>, vector<1x1xf32>
    %27 = vector.broadcast %26 : vector<1x1xf32> to vector<16x1xf32>
    %28 = arith.addf %25, %27 : vector<16x1xf32>
    %cst_18 = arith.constant -1.000000e+00 : f32
    %29 = vector.broadcast %cst_18 : f32 to vector<16x1xf32>
    %30 = arith.cmpf oeq, %28, %29 : vector<16x1xf32>
    %cst_19 = arith.constant -1.000000e+30 : f32
    %cst_20 = arith.constant 0.000000e+00 : f32
    %31 = vector.broadcast %cst_19 : f32 to vector<16x1xf32>
    %32 = vector.broadcast %cst_20 : f32 to vector<16x1xf32>
    %33 = arith.select %30, %31, %32 : vector<16x1xi1>, vector<16x1xf32>
    %c0_21 = arith.constant 0 : index
    %c0_22 = arith.constant 0 : index
    %34 = vector.load %arg11[%c0_21, %c0_22] : memref<16x1xf32, #tpu.memory_space<vmem>>, vector<16x1xf32>
    tpu.vector_store %arg11[%c0_21, %c0_22], %33 {strides = array<i32>} : memref<16x1xf32, #tpu.memory_space<vmem>>, vector<16x1xf32>,
    %cst_23 = arith.constant dense<0.000000e+00> : vector<16xf32>
    %35 = vector.multi_reduction <add>, %20, %cst_23 [1] : vector<16x128xf32> to vector<16xf32>
    %36 = vector.shape_cast %35 : vector<16xf32> to vector<16x1xf32>
    %cst_24 = arith.constant 1.280000e+02 : f32
    %37 = vector.broadcast %cst_24 : f32 to vector<16x1xf32>
    %38 = arith.divf %36, %37 : vector<16x1xf32>
    %39 = vector.broadcast %38 : vector<16x1xf32> to vector<16x128xf32>
    %40 = arith.subf %20, %39 : vector<16x128xf32>
    %41 = arith.mulf %40, %40 : vector<16x128xf32>
    %cst_25 = arith.constant dense<0.000000e+00> : vector<16xf32>
    %42 = vector.multi_reduction <add>, %41, %cst_25 [1] : vector<16x128xf32> to vector<16xf32>
    %43 = vector.shape_cast %42 : vector<16xf32> to vector<16x1xf32>
    %cst_26 = arith.constant 1.280000e+02 : f32
    %44 = vector.broadcast %cst_26 : f32 to vector<16x1xf32>
    %45 = arith.divf %43, %44 : vector<16x1xf32>
    %cst_27 = arith.constant 9.99999974E-6 : f32
    %46 = vector.broadcast %cst_27 : f32 to vector<16x1xf32>
    %47 = arith.addf %45, %46 : vector<16x1xf32>
    %48 = math.rsqrt %47 : vector<16x1xf32>
    %49 = vector.broadcast %48 : vector<16x1xf32> to vector<16x128xf32>
    %50 = arith.mulf %40, %49 : vector<16x128xf32>
    %c0_28 = arith.constant 0 : index
    %c0_29 = arith.constant 0 : index
    %51 = vector.load %arg8[%c0_28, %c0_29] : memref<1x128xf32, #tpu.memory_space<vmem>>, vector<1x128xf32>
    %52 = vector.broadcast %51 : vector<1x128xf32> to vector<16x128xf32>
    %53 = arith.mulf %50, %52 : vector<16x128xf32>
    %c0_30 = arith.constant 0 : index
    %c0_31 = arith.constant 0 : index
    %54 = vector.load %arg9[%c0_30, %c0_31] : memref<1x128xf32, #tpu.memory_space<vmem>>, vector<1x128xf32>
    %55 = vector.broadcast %54 : vector<1x128xf32> to vector<16x128xf32>
    %56 = arith.addf %53, %55 : vector<16x128xf32>
    %c0_32 = arith.constant 0 : index
    %c0_33 = arith.constant 0 : index
    %57 = vector.load %arg10[%c0_32, %c0_33] : memref<16x128xf32, #tpu.memory_space<vmem>>, vector<16x128xf32>
    tpu.vector_store %arg10[%c0_32, %c0_33], %56 {strides = array<i32>} : memref<16x128xf32, #tpu.memory_space<vmem>>, vector<16x128xf32>,
    return
  }
  func.func @transform_0(%arg0: i32) -> (i32, i32) {
    %c0_i32 = arith.constant 0 : i32
    %c0_i32_0 = arith.constant 0 : i32
    return %arg0, %c0_i32 : i32, i32
  }
  func.func @transform_1(%arg0: i32) -> (i32, i32) {
    %c0_i32 = arith.constant 0 : i32
    %c0_i32_0 = arith.constant 0 : i32
    %c0_i32_1 = arith.constant 0 : i32
    return %c0_i32, %c0_i32_0 : i32, i32
  }
  func.func @transform_2(%arg0: i32) -> (i32, i32) {
    %c0_i32 = arith.constant 0 : i32
    %c0_i32_0 = arith.constant 0 : i32
    %c0_i32_1 = arith.constant 0 : i32
    return %c0_i32, %c0_i32_0 : i32, i32
  }
  func.func @transform_3(%arg0: i32) -> (i32, i32) {
    %c0_i32 = arith.constant 0 : i32
    %c0_i32_0 = arith.constant 0 : i32
    %c0_i32_1 = arith.constant 0 : i32
    return %c0_i32, %c0_i32_0 : i32, i32
  }
  func.func @transform_4(%arg0: i32) -> (i32, i32) {
    %c0_i32 = arith.constant 0 : i32
    %c0_i32_0 = arith.constant 0 : i32
    %c0_i32_1 = arith.constant 0 : i32
    return %c0_i32, %c0_i32_0 : i32, i32
  }
  func.func @transform_5(%arg0: i32) -> (i32, i32) {
    %c0_i32 = arith.constant 0 : i32
    %c0_i32_0 = arith.constant 0 : i32
    %c0_i32_1 = arith.constant 0 : i32
    return %c0_i32, %c0_i32_0 : i32, i32
  }
  func.func @transform_6(%arg0: i32) -> (i32, i32) {
    %c0_i32 = arith.constant 0 : i32
    %c0_i32_0 = arith.constant 0 : i32
    %c0_i32_1 = arith.constant 0 : i32
    return %c0_i32, %c0_i32_0 : i32, i32
  }
  func.func @transform_7(%arg0: i32) -> (i32, i32) {
    %c0_i32 = arith.constant 0 : i32
    %c0_i32_0 = arith.constant 0 : i32
    %c0_i32_1 = arith.constant 0 : i32
    return %c0_i32, %c0_i32_0 : i32, i32
  }
  func.func @transform_8(%arg0: i32) -> (i32, i32) {
    %c0_i32 = arith.constant 0 : i32
    %c0_i32_0 = arith.constant 0 : i32
    %c0_i32_1 = arith.constant 0 : i32
    return %c0_i32, %c0_i32_0 : i32, i32
  }
  func.func @transform_9(%arg0: i32) -> (i32, i32) {
    %c0_i32 = arith.constant 0 : i32
    %c0_i32_0 = arith.constant 0 : i32
    return %arg0, %c0_i32 : i32, i32
  }
  func.func @transform_10(%arg0: i32) -> (i32, i32) {
    %c0_i32 = arith.constant 0 : i32
    %c0_i32_0 = arith.constant 0 : i32
    return %arg0, %c0_i32 : i32, i32
  }
}

module attributes {stable_mosaic.version = 11 : i64} {
  func.func @_layer_kernel(%arg0: i32, %arg1: memref<2x8x128xf32, #tpu.memory_space<vmem>>, %arg2: memref<2x1x8xf32, #tpu.memory_space<vmem>>, %arg3: memref<128x384xbf16, #tpu.memory_space<vmem>>, %arg4: memref<1x384xf32, #tpu.memory_space<vmem>>, %arg5: memref<128x128xbf16, #tpu.memory_space<vmem>>, %arg6: memref<1x128xf32, #tpu.memory_space<vmem>>, %arg7: memref<1x128xf32, #tpu.memory_space<vmem>>, %arg8: memref<1x128xf32, #tpu.memory_space<vmem>>, %arg9: memref<128x256xbf16, #tpu.memory_space<vmem>>, %arg10: memref<1x256xf32, #tpu.memory_space<vmem>>, %arg11: memref<256x128xbf16, #tpu.memory_space<vmem>>, %arg12: memref<1x128xf32, #tpu.memory_space<vmem>>, %arg13: memref<1x128xf32, #tpu.memory_space<vmem>>, %arg14: memref<1x128xf32, #tpu.memory_space<vmem>>, %arg15: memref<2x8x128xf32, #tpu.memory_space<vmem>>) attributes {dimension_semantics = [#tpu.dimension_semantics<parallel>], iteration_bounds = array<i64: 1>, scalar_prefetch = 0 : i64, scratch_operands = 0 : i64, tpu.core_type = #tpu.core_type<tc>, window_params = [{transform_indices = @transform_0, window_bounds = array<i64: 2, 8, 128>}, {transform_indices = @transform_1, window_bounds = array<i64: 2, 1, 8>}, {pipeline_mode = #tpu.pipeline_mode<synchronous>, transform_indices = @transform_2, window_bounds = array<i64: 128, 384>}, {pipeline_mode = #tpu.pipeline_mode<synchronous>, transform_indices = @transform_3, window_bounds = array<i64: 1, 384>}, {pipeline_mode = #tpu.pipeline_mode<synchronous>, transform_indices = @transform_4, window_bounds = array<i64: 128, 128>}, {pipeline_mode = #tpu.pipeline_mode<synchronous>, transform_indices = @transform_5, window_bounds = array<i64: 1, 128>}, {pipeline_mode = #tpu.pipeline_mode<synchronous>, transform_indices = @transform_6, window_bounds = array<i64: 1, 128>}, {pipeline_mode = #tpu.pipeline_mode<synchronous>, transform_indices = @transform_7, window_bounds = array<i64: 1, 128>}, {pipeline_mode = #tpu.pipeline_mode<synchronous>, transform_indices = @transform_8, window_bounds = array<i64: 128, 256>}, {pipeline_mode = #tpu.pipeline_mode<synchronous>, transform_indices = @transform_9, window_bounds = array<i64: 1, 256>}, {pipeline_mode = #tpu.pipeline_mode<synchronous>, transform_indices = @transform_10, window_bounds = array<i64: 256, 128>}, {pipeline_mode = #tpu.pipeline_mode<synchronous>, transform_indices = @transform_11, window_bounds = array<i64: 1, 128>}, {pipeline_mode = #tpu.pipeline_mode<synchronous>, transform_indices = @transform_12, window_bounds = array<i64: 1, 128>}, {pipeline_mode = #tpu.pipeline_mode<synchronous>, transform_indices = @transform_13, window_bounds = array<i64: 1, 128>}, {transform_indices = @transform_14, window_bounds = array<i64: 2, 8, 128>}]} {
    %c0 = arith.constant 0 : index
    %c0_0 = arith.constant 0 : index
    %c0_1 = arith.constant 0 : index
    %0 = vector.load %arg1[%c0, %c0_0, %c0_1] : memref<2x8x128xf32, #tpu.memory_space<vmem>>, vector<2x8x128xf32>
    %1 = vector.shape_cast %0 : vector<2x8x128xf32> to vector<16x128xf32>
    %c0_2 = arith.constant 0 : index
    %c0_3 = arith.constant 0 : index
    %c0_4 = arith.constant 0 : index
    %2 = vector.load %arg2[%c0_2, %c0_3, %c0_4] : memref<2x1x8xf32, #tpu.memory_space<vmem>>, vector<2x1x8xf32>
    %3 = arith.truncf %1 : vector<16x128xf32> to vector<16x128xbf16>
    %c0_5 = arith.constant 0 : index
    %c0_6 = arith.constant 0 : index
    %4 = vector.load %arg3[%c0_5, %c0_6] : memref<128x384xbf16, #tpu.memory_space<vmem>>, vector<128x384xbf16>
    %cst = arith.constant dense<0.000000e+00> : vector<16x384xf32>
    %5 = tpu.matmul %3, %4, %cst {dimension_numbers = #tpu.dot_dimension_numbers<[1], [0], [0], [1], [0, 0, 1, 1], [], []>} : vector<16x128xbf16>, vector<128x384xbf16>, vector<16x384xf32> -> vector<16x384xf32>
    %c0_7 = arith.constant 0 : index
    %c0_8 = arith.constant 0 : index
    %6 = vector.load %arg4[%c0_7, %c0_8] : memref<1x384xf32, #tpu.memory_space<vmem>>, vector<1x384xf32>
    %7 = vector.broadcast %6 : vector<1x384xf32> to vector<16x384xf32>
    %8 = arith.addf %5, %7 : vector<16x384xf32>
    %9 = vector.shape_cast %8 : vector<16x384xf32> to vector<2x8x384xf32>
    %10 = vector.extract_strided_slice %9 {offsets = [0, 0, 0], sizes = [2, 8, 32], strides = [1, 1, 1]} : vector<2x8x384xf32> to vector<2x8x32xf32>
    %11 = arith.truncf %10 : vector<2x8x32xf32> to vector<2x8x32xbf16>
    %12 = vector.extract_strided_slice %9 {offsets = [0, 0, 128], sizes = [2, 8, 32], strides = [1, 1, 1]} : vector<2x8x384xf32> to vector<2x8x32xf32>
    %13 = arith.truncf %12 : vector<2x8x32xf32> to vector<2x8x32xbf16>
    %14 = vector.extract_strided_slice %9 {offsets = [0, 0, 256], sizes = [2, 8, 32], strides = [1, 1, 1]} : vector<2x8x384xf32> to vector<2x8x32xf32>
    %15 = arith.truncf %14 : vector<2x8x32xf32> to vector<2x8x32xbf16>
    "tpu.trace_start"() <{level = 10 : i32, message = "bqd,bkd->bqk"}> : () -> ()
    %cst_9 = arith.constant dense<0.000000e+00> : vector<2x8x8xf32>
    %16 = tpu.matmul %11, %13, %cst_9 {dimension_numbers = #tpu.dot_dimension_numbers<[2], [2], [1], [1], [0, 0, 0, 1, 1, 1], [0], [0]>} : vector<2x8x32xbf16>, vector<2x8x32xbf16>, vector<2x8x8xf32> -> vector<2x8x8xf32>
    "tpu.trace_stop"() : () -> ()
    %17 = vector.broadcast %2 : vector<2x1x8xf32> to vector<2x8x8xf32>
    %18 = arith.addf %16, %17 : vector<2x8x8xf32>
    %cst_10 = arith.constant dense<0xFF800000> : vector<2x8xf32>
    %19 = vector.multi_reduction <maximumf>, %18, %cst_10 [2] : vector<2x8x8xf32> to vector<2x8xf32>
    %20 = vector.shape_cast %19 : vector<2x8xf32> to vector<2x8x1xf32>
    %21 = vector.broadcast %20 : vector<2x8x1xf32> to vector<2x8x8xf32>
    %22 = arith.subf %18, %21 : vector<2x8x8xf32>
    %23 = math.exp %22 : vector<2x8x8xf32>
    %cst_11 = arith.constant dense<0.000000e+00> : vector<2x8xf32>
    %24 = vector.multi_reduction <add>, %23, %cst_11 [2] : vector<2x8x8xf32> to vector<2x8xf32>
    %25 = vector.shape_cast %24 : vector<2x8xf32> to vector<2x8x1xf32>
    %26 = tpu.reciprocal %25 {approx = true} : vector<2x8x1xf32> -> vector<2x8x1xf32>
    %27 = vector.broadcast %26 : vector<2x8x1xf32> to vector<2x8x8xf32>
    %28 = arith.mulf %23, %27 : vector<2x8x8xf32>
    %29 = arith.truncf %28 : vector<2x8x8xf32> to vector<2x8x8xbf16>
    "tpu.trace_start"() <{level = 10 : i32, message = "bqk,bkd->bqd"}> : () -> ()
    %cst_12 = arith.constant dense<0.000000e+00> : vector<2x8x32xf32>
    %30 = tpu.matmul %29, %15, %cst_12 {dimension_numbers = #tpu.dot_dimension_numbers<[2], [1], [1], [2], [0, 0, 0, 1, 1, 2], [0], [0]>} : vector<2x8x8xbf16>, vector<2x8x32xbf16>, vector<2x8x32xf32> -> vector<2x8x32xf32>
    "tpu.trace_stop"() : () -> ()
    %31 = vector.extract_strided_slice %9 {offsets = [0, 0, 32], sizes = [2, 8, 32], strides = [1, 1, 1]} : vector<2x8x384xf32> to vector<2x8x32xf32>
    %32 = arith.truncf %31 : vector<2x8x32xf32> to vector<2x8x32xbf16>
    %33 = vector.extract_strided_slice %9 {offsets = [0, 0, 160], sizes = [2, 8, 32], strides = [1, 1, 1]} : vector<2x8x384xf32> to vector<2x8x32xf32>
    %34 = arith.truncf %33 : vector<2x8x32xf32> to vector<2x8x32xbf16>
    %35 = vector.extract_strided_slice %9 {offsets = [0, 0, 288], sizes = [2, 8, 32], strides = [1, 1, 1]} : vector<2x8x384xf32> to vector<2x8x32xf32>
    %36 = arith.truncf %35 : vector<2x8x32xf32> to vector<2x8x32xbf16>
    "tpu.trace_start"() <{level = 10 : i32, message = "bqd,bkd->bqk"}> : () -> ()
    %cst_13 = arith.constant dense<0.000000e+00> : vector<2x8x8xf32>
    %37 = tpu.matmul %32, %34, %cst_13 {dimension_numbers = #tpu.dot_dimension_numbers<[2], [2], [1], [1], [0, 0, 0, 1, 1, 1], [0], [0]>} : vector<2x8x32xbf16>, vector<2x8x32xbf16>, vector<2x8x8xf32> -> vector<2x8x8xf32>
    "tpu.trace_stop"() : () -> ()
    %38 = vector.broadcast %2 : vector<2x1x8xf32> to vector<2x8x8xf32>
    %39 = arith.addf %37, %38 : vector<2x8x8xf32>
    %cst_14 = arith.constant dense<0xFF800000> : vector<2x8xf32>
    %40 = vector.multi_reduction <maximumf>, %39, %cst_14 [2] : vector<2x8x8xf32> to vector<2x8xf32>
    %41 = vector.shape_cast %40 : vector<2x8xf32> to vector<2x8x1xf32>
    %42 = vector.broadcast %41 : vector<2x8x1xf32> to vector<2x8x8xf32>
    %43 = arith.subf %39, %42 : vector<2x8x8xf32>
    %44 = math.exp %43 : vector<2x8x8xf32>
    %cst_15 = arith.constant dense<0.000000e+00> : vector<2x8xf32>
    %45 = vector.multi_reduction <add>, %44, %cst_15 [2] : vector<2x8x8xf32> to vector<2x8xf32>
    %46 = vector.shape_cast %45 : vector<2x8xf32> to vector<2x8x1xf32>
    %47 = tpu.reciprocal %46 {approx = true} : vector<2x8x1xf32> -> vector<2x8x1xf32>
    %48 = vector.broadcast %47 : vector<2x8x1xf32> to vector<2x8x8xf32>
    %49 = arith.mulf %44, %48 : vector<2x8x8xf32>
    %50 = arith.truncf %49 : vector<2x8x8xf32> to vector<2x8x8xbf16>
    "tpu.trace_start"() <{level = 10 : i32, message = "bqk,bkd->bqd"}> : () -> ()
    %cst_16 = arith.constant dense<0.000000e+00> : vector<2x8x32xf32>
    %51 = tpu.matmul %50, %36, %cst_16 {dimension_numbers = #tpu.dot_dimension_numbers<[2], [1], [1], [2], [0, 0, 0, 1, 1, 2], [0], [0]>} : vector<2x8x8xbf16>, vector<2x8x32xbf16>, vector<2x8x32xf32> -> vector<2x8x32xf32>
    "tpu.trace_stop"() : () -> ()
    %52 = vector.extract_strided_slice %9 {offsets = [0, 0, 64], sizes = [2, 8, 32], strides = [1, 1, 1]} : vector<2x8x384xf32> to vector<2x8x32xf32>
    %53 = arith.truncf %52 : vector<2x8x32xf32> to vector<2x8x32xbf16>
    %54 = vector.extract_strided_slice %9 {offsets = [0, 0, 192], sizes = [2, 8, 32], strides = [1, 1, 1]} : vector<2x8x384xf32> to vector<2x8x32xf32>
    %55 = arith.truncf %54 : vector<2x8x32xf32> to vector<2x8x32xbf16>
    %56 = vector.extract_strided_slice %9 {offsets = [0, 0, 320], sizes = [2, 8, 32], strides = [1, 1, 1]} : vector<2x8x384xf32> to vector<2x8x32xf32>
    %57 = arith.truncf %56 : vector<2x8x32xf32> to vector<2x8x32xbf16>
    "tpu.trace_start"() <{level = 10 : i32, message = "bqd,bkd->bqk"}> : () -> ()
    %cst_17 = arith.constant dense<0.000000e+00> : vector<2x8x8xf32>
    %58 = tpu.matmul %53, %55, %cst_17 {dimension_numbers = #tpu.dot_dimension_numbers<[2], [2], [1], [1], [0, 0, 0, 1, 1, 1], [0], [0]>} : vector<2x8x32xbf16>, vector<2x8x32xbf16>, vector<2x8x8xf32> -> vector<2x8x8xf32>
    "tpu.trace_stop"() : () -> ()
    %59 = vector.broadcast %2 : vector<2x1x8xf32> to vector<2x8x8xf32>
    %60 = arith.addf %58, %59 : vector<2x8x8xf32>
    %cst_18 = arith.constant dense<0xFF800000> : vector<2x8xf32>
    %61 = vector.multi_reduction <maximumf>, %60, %cst_18 [2] : vector<2x8x8xf32> to vector<2x8xf32>
    %62 = vector.shape_cast %61 : vector<2x8xf32> to vector<2x8x1xf32>
    %63 = vector.broadcast %62 : vector<2x8x1xf32> to vector<2x8x8xf32>
    %64 = arith.subf %60, %63 : vector<2x8x8xf32>
    %65 = math.exp %64 : vector<2x8x8xf32>
    %cst_19 = arith.constant dense<0.000000e+00> : vector<2x8xf32>
    %66 = vector.multi_reduction <add>, %65, %cst_19 [2] : vector<2x8x8xf32> to vector<2x8xf32>
    %67 = vector.shape_cast %66 : vector<2x8xf32> to vector<2x8x1xf32>
    %68 = tpu.reciprocal %67 {approx = true} : vector<2x8x1xf32> -> vector<2x8x1xf32>
    %69 = vector.broadcast %68 : vector<2x8x1xf32> to vector<2x8x8xf32>
    %70 = arith.mulf %65, %69 : vector<2x8x8xf32>
    %71 = arith.truncf %70 : vector<2x8x8xf32> to vector<2x8x8xbf16>
    "tpu.trace_start"() <{level = 10 : i32, message = "bqk,bkd->bqd"}> : () -> ()
    %cst_20 = arith.constant dense<0.000000e+00> : vector<2x8x32xf32>
    %72 = tpu.matmul %71, %57, %cst_20 {dimension_numbers = #tpu.dot_dimension_numbers<[2], [1], [1], [2], [0, 0, 0, 1, 1, 2], [0], [0]>} : vector<2x8x8xbf16>, vector<2x8x32xbf16>, vector<2x8x32xf32> -> vector<2x8x32xf32>
    "tpu.trace_stop"() : () -> ()
    %73 = vector.extract_strided_slice %9 {offsets = [0, 0, 96], sizes = [2, 8, 32], strides = [1, 1, 1]} : vector<2x8x384xf32> to vector<2x8x32xf32>
    %74 = arith.truncf %73 : vector<2x8x32xf32> to vector<2x8x32xbf16>
    %75 = vector.extract_strided_slice %9 {offsets = [0, 0, 224], sizes = [2, 8, 32], strides = [1, 1, 1]} : vector<2x8x384xf32> to vector<2x8x32xf32>
    %76 = arith.truncf %75 : vector<2x8x32xf32> to vector<2x8x32xbf16>
    %77 = vector.extract_strided_slice %9 {offsets = [0, 0, 352], sizes = [2, 8, 32], strides = [1, 1, 1]} : vector<2x8x384xf32> to vector<2x8x32xf32>
    %78 = arith.truncf %77 : vector<2x8x32xf32> to vector<2x8x32xbf16>
    "tpu.trace_start"() <{level = 10 : i32, message = "bqd,bkd->bqk"}> : () -> ()
    %cst_21 = arith.constant dense<0.000000e+00> : vector<2x8x8xf32>
    %79 = tpu.matmul %74, %76, %cst_21 {dimension_numbers = #tpu.dot_dimension_numbers<[2], [2], [1], [1], [0, 0, 0, 1, 1, 1], [0], [0]>} : vector<2x8x32xbf16>, vector<2x8x32xbf16>, vector<2x8x8xf32> -> vector<2x8x8xf32>
    "tpu.trace_stop"() : () -> ()
    %80 = vector.broadcast %2 : vector<2x1x8xf32> to vector<2x8x8xf32>
    %81 = arith.addf %79, %80 : vector<2x8x8xf32>
    %cst_22 = arith.constant dense<0xFF800000> : vector<2x8xf32>
    %82 = vector.multi_reduction <maximumf>, %81, %cst_22 [2] : vector<2x8x8xf32> to vector<2x8xf32>
    %83 = vector.shape_cast %82 : vector<2x8xf32> to vector<2x8x1xf32>
    %84 = vector.broadcast %83 : vector<2x8x1xf32> to vector<2x8x8xf32>
    %85 = arith.subf %81, %84 : vector<2x8x8xf32>
    %86 = math.exp %85 : vector<2x8x8xf32>
    %cst_23 = arith.constant dense<0.000000e+00> : vector<2x8xf32>
    %87 = vector.multi_reduction <add>, %86, %cst_23 [2] : vector<2x8x8xf32> to vector<2x8xf32>
    %88 = vector.shape_cast %87 : vector<2x8xf32> to vector<2x8x1xf32>
    %89 = tpu.reciprocal %88 {approx = true} : vector<2x8x1xf32> -> vector<2x8x1xf32>
    %90 = vector.broadcast %89 : vector<2x8x1xf32> to vector<2x8x8xf32>
    %91 = arith.mulf %86, %90 : vector<2x8x8xf32>
    %92 = arith.truncf %91 : vector<2x8x8xf32> to vector<2x8x8xbf16>
    "tpu.trace_start"() <{level = 10 : i32, message = "bqk,bkd->bqd"}> : () -> ()
    %cst_24 = arith.constant dense<0.000000e+00> : vector<2x8x32xf32>
    %93 = tpu.matmul %92, %78, %cst_24 {dimension_numbers = #tpu.dot_dimension_numbers<[2], [1], [1], [2], [0, 0, 0, 1, 1, 2], [0], [0]>} : vector<2x8x8xbf16>, vector<2x8x32xbf16>, vector<2x8x32xf32> -> vector<2x8x32xf32>
    "tpu.trace_stop"() : () -> ()
    %94 = tpu.concatenate %30, %51, %72, %93 in 2 : vector<2x8x32xf32>, vector<2x8x32xf32>, vector<2x8x32xf32>, vector<2x8x32xf32> -> vector<2x8x128xf32>
    %95 = vector.shape_cast %94 : vector<2x8x128xf32> to vector<16x128xf32>
    %96 = arith.truncf %95 : vector<16x128xf32> to vector<16x128xbf16>
    %c0_25 = arith.constant 0 : index
    %c0_26 = arith.constant 0 : index
    %97 = vector.load %arg5[%c0_25, %c0_26] : memref<128x128xbf16, #tpu.memory_space<vmem>>, vector<128x128xbf16>
    %cst_27 = arith.constant dense<0.000000e+00> : vector<16x128xf32>
    %98 = tpu.matmul %96, %97, %cst_27 {dimension_numbers = #tpu.dot_dimension_numbers<[1], [0], [0], [1], [0, 0, 1, 1], [], []>} : vector<16x128xbf16>, vector<128x128xbf16>, vector<16x128xf32> -> vector<16x128xf32>
    %c0_28 = arith.constant 0 : index
    %c0_29 = arith.constant 0 : index
    %99 = vector.load %arg6[%c0_28, %c0_29] : memref<1x128xf32, #tpu.memory_space<vmem>>, vector<1x128xf32>
    %100 = vector.broadcast %99 : vector<1x128xf32> to vector<16x128xf32>
    %101 = arith.addf %98, %100 : vector<16x128xf32>
    %102 = arith.addf %1, %101 : vector<16x128xf32>
    %c0_30 = arith.constant 0 : index
    %c0_31 = arith.constant 0 : index
    %103 = vector.load %arg7[%c0_30, %c0_31] : memref<1x128xf32, #tpu.memory_space<vmem>>, vector<1x128xf32>
    %c0_32 = arith.constant 0 : index
    %c0_33 = arith.constant 0 : index
    %104 = vector.load %arg8[%c0_32, %c0_33] : memref<1x128xf32, #tpu.memory_space<vmem>>, vector<1x128xf32>
    %cst_34 = arith.constant dense<0.000000e+00> : vector<16xf32>
    %105 = vector.multi_reduction <add>, %102, %cst_34 [1] : vector<16x128xf32> to vector<16xf32>
    %106 = vector.shape_cast %105 : vector<16xf32> to vector<16x1xf32>
    %cst_35 = arith.constant 1.280000e+02 : f32
    %107 = vector.broadcast %cst_35 : f32 to vector<16x1xf32>
    %108 = arith.divf %106, %107 : vector<16x1xf32>
    %109 = vector.broadcast %108 : vector<16x1xf32> to vector<16x128xf32>
    %110 = arith.subf %102, %109 : vector<16x128xf32>
    %111 = arith.mulf %110, %110 : vector<16x128xf32>
    %cst_36 = arith.constant dense<0.000000e+00> : vector<16xf32>
    %112 = vector.multi_reduction <add>, %111, %cst_36 [1] : vector<16x128xf32> to vector<16xf32>
    %113 = vector.shape_cast %112 : vector<16xf32> to vector<16x1xf32>
    %cst_37 = arith.constant 1.280000e+02 : f32
    %114 = vector.broadcast %cst_37 : f32 to vector<16x1xf32>
    %115 = arith.divf %113, %114 : vector<16x1xf32>
    %cst_38 = arith.constant 9.99999974E-6 : f32
    %116 = vector.broadcast %cst_38 : f32 to vector<16x1xf32>
    %117 = arith.addf %115, %116 : vector<16x1xf32>
    %118 = math.rsqrt %117 : vector<16x1xf32>
    %119 = vector.broadcast %118 : vector<16x1xf32> to vector<16x128xf32>
    %120 = arith.mulf %110, %119 : vector<16x128xf32>
    %121 = vector.broadcast %103 : vector<1x128xf32> to vector<16x128xf32>
    %122 = arith.mulf %120, %121 : vector<16x128xf32>
    %123 = vector.broadcast %104 : vector<1x128xf32> to vector<16x128xf32>
    %124 = arith.addf %122, %123 : vector<16x128xf32>
    %125 = arith.truncf %124 : vector<16x128xf32> to vector<16x128xbf16>
    %c0_39 = arith.constant 0 : index
    %c0_40 = arith.constant 0 : index
    %126 = vector.load %arg9[%c0_39, %c0_40] : memref<128x256xbf16, #tpu.memory_space<vmem>>, vector<128x256xbf16>
    %cst_41 = arith.constant dense<0.000000e+00> : vector<16x256xf32>
    %127 = tpu.matmul %125, %126, %cst_41 {dimension_numbers = #tpu.dot_dimension_numbers<[1], [0], [0], [1], [0, 0, 1, 1], [], []>} : vector<16x128xbf16>, vector<128x256xbf16>, vector<16x256xf32> -> vector<16x256xf32>
    %c0_42 = arith.constant 0 : index
    %c0_43 = arith.constant 0 : index
    %128 = vector.load %arg10[%c0_42, %c0_43] : memref<1x256xf32, #tpu.memory_space<vmem>>, vector<1x256xf32>
    %129 = vector.broadcast %128 : vector<1x256xf32> to vector<16x256xf32>
    %130 = arith.addf %127, %129 : vector<16x256xf32>
    %cst_44 = arith.constant 5.000000e-01 : f32
    %131 = vector.broadcast %cst_44 : f32 to vector<16x256xf32>
    %132 = arith.mulf %131, %130 : vector<16x256xf32>
    %cst_45 = arith.constant 0.707106769 : f32
    %133 = vector.broadcast %cst_45 : f32 to vector<16x256xf32>
    %134 = arith.mulf %130, %133 : vector<16x256xf32>
    %135 = math.erf %134 : vector<16x256xf32>
    %cst_46 = arith.constant 1.000000e+00 : f32
    %136 = vector.broadcast %cst_46 : f32 to vector<16x256xf32>
    %137 = arith.addf %136, %135 : vector<16x256xf32>
    %138 = arith.mulf %132, %137 : vector<16x256xf32>
    %139 = arith.truncf %138 : vector<16x256xf32> to vector<16x256xbf16>
    %c0_47 = arith.constant 0 : index
    %c0_48 = arith.constant 0 : index
    %140 = vector.load %arg11[%c0_47, %c0_48] : memref<256x128xbf16, #tpu.memory_space<vmem>>, vector<256x128xbf16>
    %cst_49 = arith.constant dense<0.000000e+00> : vector<16x128xf32>
    %141 = tpu.matmul %139, %140, %cst_49 {dimension_numbers = #tpu.dot_dimension_numbers<[1], [0], [0], [1], [0, 0, 1, 1], [], []>} : vector<16x256xbf16>, vector<256x128xbf16>, vector<16x128xf32> -> vector<16x128xf32>
    %c0_50 = arith.constant 0 : index
    %c0_51 = arith.constant 0 : index
    %142 = vector.load %arg12[%c0_50, %c0_51] : memref<1x128xf32, #tpu.memory_space<vmem>>, vector<1x128xf32>
    %143 = vector.broadcast %142 : vector<1x128xf32> to vector<16x128xf32>
    %144 = arith.addf %141, %143 : vector<16x128xf32>
    %145 = arith.addf %124, %144 : vector<16x128xf32>
    %c0_52 = arith.constant 0 : index
    %c0_53 = arith.constant 0 : index
    %146 = vector.load %arg13[%c0_52, %c0_53] : memref<1x128xf32, #tpu.memory_space<vmem>>, vector<1x128xf32>
    %c0_54 = arith.constant 0 : index
    %c0_55 = arith.constant 0 : index
    %147 = vector.load %arg14[%c0_54, %c0_55] : memref<1x128xf32, #tpu.memory_space<vmem>>, vector<1x128xf32>
    %cst_56 = arith.constant dense<0.000000e+00> : vector<16xf32>
    %148 = vector.multi_reduction <add>, %145, %cst_56 [1] : vector<16x128xf32> to vector<16xf32>
    %149 = vector.shape_cast %148 : vector<16xf32> to vector<16x1xf32>
    %cst_57 = arith.constant 1.280000e+02 : f32
    %150 = vector.broadcast %cst_57 : f32 to vector<16x1xf32>
    %151 = arith.divf %149, %150 : vector<16x1xf32>
    %152 = vector.broadcast %151 : vector<16x1xf32> to vector<16x128xf32>
    %153 = arith.subf %145, %152 : vector<16x128xf32>
    %154 = arith.mulf %153, %153 : vector<16x128xf32>
    %cst_58 = arith.constant dense<0.000000e+00> : vector<16xf32>
    %155 = vector.multi_reduction <add>, %154, %cst_58 [1] : vector<16x128xf32> to vector<16xf32>
    %156 = vector.shape_cast %155 : vector<16xf32> to vector<16x1xf32>
    %cst_59 = arith.constant 1.280000e+02 : f32
    %157 = vector.broadcast %cst_59 : f32 to vector<16x1xf32>
    %158 = arith.divf %156, %157 : vector<16x1xf32>
    %cst_60 = arith.constant 9.99999974E-6 : f32
    %159 = vector.broadcast %cst_60 : f32 to vector<16x1xf32>
    %160 = arith.addf %158, %159 : vector<16x1xf32>
    %161 = math.rsqrt %160 : vector<16x1xf32>
    %162 = vector.broadcast %161 : vector<16x1xf32> to vector<16x128xf32>
    %163 = arith.mulf %153, %162 : vector<16x128xf32>
    %164 = vector.broadcast %146 : vector<1x128xf32> to vector<16x128xf32>
    %165 = arith.mulf %163, %164 : vector<16x128xf32>
    %166 = vector.broadcast %147 : vector<1x128xf32> to vector<16x128xf32>
    %167 = arith.addf %165, %166 : vector<16x128xf32>
    %168 = vector.shape_cast %167 : vector<16x128xf32> to vector<2x8x128xf32>
    %c0_61 = arith.constant 0 : index
    %c0_62 = arith.constant 0 : index
    %c0_63 = arith.constant 0 : index
    %169 = vector.load %arg15[%c0_61, %c0_62, %c0_63] : memref<2x8x128xf32, #tpu.memory_space<vmem>>, vector<2x8x128xf32>
    tpu.vector_store %arg15[%c0_61, %c0_62, %c0_63], %168 {strides = array<i32>} : memref<2x8x128xf32, #tpu.memory_space<vmem>>, vector<2x8x128xf32>,
    return
  }
  func.func @transform_0(%arg0: i32) -> (i32, i32, i32) {
    %c0_i32 = arith.constant 0 : i32
    %c0_i32_0 = arith.constant 0 : i32
    %c0_i32_1 = arith.constant 0 : i32
    return %arg0, %c0_i32, %c0_i32_0 : i32, i32, i32
  }
  func.func @transform_1(%arg0: i32) -> (i32, i32, i32) {
    %c0_i32 = arith.constant 0 : i32
    %c0_i32_0 = arith.constant 0 : i32
    %c0_i32_1 = arith.constant 0 : i32
    return %arg0, %c0_i32, %c0_i32_0 : i32, i32, i32
  }
  func.func @transform_2(%arg0: i32) -> (i32, i32) {
    %c0_i32 = arith.constant 0 : i32
    %c0_i32_0 = arith.constant 0 : i32
    %c0_i32_1 = arith.constant 0 : i32
    return %c0_i32, %c0_i32_0 : i32, i32
  }
  func.func @transform_3(%arg0: i32) -> (i32, i32) {
    %c0_i32 = arith.constant 0 : i32
    %c0_i32_0 = arith.constant 0 : i32
    %c0_i32_1 = arith.constant 0 : i32
    return %c0_i32, %c0_i32_0 : i32, i32
  }
  func.func @transform_4(%arg0: i32) -> (i32, i32) {
    %c0_i32 = arith.constant 0 : i32
    %c0_i32_0 = arith.constant 0 : i32
    %c0_i32_1 = arith.constant 0 : i32
    return %c0_i32, %c0_i32_0 : i32, i32
  }
  func.func @transform_5(%arg0: i32) -> (i32, i32) {
    %c0_i32 = arith.constant 0 : i32
    %c0_i32_0 = arith.constant 0 : i32
    %c0_i32_1 = arith.constant 0 : i32
    return %c0_i32, %c0_i32_0 : i32, i32
  }
  func.func @transform_6(%arg0: i32) -> (i32, i32) {
    %c0_i32 = arith.constant 0 : i32
    %c0_i32_0 = arith.constant 0 : i32
    %c0_i32_1 = arith.constant 0 : i32
    return %c0_i32, %c0_i32_0 : i32, i32
  }
  func.func @transform_7(%arg0: i32) -> (i32, i32) {
    %c0_i32 = arith.constant 0 : i32
    %c0_i32_0 = arith.constant 0 : i32
    %c0_i32_1 = arith.constant 0 : i32
    return %c0_i32, %c0_i32_0 : i32, i32
  }
  func.func @transform_8(%arg0: i32) -> (i32, i32) {
    %c0_i32 = arith.constant 0 : i32
    %c0_i32_0 = arith.constant 0 : i32
    %c0_i32_1 = arith.constant 0 : i32
    return %c0_i32, %c0_i32_0 : i32, i32
  }
  func.func @transform_9(%arg0: i32) -> (i32, i32) {
    %c0_i32 = arith.constant 0 : i32
    %c0_i32_0 = arith.constant 0 : i32
    %c0_i32_1 = arith.constant 0 : i32
    return %c0_i32, %c0_i32_0 : i32, i32
  }
  func.func @transform_10(%arg0: i32) -> (i32, i32) {
    %c0_i32 = arith.constant 0 : i32
    %c0_i32_0 = arith.constant 0 : i32
    %c0_i32_1 = arith.constant 0 : i32
    return %c0_i32, %c0_i32_0 : i32, i32
  }
  func.func @transform_11(%arg0: i32) -> (i32, i32) {
    %c0_i32 = arith.constant 0 : i32
    %c0_i32_0 = arith.constant 0 : i32
    %c0_i32_1 = arith.constant 0 : i32
    return %c0_i32, %c0_i32_0 : i32, i32
  }
  func.func @transform_12(%arg0: i32) -> (i32, i32) {
    %c0_i32 = arith.constant 0 : i32
    %c0_i32_0 = arith.constant 0 : i32
    %c0_i32_1 = arith.constant 0 : i32
    return %c0_i32, %c0_i32_0 : i32, i32
  }
  func.func @transform_13(%arg0: i32) -> (i32, i32) {
    %c0_i32 = arith.constant 0 : i32
    %c0_i32_0 = arith.constant 0 : i32
    %c0_i32_1 = arith.constant 0 : i32
    return %c0_i32, %c0_i32_0 : i32, i32
  }
  func.func @transform_14(%arg0: i32) -> (i32, i32, i32) {
    %c0_i32 = arith.constant 0 : i32
    %c0_i32_0 = arith.constant 0 : i32
    %c0_i32_1 = arith.constant 0 : i32
    return %arg0, %c0_i32, %c0_i32_0 : i32, i32, i32
  }
}

module attributes {stable_mosaic.version = 11 : i64} {
  func.func @_pool_head_kernel(%arg0: i32, %arg1: memref<2x8x128xf32, #tpu.memory_space<vmem>>, %arg2: memref<2x8x1xf32, #tpu.memory_space<vmem>>, %arg3: memref<128x128xbf16, #tpu.memory_space<vmem>>, %arg4: memref<1x128xf32, #tpu.memory_space<vmem>>, %arg5: memref<1x128xf32, #tpu.memory_space<vmem>>, %arg6: memref<1x128xf32, #tpu.memory_space<vmem>>, %arg7: memref<1x128xf32, #tpu.memory_space<vmem>>, %arg8: memref<1x1xf32, #tpu.memory_space<vmem>>, %arg9: memref<1x128xf32, #tpu.memory_space<vmem>>, %arg10: memref<1x128xf32, #tpu.memory_space<vmem>>, %arg11: memref<128x32xbf16, #tpu.memory_space<vmem>>, %arg12: memref<1x32xf32, #tpu.memory_space<vmem>>, %arg13: memref<2x1x32xf32, #tpu.memory_space<vmem>>) attributes {dimension_semantics = [#tpu.dimension_semantics<parallel>], iteration_bounds = array<i64: 1>, scalar_prefetch = 0 : i64, scratch_operands = 0 : i64, tpu.core_type = #tpu.core_type<tc>, window_params = [{transform_indices = @transform_0, window_bounds = array<i64: 2, 8, 128>}, {transform_indices = @transform_1, window_bounds = array<i64: 2, 8, 1>}, {pipeline_mode = #tpu.pipeline_mode<synchronous>, transform_indices = @transform_2, window_bounds = array<i64: 128, 128>}, {pipeline_mode = #tpu.pipeline_mode<synchronous>, transform_indices = @transform_3, window_bounds = array<i64: 1, 128>}, {pipeline_mode = #tpu.pipeline_mode<synchronous>, transform_indices = @transform_4, window_bounds = array<i64: 1, 128>}, {pipeline_mode = #tpu.pipeline_mode<synchronous>, transform_indices = @transform_5, window_bounds = array<i64: 1, 128>}, {pipeline_mode = #tpu.pipeline_mode<synchronous>, transform_indices = @transform_6, window_bounds = array<i64: 1, 128>}, {pipeline_mode = #tpu.pipeline_mode<synchronous>, transform_indices = @transform_7, window_bounds = array<i64: 1, 1>}, {pipeline_mode = #tpu.pipeline_mode<synchronous>, transform_indices = @transform_8, window_bounds = array<i64: 1, 128>}, {pipeline_mode = #tpu.pipeline_mode<synchronous>, transform_indices = @transform_9, window_bounds = array<i64: 1, 128>}, {pipeline_mode = #tpu.pipeline_mode<synchronous>, transform_indices = @transform_10, window_bounds = array<i64: 128, 32>}, {pipeline_mode = #tpu.pipeline_mode<synchronous>, transform_indices = @transform_11, window_bounds = array<i64: 1, 32>}, {transform_indices = @transform_12, window_bounds = array<i64: 2, 1, 32>}]} {
    %c0 = arith.constant 0 : index
    %c0_0 = arith.constant 0 : index
    %c0_1 = arith.constant 0 : index
    %0 = vector.load %arg1[%c0, %c0_0, %c0_1] : memref<2x8x128xf32, #tpu.memory_space<vmem>>, vector<2x8x128xf32>
    %c0_2 = arith.constant 0 : index
    %c0_3 = arith.constant 0 : index
    %c0_4 = arith.constant 0 : index
    %1 = vector.load %arg2[%c0_2, %c0_3, %c0_4] : memref<2x8x1xf32, #tpu.memory_space<vmem>>, vector<2x8x1xf32>
    %2 = vector.shape_cast %0 : vector<2x8x128xf32> to vector<16x128xf32>
    %3 = arith.truncf %2 : vector<16x128xf32> to vector<16x128xbf16>
    %c0_5 = arith.constant 0 : index
    %c0_6 = arith.constant 0 : index
    %4 = vector.load %arg3[%c0_5, %c0_6] : memref<128x128xbf16, #tpu.memory_space<vmem>>, vector<128x128xbf16>
    %cst = arith.constant dense<0.000000e+00> : vector<16x128xf32>
    %5 = tpu.matmul %3, %4, %cst {dimension_numbers = #tpu.dot_dimension_numbers<[1], [0], [0], [1], [0, 0, 1, 1], [], []>} : vector<16x128xbf16>, vector<128x128xbf16>, vector<16x128xf32> -> vector<16x128xf32>
    %c0_7 = arith.constant 0 : index
    %c0_8 = arith.constant 0 : index
    %6 = vector.load %arg4[%c0_7, %c0_8] : memref<1x128xf32, #tpu.memory_space<vmem>>, vector<1x128xf32>
    %7 = vector.broadcast %6 : vector<1x128xf32> to vector<16x128xf32>
    %8 = arith.addf %5, %7 : vector<16x128xf32>
    %c0_9 = arith.constant 0 : index
    %c0_10 = arith.constant 0 : index
    %9 = vector.load %arg5[%c0_9, %c0_10] : memref<1x128xf32, #tpu.memory_space<vmem>>, vector<1x128xf32>
    %c0_11 = arith.constant 0 : index
    %c0_12 = arith.constant 0 : index
    %10 = vector.load %arg6[%c0_11, %c0_12] : memref<1x128xf32, #tpu.memory_space<vmem>>, vector<1x128xf32>
    %cst_13 = arith.constant dense<0.000000e+00> : vector<16xf32>
    %11 = vector.multi_reduction <add>, %8, %cst_13 [1] : vector<16x128xf32> to vector<16xf32>
    %12 = vector.shape_cast %11 : vector<16xf32> to vector<16x1xf32>
    %cst_14 = arith.constant 1.280000e+02 : f32
    %13 = vector.broadcast %cst_14 : f32 to vector<16x1xf32>
    %14 = arith.divf %12, %13 : vector<16x1xf32>
    %15 = vector.broadcast %14 : vector<16x1xf32> to vector<16x128xf32>
    %16 = arith.subf %8, %15 : vector<16x128xf32>
    %17 = arith.mulf %16, %16 : vector<16x128xf32>
    %cst_15 = arith.constant dense<0.000000e+00> : vector<16xf32>
    %18 = vector.multi_reduction <add>, %17, %cst_15 [1] : vector<16x128xf32> to vector<16xf32>
    %19 = vector.shape_cast %18 : vector<16xf32> to vector<16x1xf32>
    %cst_16 = arith.constant 1.280000e+02 : f32
    %20 = vector.broadcast %cst_16 : f32 to vector<16x1xf32>
    %21 = arith.divf %19, %20 : vector<16x1xf32>
    %cst_17 = arith.constant 9.99999974E-6 : f32
    %22 = vector.broadcast %cst_17 : f32 to vector<16x1xf32>
    %23 = arith.addf %21, %22 : vector<16x1xf32>
    %24 = math.rsqrt %23 : vector<16x1xf32>
    %25 = vector.broadcast %24 : vector<16x1xf32> to vector<16x128xf32>
    %26 = arith.mulf %16, %25 : vector<16x128xf32>
    %27 = vector.broadcast %9 : vector<1x128xf32> to vector<16x128xf32>
    %28 = arith.mulf %26, %27 : vector<16x128xf32>
    %29 = vector.broadcast %10 : vector<1x128xf32> to vector<16x128xf32>
    %30 = arith.addf %28, %29 : vector<16x128xf32>
    %cst_18 = arith.constant 5.000000e-01 : f32
    %31 = vector.broadcast %cst_18 : f32 to vector<16x128xf32>
    %32 = arith.mulf %31, %30 : vector<16x128xf32>
    %cst_19 = arith.constant 0.707106769 : f32
    %33 = vector.broadcast %cst_19 : f32 to vector<16x128xf32>
    %34 = arith.mulf %30, %33 : vector<16x128xf32>
    %35 = math.erf %34 : vector<16x128xf32>
    %cst_20 = arith.constant 1.000000e+00 : f32
    %36 = vector.broadcast %cst_20 : f32 to vector<16x128xf32>
    %37 = arith.addf %36, %35 : vector<16x128xf32>
    %38 = arith.mulf %32, %37 : vector<16x128xf32>
    %c0_21 = arith.constant 0 : index
    %c0_22 = arith.constant 0 : index
    %39 = vector.load %arg7[%c0_21, %c0_22] : memref<1x128xf32, #tpu.memory_space<vmem>>, vector<1x128xf32>
    %40 = vector.broadcast %39 : vector<1x128xf32> to vector<16x128xf32>
    %41 = arith.mulf %38, %40 : vector<16x128xf32>
    %cst_23 = arith.constant dense<0.000000e+00> : vector<16xf32>
    %42 = vector.multi_reduction <add>, %41, %cst_23 [1] : vector<16x128xf32> to vector<16xf32>
    %43 = vector.shape_cast %42 : vector<16xf32> to vector<16x1xf32>
    %c0_24 = arith.constant 0 : index
    %c0_25 = arith.constant 0 : index
    %44 = vector.load %arg8[%c0_24, %c0_25] : memref<1x1xf32, #tpu.memory_space<vmem>>, vector<1x1xf32>
    %45 = vector.broadcast %44 : vector<1x1xf32> to vector<16x1xf32>
    %46 = arith.addf %43, %45 : vector<16x1xf32>
    %47 = vector.shape_cast %46 : vector<16x1xf32> to vector<2x8x1xf32>
    %48 = arith.addf %47, %1 : vector<2x8x1xf32>
    %cst_26 = arith.constant dense<0xFF800000> : vector<2x1xf32>
    %49 = vector.multi_reduction <maximumf>, %48, %cst_26 [1] : vector<2x8x1xf32> to vector<2x1xf32>
    %50 = vector.shape_cast %49 : vector<2x1xf32> to vector<2x1x1xf32>
    %51 = vector.broadcast %50 : vector<2x1x1xf32> to vector<2x8x1xf32>
    %52 = arith.subf %48, %51 : vector<2x8x1xf32>
    %53 = math.exp %52 : vector<2x8x1xf32>
    %cst_27 = arith.constant dense<0.000000e+00> : vector<2x1xf32>
    %54 = vector.multi_reduction <add>, %53, %cst_27 [1] : vector<2x8x1xf32> to vector<2x1xf32>
    %55 = vector.shape_cast %54 : vector<2x1xf32> to vector<2x1x1xf32>
    %56 = tpu.reciprocal %55 {approx = true} : vector<2x1x1xf32> -> vector<2x1x1xf32>
    %57 = vector.broadcast %56 : vector<2x1x1xf32> to vector<2x8x1xf32>
    %58 = arith.mulf %53, %57 : vector<2x8x1xf32>
    %59 = vector.broadcast %58 : vector<2x8x1xf32> to vector<2x8x128xf32>
    %60 = arith.mulf %0, %59 : vector<2x8x128xf32>
    %cst_28 = arith.constant dense<0.000000e+00> : vector<2x128xf32>
    %61 = vector.multi_reduction <add>, %60, %cst_28 [1] : vector<2x8x128xf32> to vector<2x128xf32>
    %c0_29 = arith.constant 0 : index
    %c0_30 = arith.constant 0 : index
    %62 = vector.load %arg9[%c0_29, %c0_30] : memref<1x128xf32, #tpu.memory_space<vmem>>, vector<1x128xf32>
    %63 = vector.broadcast %62 : vector<1x128xf32> to vector<2x128xf32>
    %64 = arith.mulf %61, %63 : vector<2x128xf32>
    %c0_31 = arith.constant 0 : index
    %c0_32 = arith.constant 0 : index
    %65 = vector.load %arg10[%c0_31, %c0_32] : memref<1x128xf32, #tpu.memory_space<vmem>>, vector<1x128xf32>
    %66 = vector.broadcast %65 : vector<1x128xf32> to vector<2x128xf32>
    %67 = arith.addf %64, %66 : vector<2x128xf32>
    %68 = arith.truncf %67 : vector<2x128xf32> to vector<2x128xbf16>
    %c0_33 = arith.constant 0 : index
    %c0_34 = arith.constant 0 : index
    %69 = vector.load %arg11[%c0_33, %c0_34] : memref<128x32xbf16, #tpu.memory_space<vmem>>, vector<128x32xbf16>
    %cst_35 = arith.constant dense<0.000000e+00> : vector<2x32xf32>
    %70 = tpu.matmul %68, %69, %cst_35 {dimension_numbers = #tpu.dot_dimension_numbers<[1], [0], [0], [1], [0, 0, 1, 1], [], []>} : vector<2x128xbf16>, vector<128x32xbf16>, vector<2x32xf32> -> vector<2x32xf32>
    %c0_36 = arith.constant 0 : index
    %c0_37 = arith.constant 0 : index
    %71 = vector.load %arg12[%c0_36, %c0_37] : memref<1x32xf32, #tpu.memory_space<vmem>>, vector<1x32xf32>
    %72 = vector.broadcast %71 : vector<1x32xf32> to vector<2x32xf32>
    %73 = arith.addf %70, %72 : vector<2x32xf32>
    %74 = vector.shape_cast %73 : vector<2x32xf32> to vector<2x1x32xf32>
    %c0_38 = arith.constant 0 : index
    %c0_39 = arith.constant 0 : index
    %c0_40 = arith.constant 0 : index
    %75 = vector.load %arg13[%c0_38, %c0_39, %c0_40] : memref<2x1x32xf32, #tpu.memory_space<vmem>>, vector<2x1x32xf32>
    tpu.vector_store %arg13[%c0_38, %c0_39, %c0_40], %74 {strides = array<i32>} : memref<2x1x32xf32, #tpu.memory_space<vmem>>, vector<2x1x32xf32>,
    return
  }
  func.func @transform_0(%arg0: i32) -> (i32, i32, i32) {
    %c0_i32 = arith.constant 0 : i32
    %c0_i32_0 = arith.constant 0 : i32
    %c0_i32_1 = arith.constant 0 : i32
    return %arg0, %c0_i32, %c0_i32_0 : i32, i32, i32
  }
  func.func @transform_1(%arg0: i32) -> (i32, i32, i32) {
    %c0_i32 = arith.constant 0 : i32
    %c0_i32_0 = arith.constant 0 : i32
    %c0_i32_1 = arith.constant 0 : i32
    return %arg0, %c0_i32, %c0_i32_0 : i32, i32, i32
  }
  func.func @transform_2(%arg0: i32) -> (i32, i32) {
    %c0_i32 = arith.constant 0 : i32
    %c0_i32_0 = arith.constant 0 : i32
    %c0_i32_1 = arith.constant 0 : i32
    return %c0_i32, %c0_i32_0 : i32, i32
  }
  func.func @transform_3(%arg0: i32) -> (i32, i32) {
    %c0_i32 = arith.constant 0 : i32
    %c0_i32_0 = arith.constant 0 : i32
    %c0_i32_1 = arith.constant 0 : i32
    return %c0_i32, %c0_i32_0 : i32, i32
  }
  func.func @transform_4(%arg0: i32) -> (i32, i32) {
    %c0_i32 = arith.constant 0 : i32
    %c0_i32_0 = arith.constant 0 : i32
    %c0_i32_1 = arith.constant 0 : i32
    return %c0_i32, %c0_i32_0 : i32, i32
  }
  func.func @transform_5(%arg0: i32) -> (i32, i32) {
    %c0_i32 = arith.constant 0 : i32
    %c0_i32_0 = arith.constant 0 : i32
    %c0_i32_1 = arith.constant 0 : i32
    return %c0_i32, %c0_i32_0 : i32, i32
  }
  func.func @transform_6(%arg0: i32) -> (i32, i32) {
    %c0_i32 = arith.constant 0 : i32
    %c0_i32_0 = arith.constant 0 : i32
    %c0_i32_1 = arith.constant 0 : i32
    return %c0_i32, %c0_i32_0 : i32, i32
  }
  func.func @transform_7(%arg0: i32) -> (i32, i32) {
    %c0_i32 = arith.constant 0 : i32
    %c0_i32_0 = arith.constant 0 : i32
    %c0_i32_1 = arith.constant 0 : i32
    return %c0_i32, %c0_i32_0 : i32, i32
  }
  func.func @transform_8(%arg0: i32) -> (i32, i32) {
    %c0_i32 = arith.constant 0 : i32
    %c0_i32_0 = arith.constant 0 : i32
    %c0_i32_1 = arith.constant 0 : i32
    return %c0_i32, %c0_i32_0 : i32, i32
  }
  func.func @transform_9(%arg0: i32) -> (i32, i32) {
    %c0_i32 = arith.constant 0 : i32
    %c0_i32_0 = arith.constant 0 : i32
    %c0_i32_1 = arith.constant 0 : i32
    return %c0_i32, %c0_i32_0 : i32, i32
  }
  func.func @transform_10(%arg0: i32) -> (i32, i32) {
    %c0_i32 = arith.constant 0 : i32
    %c0_i32_0 = arith.constant 0 : i32
    %c0_i32_1 = arith.constant 0 : i32
    return %c0_i32, %c0_i32_0 : i32, i32
  }
  func.func @transform_11(%arg0: i32) -> (i32, i32) {
    %c0_i32 = arith.constant 0 : i32
    %c0_i32_0 = arith.constant 0 : i32
    %c0_i32_1 = arith.constant 0 : i32
    return %c0_i32, %c0_i32_0 : i32, i32
  }
  func.func @transform_12(%arg0: i32) -> (i32, i32, i32) {
    %c0_i32 = arith.constant 0 : i32
    %c0_i32_0 = arith.constant 0 : i32
    %c0_i32_1 = arith.constant 0 : i32
    return %arg0, %c0_i32, %c0_i32_0 : i32, i32, i32
  }
}

module attributes {stable_mosaic.version = 11 : i64} {
  func.func @_layer_kernel(%arg0: i32, %arg1: memref<2x8x128xf32, #tpu.memory_space<vmem>>, %arg2: memref<2x1x8xf32, #tpu.memory_space<vmem>>, %arg3: memref<128x384xbf16, #tpu.memory_space<vmem>>, %arg4: memref<1x384xf32, #tpu.memory_space<vmem>>, %arg5: memref<128x128xbf16, #tpu.memory_space<vmem>>, %arg6: memref<1x128xf32, #tpu.memory_space<vmem>>, %arg7: memref<1x128xf32, #tpu.memory_space<vmem>>, %arg8: memref<1x128xf32, #tpu.memory_space<vmem>>, %arg9: memref<128x256xbf16, #tpu.memory_space<vmem>>, %arg10: memref<1x256xf32, #tpu.memory_space<vmem>>, %arg11: memref<256x128xbf16, #tpu.memory_space<vmem>>, %arg12: memref<1x128xf32, #tpu.memory_space<vmem>>, %arg13: memref<1x128xf32, #tpu.memory_space<vmem>>, %arg14: memref<1x128xf32, #tpu.memory_space<vmem>>, %arg15: memref<2x8x128xf32, #tpu.memory_space<vmem>>) attributes {dimension_semantics = [#tpu.dimension_semantics<parallel>], iteration_bounds = array<i64: 1>, scalar_prefetch = 0 : i64, scratch_operands = 0 : i64, tpu.core_type = #tpu.core_type<tc>, window_params = [{transform_indices = @transform_0, window_bounds = array<i64: 2, 8, 128>}, {transform_indices = @transform_1, window_bounds = array<i64: 2, 1, 8>}, {pipeline_mode = #tpu.pipeline_mode<synchronous>, transform_indices = @transform_2, window_bounds = array<i64: 128, 384>}, {pipeline_mode = #tpu.pipeline_mode<synchronous>, transform_indices = @transform_3, window_bounds = array<i64: 1, 384>}, {pipeline_mode = #tpu.pipeline_mode<synchronous>, transform_indices = @transform_4, window_bounds = array<i64: 128, 128>}, {pipeline_mode = #tpu.pipeline_mode<synchronous>, transform_indices = @transform_5, window_bounds = array<i64: 1, 128>}, {pipeline_mode = #tpu.pipeline_mode<synchronous>, transform_indices = @transform_6, window_bounds = array<i64: 1, 128>}, {pipeline_mode = #tpu.pipeline_mode<synchronous>, transform_indices = @transform_7, window_bounds = array<i64: 1, 128>}, {pipeline_mode = #tpu.pipeline_mode<synchronous>, transform_indices = @transform_8, window_bounds = array<i64: 128, 256>}, {pipeline_mode = #tpu.pipeline_mode<synchronous>, transform_indices = @transform_9, window_bounds = array<i64: 1, 256>}, {pipeline_mode = #tpu.pipeline_mode<synchronous>, transform_indices = @transform_10, window_bounds = array<i64: 256, 128>}, {pipeline_mode = #tpu.pipeline_mode<synchronous>, transform_indices = @transform_11, window_bounds = array<i64: 1, 128>}, {pipeline_mode = #tpu.pipeline_mode<synchronous>, transform_indices = @transform_12, window_bounds = array<i64: 1, 128>}, {pipeline_mode = #tpu.pipeline_mode<synchronous>, transform_indices = @transform_13, window_bounds = array<i64: 1, 128>}, {transform_indices = @transform_14, window_bounds = array<i64: 2, 8, 128>}]} {
    %c0 = arith.constant 0 : index
    %c0_0 = arith.constant 0 : index
    %c0_1 = arith.constant 0 : index
    %0 = vector.load %arg1[%c0, %c0_0, %c0_1] : memref<2x8x128xf32, #tpu.memory_space<vmem>>, vector<2x8x128xf32>
    %1 = vector.shape_cast %0 : vector<2x8x128xf32> to vector<16x128xf32>
    %c0_2 = arith.constant 0 : index
    %c0_3 = arith.constant 0 : index
    %c0_4 = arith.constant 0 : index
    %2 = vector.load %arg2[%c0_2, %c0_3, %c0_4] : memref<2x1x8xf32, #tpu.memory_space<vmem>>, vector<2x1x8xf32>
    %3 = arith.truncf %1 : vector<16x128xf32> to vector<16x128xbf16>
    %c0_5 = arith.constant 0 : index
    %c0_6 = arith.constant 0 : index
    %4 = vector.load %arg3[%c0_5, %c0_6] : memref<128x384xbf16, #tpu.memory_space<vmem>>, vector<128x384xbf16>
    %cst = arith.constant dense<0.000000e+00> : vector<16x384xf32>
    %5 = tpu.matmul %3, %4, %cst {dimension_numbers = #tpu.dot_dimension_numbers<[1], [0], [0], [1], [0, 0, 1, 1], [], []>} : vector<16x128xbf16>, vector<128x384xbf16>, vector<16x384xf32> -> vector<16x384xf32>
    %c0_7 = arith.constant 0 : index
    %c0_8 = arith.constant 0 : index
    %6 = vector.load %arg4[%c0_7, %c0_8] : memref<1x384xf32, #tpu.memory_space<vmem>>, vector<1x384xf32>
    %7 = vector.broadcast %6 : vector<1x384xf32> to vector<16x384xf32>
    %8 = arith.addf %5, %7 : vector<16x384xf32>
    %9 = vector.shape_cast %8 : vector<16x384xf32> to vector<2x8x384xf32>
    %10 = vector.extract_strided_slice %9 {offsets = [0, 0, 0], sizes = [2, 8, 32], strides = [1, 1, 1]} : vector<2x8x384xf32> to vector<2x8x32xf32>
    %11 = arith.truncf %10 : vector<2x8x32xf32> to vector<2x8x32xbf16>
    %12 = vector.extract_strided_slice %9 {offsets = [0, 0, 128], sizes = [2, 8, 32], strides = [1, 1, 1]} : vector<2x8x384xf32> to vector<2x8x32xf32>
    %13 = arith.truncf %12 : vector<2x8x32xf32> to vector<2x8x32xbf16>
    %14 = vector.extract_strided_slice %9 {offsets = [0, 0, 256], sizes = [2, 8, 32], strides = [1, 1, 1]} : vector<2x8x384xf32> to vector<2x8x32xf32>
    %15 = arith.truncf %14 : vector<2x8x32xf32> to vector<2x8x32xbf16>
    "tpu.trace_start"() <{level = 10 : i32, message = "bqd,bkd->bqk"}> : () -> ()
    %cst_9 = arith.constant dense<0.000000e+00> : vector<2x8x8xf32>
    %16 = tpu.matmul %11, %13, %cst_9 {dimension_numbers = #tpu.dot_dimension_numbers<[2], [2], [1], [1], [0, 0, 0, 1, 1, 1], [0], [0]>} : vector<2x8x32xbf16>, vector<2x8x32xbf16>, vector<2x8x8xf32> -> vector<2x8x8xf32>
    "tpu.trace_stop"() : () -> ()
    %17 = vector.broadcast %2 : vector<2x1x8xf32> to vector<2x8x8xf32>
    %18 = arith.addf %16, %17 : vector<2x8x8xf32>
    %cst_10 = arith.constant dense<0xFF800000> : vector<2x8xf32>
    %19 = vector.multi_reduction <maximumf>, %18, %cst_10 [2] : vector<2x8x8xf32> to vector<2x8xf32>
    %20 = vector.shape_cast %19 : vector<2x8xf32> to vector<2x8x1xf32>
    %21 = vector.broadcast %20 : vector<2x8x1xf32> to vector<2x8x8xf32>
    %22 = arith.subf %18, %21 : vector<2x8x8xf32>
    %23 = math.exp %22 : vector<2x8x8xf32>
    %cst_11 = arith.constant dense<0.000000e+00> : vector<2x8xf32>
    %24 = vector.multi_reduction <add>, %23, %cst_11 [2] : vector<2x8x8xf32> to vector<2x8xf32>
    %25 = vector.shape_cast %24 : vector<2x8xf32> to vector<2x8x1xf32>
    %26 = tpu.reciprocal %25 {approx = true} : vector<2x8x1xf32> -> vector<2x8x1xf32>
    %27 = vector.broadcast %26 : vector<2x8x1xf32> to vector<2x8x8xf32>
    %28 = arith.mulf %23, %27 : vector<2x8x8xf32>
    %29 = arith.truncf %28 : vector<2x8x8xf32> to vector<2x8x8xbf16>
    "tpu.trace_start"() <{level = 10 : i32, message = "bqk,bkd->bqd"}> : () -> ()
    %cst_12 = arith.constant dense<0.000000e+00> : vector<2x8x32xf32>
    %30 = tpu.matmul %29, %15, %cst_12 {dimension_numbers = #tpu.dot_dimension_numbers<[2], [1], [1], [2], [0, 0, 0, 1, 1, 2], [0], [0]>} : vector<2x8x8xbf16>, vector<2x8x32xbf16>, vector<2x8x32xf32> -> vector<2x8x32xf32>
    "tpu.trace_stop"() : () -> ()
    %31 = vector.extract_strided_slice %9 {offsets = [0, 0, 32], sizes = [2, 8, 32], strides = [1, 1, 1]} : vector<2x8x384xf32> to vector<2x8x32xf32>
    %32 = arith.truncf %31 : vector<2x8x32xf32> to vector<2x8x32xbf16>
    %33 = vector.extract_strided_slice %9 {offsets = [0, 0, 160], sizes = [2, 8, 32], strides = [1, 1, 1]} : vector<2x8x384xf32> to vector<2x8x32xf32>
    %34 = arith.truncf %33 : vector<2x8x32xf32> to vector<2x8x32xbf16>
    %35 = vector.extract_strided_slice %9 {offsets = [0, 0, 288], sizes = [2, 8, 32], strides = [1, 1, 1]} : vector<2x8x384xf32> to vector<2x8x32xf32>
    %36 = arith.truncf %35 : vector<2x8x32xf32> to vector<2x8x32xbf16>
    "tpu.trace_start"() <{level = 10 : i32, message = "bqd,bkd->bqk"}> : () -> ()
    %cst_13 = arith.constant dense<0.000000e+00> : vector<2x8x8xf32>
    %37 = tpu.matmul %32, %34, %cst_13 {dimension_numbers = #tpu.dot_dimension_numbers<[2], [2], [1], [1], [0, 0, 0, 1, 1, 1], [0], [0]>} : vector<2x8x32xbf16>, vector<2x8x32xbf16>, vector<2x8x8xf32> -> vector<2x8x8xf32>
    "tpu.trace_stop"() : () -> ()
    %38 = vector.broadcast %2 : vector<2x1x8xf32> to vector<2x8x8xf32>
    %39 = arith.addf %37, %38 : vector<2x8x8xf32>
    %cst_14 = arith.constant dense<0xFF800000> : vector<2x8xf32>
    %40 = vector.multi_reduction <maximumf>, %39, %cst_14 [2] : vector<2x8x8xf32> to vector<2x8xf32>
    %41 = vector.shape_cast %40 : vector<2x8xf32> to vector<2x8x1xf32>
    %42 = vector.broadcast %41 : vector<2x8x1xf32> to vector<2x8x8xf32>
    %43 = arith.subf %39, %42 : vector<2x8x8xf32>
    %44 = math.exp %43 : vector<2x8x8xf32>
    %cst_15 = arith.constant dense<0.000000e+00> : vector<2x8xf32>
    %45 = vector.multi_reduction <add>, %44, %cst_15 [2] : vector<2x8x8xf32> to vector<2x8xf32>
    %46 = vector.shape_cast %45 : vector<2x8xf32> to vector<2x8x1xf32>
    %47 = tpu.reciprocal %46 {approx = true} : vector<2x8x1xf32> -> vector<2x8x1xf32>
    %48 = vector.broadcast %47 : vector<2x8x1xf32> to vector<2x8x8xf32>
    %49 = arith.mulf %44, %48 : vector<2x8x8xf32>
    %50 = arith.truncf %49 : vector<2x8x8xf32> to vector<2x8x8xbf16>
    "tpu.trace_start"() <{level = 10 : i32, message = "bqk,bkd->bqd"}> : () -> ()
    %cst_16 = arith.constant dense<0.000000e+00> : vector<2x8x32xf32>
    %51 = tpu.matmul %50, %36, %cst_16 {dimension_numbers = #tpu.dot_dimension_numbers<[2], [1], [1], [2], [0, 0, 0, 1, 1, 2], [0], [0]>} : vector<2x8x8xbf16>, vector<2x8x32xbf16>, vector<2x8x32xf32> -> vector<2x8x32xf32>
    "tpu.trace_stop"() : () -> ()
    %52 = vector.extract_strided_slice %9 {offsets = [0, 0, 64], sizes = [2, 8, 32], strides = [1, 1, 1]} : vector<2x8x384xf32> to vector<2x8x32xf32>
    %53 = arith.truncf %52 : vector<2x8x32xf32> to vector<2x8x32xbf16>
    %54 = vector.extract_strided_slice %9 {offsets = [0, 0, 192], sizes = [2, 8, 32], strides = [1, 1, 1]} : vector<2x8x384xf32> to vector<2x8x32xf32>
    %55 = arith.truncf %54 : vector<2x8x32xf32> to vector<2x8x32xbf16>
    %56 = vector.extract_strided_slice %9 {offsets = [0, 0, 320], sizes = [2, 8, 32], strides = [1, 1, 1]} : vector<2x8x384xf32> to vector<2x8x32xf32>
    %57 = arith.truncf %56 : vector<2x8x32xf32> to vector<2x8x32xbf16>
    "tpu.trace_start"() <{level = 10 : i32, message = "bqd,bkd->bqk"}> : () -> ()
    %cst_17 = arith.constant dense<0.000000e+00> : vector<2x8x8xf32>
    %58 = tpu.matmul %53, %55, %cst_17 {dimension_numbers = #tpu.dot_dimension_numbers<[2], [2], [1], [1], [0, 0, 0, 1, 1, 1], [0], [0]>} : vector<2x8x32xbf16>, vector<2x8x32xbf16>, vector<2x8x8xf32> -> vector<2x8x8xf32>
    "tpu.trace_stop"() : () -> ()
    %59 = vector.broadcast %2 : vector<2x1x8xf32> to vector<2x8x8xf32>
    %60 = arith.addf %58, %59 : vector<2x8x8xf32>
    %cst_18 = arith.constant dense<0xFF800000> : vector<2x8xf32>
    %61 = vector.multi_reduction <maximumf>, %60, %cst_18 [2] : vector<2x8x8xf32> to vector<2x8xf32>
    %62 = vector.shape_cast %61 : vector<2x8xf32> to vector<2x8x1xf32>
    %63 = vector.broadcast %62 : vector<2x8x1xf32> to vector<2x8x8xf32>
    %64 = arith.subf %60, %63 : vector<2x8x8xf32>
    %65 = math.exp %64 : vector<2x8x8xf32>
    %cst_19 = arith.constant dense<0.000000e+00> : vector<2x8xf32>
    %66 = vector.multi_reduction <add>, %65, %cst_19 [2] : vector<2x8x8xf32> to vector<2x8xf32>
    %67 = vector.shape_cast %66 : vector<2x8xf32> to vector<2x8x1xf32>
    %68 = tpu.reciprocal %67 {approx = true} : vector<2x8x1xf32> -> vector<2x8x1xf32>
    %69 = vector.broadcast %68 : vector<2x8x1xf32> to vector<2x8x8xf32>
    %70 = arith.mulf %65, %69 : vector<2x8x8xf32>
    %71 = arith.truncf %70 : vector<2x8x8xf32> to vector<2x8x8xbf16>
    "tpu.trace_start"() <{level = 10 : i32, message = "bqk,bkd->bqd"}> : () -> ()
    %cst_20 = arith.constant dense<0.000000e+00> : vector<2x8x32xf32>
    %72 = tpu.matmul %71, %57, %cst_20 {dimension_numbers = #tpu.dot_dimension_numbers<[2], [1], [1], [2], [0, 0, 0, 1, 1, 2], [0], [0]>} : vector<2x8x8xbf16>, vector<2x8x32xbf16>, vector<2x8x32xf32> -> vector<2x8x32xf32>
    "tpu.trace_stop"() : () -> ()
    %73 = vector.extract_strided_slice %9 {offsets = [0, 0, 96], sizes = [2, 8, 32], strides = [1, 1, 1]} : vector<2x8x384xf32> to vector<2x8x32xf32>
    %74 = arith.truncf %73 : vector<2x8x32xf32> to vector<2x8x32xbf16>
    %75 = vector.extract_strided_slice %9 {offsets = [0, 0, 224], sizes = [2, 8, 32], strides = [1, 1, 1]} : vector<2x8x384xf32> to vector<2x8x32xf32>
    %76 = arith.truncf %75 : vector<2x8x32xf32> to vector<2x8x32xbf16>
    %77 = vector.extract_strided_slice %9 {offsets = [0, 0, 352], sizes = [2, 8, 32], strides = [1, 1, 1]} : vector<2x8x384xf32> to vector<2x8x32xf32>
    %78 = arith.truncf %77 : vector<2x8x32xf32> to vector<2x8x32xbf16>
    "tpu.trace_start"() <{level = 10 : i32, message = "bqd,bkd->bqk"}> : () -> ()
    %cst_21 = arith.constant dense<0.000000e+00> : vector<2x8x8xf32>
    %79 = tpu.matmul %74, %76, %cst_21 {dimension_numbers = #tpu.dot_dimension_numbers<[2], [2], [1], [1], [0, 0, 0, 1, 1, 1], [0], [0]>} : vector<2x8x32xbf16>, vector<2x8x32xbf16>, vector<2x8x8xf32> -> vector<2x8x8xf32>
    "tpu.trace_stop"() : () -> ()
    %80 = vector.broadcast %2 : vector<2x1x8xf32> to vector<2x8x8xf32>
    %81 = arith.addf %79, %80 : vector<2x8x8xf32>
    %cst_22 = arith.constant dense<0xFF800000> : vector<2x8xf32>
    %82 = vector.multi_reduction <maximumf>, %81, %cst_22 [2] : vector<2x8x8xf32> to vector<2x8xf32>
    %83 = vector.shape_cast %82 : vector<2x8xf32> to vector<2x8x1xf32>
    %84 = vector.broadcast %83 : vector<2x8x1xf32> to vector<2x8x8xf32>
    %85 = arith.subf %81, %84 : vector<2x8x8xf32>
    %86 = math.exp %85 : vector<2x8x8xf32>
    %cst_23 = arith.constant dense<0.000000e+00> : vector<2x8xf32>
    %87 = vector.multi_reduction <add>, %86, %cst_23 [2] : vector<2x8x8xf32> to vector<2x8xf32>
    %88 = vector.shape_cast %87 : vector<2x8xf32> to vector<2x8x1xf32>
    %89 = tpu.reciprocal %88 {approx = true} : vector<2x8x1xf32> -> vector<2x8x1xf32>
    %90 = vector.broadcast %89 : vector<2x8x1xf32> to vector<2x8x8xf32>
    %91 = arith.mulf %86, %90 : vector<2x8x8xf32>
    %92 = arith.truncf %91 : vector<2x8x8xf32> to vector<2x8x8xbf16>
    "tpu.trace_start"() <{level = 10 : i32, message = "bqk,bkd->bqd"}> : () -> ()
    %cst_24 = arith.constant dense<0.000000e+00> : vector<2x8x32xf32>
    %93 = tpu.matmul %92, %78, %cst_24 {dimension_numbers = #tpu.dot_dimension_numbers<[2], [1], [1], [2], [0, 0, 0, 1, 1, 2], [0], [0]>} : vector<2x8x8xbf16>, vector<2x8x32xbf16>, vector<2x8x32xf32> -> vector<2x8x32xf32>
    "tpu.trace_stop"() : () -> ()
    %94 = tpu.concatenate %30, %51, %72, %93 in 2 : vector<2x8x32xf32>, vector<2x8x32xf32>, vector<2x8x32xf32>, vector<2x8x32xf32> -> vector<2x8x128xf32>
    %95 = vector.shape_cast %94 : vector<2x8x128xf32> to vector<16x128xf32>
    %96 = arith.truncf %95 : vector<16x128xf32> to vector<16x128xbf16>
    %c0_25 = arith.constant 0 : index
    %c0_26 = arith.constant 0 : index
    %97 = vector.load %arg5[%c0_25, %c0_26] : memref<128x128xbf16, #tpu.memory_space<vmem>>, vector<128x128xbf16>
    %cst_27 = arith.constant dense<0.000000e+00> : vector<16x128xf32>
    %98 = tpu.matmul %96, %97, %cst_27 {dimension_numbers = #tpu.dot_dimension_numbers<[1], [0], [0], [1], [0, 0, 1, 1], [], []>} : vector<16x128xbf16>, vector<128x128xbf16>, vector<16x128xf32> -> vector<16x128xf32>
    %c0_28 = arith.constant 0 : index
    %c0_29 = arith.constant 0 : index
    %99 = vector.load %arg6[%c0_28, %c0_29] : memref<1x128xf32, #tpu.memory_space<vmem>>, vector<1x128xf32>
    %100 = vector.broadcast %99 : vector<1x128xf32> to vector<16x128xf32>
    %101 = arith.addf %98, %100 : vector<16x128xf32>
    %102 = arith.addf %1, %101 : vector<16x128xf32>
    %c0_30 = arith.constant 0 : index
    %c0_31 = arith.constant 0 : index
    %103 = vector.load %arg7[%c0_30, %c0_31] : memref<1x128xf32, #tpu.memory_space<vmem>>, vector<1x128xf32>
    %c0_32 = arith.constant 0 : index
    %c0_33 = arith.constant 0 : index
    %104 = vector.load %arg8[%c0_32, %c0_33] : memref<1x128xf32, #tpu.memory_space<vmem>>, vector<1x128xf32>
    %cst_34 = arith.constant dense<0.000000e+00> : vector<16xf32>
    %105 = vector.multi_reduction <add>, %102, %cst_34 [1] : vector<16x128xf32> to vector<16xf32>
    %106 = vector.shape_cast %105 : vector<16xf32> to vector<16x1xf32>
    %cst_35 = arith.constant 1.280000e+02 : f32
    %107 = vector.broadcast %cst_35 : f32 to vector<16x1xf32>
    %108 = arith.divf %106, %107 : vector<16x1xf32>
    %109 = vector.broadcast %108 : vector<16x1xf32> to vector<16x128xf32>
    %110 = arith.subf %102, %109 : vector<16x128xf32>
    %111 = arith.mulf %110, %110 : vector<16x128xf32>
    %cst_36 = arith.constant dense<0.000000e+00> : vector<16xf32>
    %112 = vector.multi_reduction <add>, %111, %cst_36 [1] : vector<16x128xf32> to vector<16xf32>
    %113 = vector.shape_cast %112 : vector<16xf32> to vector<16x1xf32>
    %cst_37 = arith.constant 1.280000e+02 : f32
    %114 = vector.broadcast %cst_37 : f32 to vector<16x1xf32>
    %115 = arith.divf %113, %114 : vector<16x1xf32>
    %cst_38 = arith.constant 9.99999974E-6 : f32
    %116 = vector.broadcast %cst_38 : f32 to vector<16x1xf32>
    %117 = arith.addf %115, %116 : vector<16x1xf32>
    %118 = math.rsqrt %117 : vector<16x1xf32>
    %119 = vector.broadcast %118 : vector<16x1xf32> to vector<16x128xf32>
    %120 = arith.mulf %110, %119 : vector<16x128xf32>
    %121 = vector.broadcast %103 : vector<1x128xf32> to vector<16x128xf32>
    %122 = arith.mulf %120, %121 : vector<16x128xf32>
    %123 = vector.broadcast %104 : vector<1x128xf32> to vector<16x128xf32>
    %124 = arith.addf %122, %123 : vector<16x128xf32>
    %125 = arith.truncf %124 : vector<16x128xf32> to vector<16x128xbf16>
    %c0_39 = arith.constant 0 : index
    %c0_40 = arith.constant 0 : index
    %126 = vector.load %arg9[%c0_39, %c0_40] : memref<128x256xbf16, #tpu.memory_space<vmem>>, vector<128x256xbf16>
    %cst_41 = arith.constant dense<0.000000e+00> : vector<16x256xf32>
    %127 = tpu.matmul %125, %126, %cst_41 {dimension_numbers = #tpu.dot_dimension_numbers<[1], [0], [0], [1], [0, 0, 1, 1], [], []>} : vector<16x128xbf16>, vector<128x256xbf16>, vector<16x256xf32> -> vector<16x256xf32>
    %c0_42 = arith.constant 0 : index
    %c0_43 = arith.constant 0 : index
    %128 = vector.load %arg10[%c0_42, %c0_43] : memref<1x256xf32, #tpu.memory_space<vmem>>, vector<1x256xf32>
    %129 = vector.broadcast %128 : vector<1x256xf32> to vector<16x256xf32>
    %130 = arith.addf %127, %129 : vector<16x256xf32>
    %cst_44 = arith.constant 5.000000e-01 : f32
    %131 = vector.broadcast %cst_44 : f32 to vector<16x256xf32>
    %132 = arith.mulf %131, %130 : vector<16x256xf32>
    %cst_45 = arith.constant 4.471500e-02 : f32
    %133 = vector.broadcast %cst_45 : f32 to vector<16x256xf32>
    %134 = arith.mulf %133, %130 : vector<16x256xf32>
    %135 = arith.mulf %134, %130 : vector<16x256xf32>
    %136 = arith.mulf %135, %130 : vector<16x256xf32>
    %137 = arith.addf %130, %136 : vector<16x256xf32>
    %cst_46 = arith.constant 0.797884583 : f32
    %138 = vector.broadcast %cst_46 : f32 to vector<16x256xf32>
    %139 = arith.mulf %138, %137 : vector<16x256xf32>
    %140 = math.tanh %139 : vector<16x256xf32>
    %cst_47 = arith.constant 1.000000e+00 : f32
    %141 = vector.broadcast %cst_47 : f32 to vector<16x256xf32>
    %142 = arith.addf %141, %140 : vector<16x256xf32>
    %143 = arith.mulf %132, %142 : vector<16x256xf32>
    %144 = arith.truncf %143 : vector<16x256xf32> to vector<16x256xbf16>
    %c0_48 = arith.constant 0 : index
    %c0_49 = arith.constant 0 : index
    %145 = vector.load %arg11[%c0_48, %c0_49] : memref<256x128xbf16, #tpu.memory_space<vmem>>, vector<256x128xbf16>
    %cst_50 = arith.constant dense<0.000000e+00> : vector<16x128xf32>
    %146 = tpu.matmul %144, %145, %cst_50 {dimension_numbers = #tpu.dot_dimension_numbers<[1], [0], [0], [1], [0, 0, 1, 1], [], []>} : vector<16x256xbf16>, vector<256x128xbf16>, vector<16x128xf32> -> vector<16x128xf32>
    %c0_51 = arith.constant 0 : index
    %c0_52 = arith.constant 0 : index
    %147 = vector.load %arg12[%c0_51, %c0_52] : memref<1x128xf32, #tpu.memory_space<vmem>>, vector<1x128xf32>
    %148 = vector.broadcast %147 : vector<1x128xf32> to vector<16x128xf32>
    %149 = arith.addf %146, %148 : vector<16x128xf32>
    %150 = arith.addf %124, %149 : vector<16x128xf32>
    %c0_53 = arith.constant 0 : index
    %c0_54 = arith.constant 0 : index
    %151 = vector.load %arg13[%c0_53, %c0_54] : memref<1x128xf32, #tpu.memory_space<vmem>>, vector<1x128xf32>
    %c0_55 = arith.constant 0 : index
    %c0_56 = arith.constant 0 : index
    %152 = vector.load %arg14[%c0_55, %c0_56] : memref<1x128xf32, #tpu.memory_space<vmem>>, vector<1x128xf32>
    %cst_57 = arith.constant dense<0.000000e+00> : vector<16xf32>
    %153 = vector.multi_reduction <add>, %150, %cst_57 [1] : vector<16x128xf32> to vector<16xf32>
    %154 = vector.shape_cast %153 : vector<16xf32> to vector<16x1xf32>
    %cst_58 = arith.constant 1.280000e+02 : f32
    %155 = vector.broadcast %cst_58 : f32 to vector<16x1xf32>
    %156 = arith.divf %154, %155 : vector<16x1xf32>
    %157 = vector.broadcast %156 : vector<16x1xf32> to vector<16x128xf32>
    %158 = arith.subf %150, %157 : vector<16x128xf32>
    %159 = arith.mulf %158, %158 : vector<16x128xf32>
    %cst_59 = arith.constant dense<0.000000e+00> : vector<16xf32>
    %160 = vector.multi_reduction <add>, %159, %cst_59 [1] : vector<16x128xf32> to vector<16xf32>
    %161 = vector.shape_cast %160 : vector<16xf32> to vector<16x1xf32>
    %cst_60 = arith.constant 1.280000e+02 : f32
    %162 = vector.broadcast %cst_60 : f32 to vector<16x1xf32>
    %163 = arith.divf %161, %162 : vector<16x1xf32>
    %cst_61 = arith.constant 9.99999974E-6 : f32
    %164 = vector.broadcast %cst_61 : f32 to vector<16x1xf32>
    %165 = arith.addf %163, %164 : vector<16x1xf32>
    %166 = math.rsqrt %165 : vector<16x1xf32>
    %167 = vector.broadcast %166 : vector<16x1xf32> to vector<16x128xf32>
    %168 = arith.mulf %158, %167 : vector<16x128xf32>
    %169 = vector.broadcast %151 : vector<1x128xf32> to vector<16x128xf32>
    %170 = arith.mulf %168, %169 : vector<16x128xf32>
    %171 = vector.broadcast %152 : vector<1x128xf32> to vector<16x128xf32>
    %172 = arith.addf %170, %171 : vector<16x128xf32>
    %173 = vector.shape_cast %172 : vector<16x128xf32> to vector<2x8x128xf32>
    %c0_62 = arith.constant 0 : index
    %c0_63 = arith.constant 0 : index
    %c0_64 = arith.constant 0 : index
    %174 = vector.load %arg15[%c0_62, %c0_63, %c0_64] : memref<2x8x128xf32, #tpu.memory_space<vmem>>, vector<2x8x128xf32>
    tpu.vector_store %arg15[%c0_62, %c0_63, %c0_64], %173 {strides = array<i32>} : memref<2x8x128xf32, #tpu.memory_space<vmem>>, vector<2x8x128xf32>,
    return
  }
  func.func @transform_0(%arg0: i32) -> (i32, i32, i32) {
    %c0_i32 = arith.constant 0 : i32
    %c0_i32_0 = arith.constant 0 : i32
    %c0_i32_1 = arith.constant 0 : i32
    return %arg0, %c0_i32, %c0_i32_0 : i32, i32, i32
  }
  func.func @transform_1(%arg0: i32) -> (i32, i32, i32) {
    %c0_i32 = arith.constant 0 : i32
    %c0_i32_0 = arith.constant 0 : i32
    %c0_i32_1 = arith.constant 0 : i32
    return %arg0, %c0_i32, %c0_i32_0 : i32, i32, i32
  }
  func.func @transform_2(%arg0: i32) -> (i32, i32) {
    %c0_i32 = arith.constant 0 : i32
    %c0_i32_0 = arith.constant 0 : i32
    %c0_i32_1 = arith.constant 0 : i32
    return %c0_i32, %c0_i32_0 : i32, i32
  }
  func.func @transform_3(%arg0: i32) -> (i32, i32) {
    %c0_i32 = arith.constant 0 : i32
    %c0_i32_0 = arith.constant 0 : i32
    %c0_i32_1 = arith.constant 0 : i32
    return %c0_i32, %c0_i32_0 : i32, i32
  }
  func.func @transform_4(%arg0: i32) -> (i32, i32) {
    %c0_i32 = arith.constant 0 : i32
    %c0_i32_0 = arith.constant 0 : i32
    %c0_i32_1 = arith.constant 0 : i32
    return %c0_i32, %c0_i32_0 : i32, i32
  }
  func.func @transform_5(%arg0: i32) -> (i32, i32) {
    %c0_i32 = arith.constant 0 : i32
    %c0_i32_0 = arith.constant 0 : i32
    %c0_i32_1 = arith.constant 0 : i32
    return %c0_i32, %c0_i32_0 : i32, i32
  }
  func.func @transform_6(%arg0: i32) -> (i32, i32) {
    %c0_i32 = arith.constant 0 : i32
    %c0_i32_0 = arith.constant 0 : i32
    %c0_i32_1 = arith.constant 0 : i32
    return %c0_i32, %c0_i32_0 : i32, i32
  }
  func.func @transform_7(%arg0: i32) -> (i32, i32) {
    %c0_i32 = arith.constant 0 : i32
    %c0_i32_0 = arith.constant 0 : i32
    %c0_i32_1 = arith.constant 0 : i32
    return %c0_i32, %c0_i32_0 : i32, i32
  }
  func.func @transform_8(%arg0: i32) -> (i32, i32) {
    %c0_i32 = arith.constant 0 : i32
    %c0_i32_0 = arith.constant 0 : i32
    %c0_i32_1 = arith.constant 0 : i32
    return %c0_i32, %c0_i32_0 : i32, i32
  }
  func.func @transform_9(%arg0: i32) -> (i32, i32) {
    %c0_i32 = arith.constant 0 : i32
    %c0_i32_0 = arith.constant 0 : i32
    %c0_i32_1 = arith.constant 0 : i32
    return %c0_i32, %c0_i32_0 : i32, i32
  }
  func.func @transform_10(%arg0: i32) -> (i32, i32) {
    %c0_i32 = arith.constant 0 : i32
    %c0_i32_0 = arith.constant 0 : i32
    %c0_i32_1 = arith.constant 0 : i32
    return %c0_i32, %c0_i32_0 : i32, i32
  }
  func.func @transform_11(%arg0: i32) -> (i32, i32) {
    %c0_i32 = arith.constant 0 : i32
    %c0_i32_0 = arith.constant 0 : i32
    %c0_i32_1 = arith.constant 0 : i32
    return %c0_i32, %c0_i32_0 : i32, i32
  }
  func.func @transform_12(%arg0: i32) -> (i32, i32) {
    %c0_i32 = arith.constant 0 : i32
    %c0_i32_0 = arith.constant 0 : i32
    %c0_i32_1 = arith.constant 0 : i32
    return %c0_i32, %c0_i32_0 : i32, i32
  }
  func.func @transform_13(%arg0: i32) -> (i32, i32) {
    %c0_i32 = arith.constant 0 : i32
    %c0_i32_0 = arith.constant 0 : i32
    %c0_i32_1 = arith.constant 0 : i32
    return %c0_i32, %c0_i32_0 : i32, i32
  }
  func.func @transform_14(%arg0: i32) -> (i32, i32, i32) {
    %c0_i32 = arith.constant 0 : i32
    %c0_i32_0 = arith.constant 0 : i32
    %c0_i32_1 = arith.constant 0 : i32
    return %arg0, %c0_i32, %c0_i32_0 : i32, i32, i32
  }
}

module attributes {stable_mosaic.version = 11 : i64} {
  func.func @_proj_mask_ln_kernel(%arg0: i32, %arg1: memref<16x128xf32, #tpu.memory_space<vmem>>, %arg2: memref<128x512xbf16, #tpu.memory_space<vmem>>, %arg3: memref<1x512xf32, #tpu.memory_space<vmem>>, %arg4: memref<512x128xbf16, #tpu.memory_space<vmem>>, %arg5: memref<1x512xf32, #tpu.memory_space<vmem>>, %arg6: memref<1x128xf32, #tpu.memory_space<vmem>>, %arg7: memref<1x1xf32, #tpu.memory_space<vmem>>, %arg8: memref<1x128xf32, #tpu.memory_space<vmem>>, %arg9: memref<1x128xf32, #tpu.memory_space<vmem>>, %arg10: memref<16x128xf32, #tpu.memory_space<vmem>>, %arg11: memref<16x1xf32, #tpu.memory_space<vmem>>) attributes {dimension_semantics = [#tpu.dimension_semantics<parallel>], iteration_bounds = array<i64: 1>, scalar_prefetch = 0 : i64, scratch_operands = 0 : i64, tpu.core_type = #tpu.core_type<tc>, window_params = [{transform_indices = @transform_0, window_bounds = array<i64: 16, 128>}, {pipeline_mode = #tpu.pipeline_mode<synchronous>, transform_indices = @transform_1, window_bounds = array<i64: 128, 512>}, {pipeline_mode = #tpu.pipeline_mode<synchronous>, transform_indices = @transform_2, window_bounds = array<i64: 1, 512>}, {pipeline_mode = #tpu.pipeline_mode<synchronous>, transform_indices = @transform_3, window_bounds = array<i64: 512, 128>}, {pipeline_mode = #tpu.pipeline_mode<synchronous>, transform_indices = @transform_4, window_bounds = array<i64: 1, 512>}, {pipeline_mode = #tpu.pipeline_mode<synchronous>, transform_indices = @transform_5, window_bounds = array<i64: 1, 128>}, {pipeline_mode = #tpu.pipeline_mode<synchronous>, transform_indices = @transform_6, window_bounds = array<i64: 1, 1>}, {pipeline_mode = #tpu.pipeline_mode<synchronous>, transform_indices = @transform_7, window_bounds = array<i64: 1, 128>}, {pipeline_mode = #tpu.pipeline_mode<synchronous>, transform_indices = @transform_8, window_bounds = array<i64: 1, 128>}, {transform_indices = @transform_9, window_bounds = array<i64: 16, 128>}, {transform_indices = @transform_10, window_bounds = array<i64: 16, 1>}]} {
    %c0 = arith.constant 0 : index
    %c0_0 = arith.constant 0 : index
    %0 = vector.load %arg1[%c0, %c0_0] : memref<16x128xf32, #tpu.memory_space<vmem>>, vector<16x128xf32>
    %1 = arith.truncf %0 : vector<16x128xf32> to vector<16x128xbf16>
    %c0_1 = arith.constant 0 : index
    %c0_2 = arith.constant 0 : index
    %2 = vector.load %arg2[%c0_1, %c0_2] : memref<128x512xbf16, #tpu.memory_space<vmem>>, vector<128x512xbf16>
    %cst = arith.constant dense<0.000000e+00> : vector<16x512xf32>
    %3 = tpu.matmul %1, %2, %cst {dimension_numbers = #tpu.dot_dimension_numbers<[1], [0], [0], [1], [0, 0, 1, 1], [], []>} : vector<16x128xbf16>, vector<128x512xbf16>, vector<16x512xf32> -> vector<16x512xf32>
    %c0_3 = arith.constant 0 : index
    %c0_4 = arith.constant 0 : index
    %4 = vector.load %arg3[%c0_3, %c0_4] : memref<1x512xf32, #tpu.memory_space<vmem>>, vector<1x512xf32>
    %5 = vector.broadcast %4 : vector<1x512xf32> to vector<16x512xf32>
    %6 = arith.addf %3, %5 : vector<16x512xf32>
    %cst_5 = arith.constant 5.000000e-01 : f32
    %7 = vector.broadcast %cst_5 : f32 to vector<16x512xf32>
    %8 = arith.mulf %7, %6 : vector<16x512xf32>
    %cst_6 = arith.constant 4.471500e-02 : f32
    %9 = vector.broadcast %cst_6 : f32 to vector<16x512xf32>
    %10 = arith.mulf %9, %6 : vector<16x512xf32>
    %11 = arith.mulf %10, %6 : vector<16x512xf32>
    %12 = arith.mulf %11, %6 : vector<16x512xf32>
    %13 = arith.addf %6, %12 : vector<16x512xf32>
    %cst_7 = arith.constant 0.797884583 : f32
    %14 = vector.broadcast %cst_7 : f32 to vector<16x512xf32>
    %15 = arith.mulf %14, %13 : vector<16x512xf32>
    %16 = math.tanh %15 : vector<16x512xf32>
    %cst_8 = arith.constant 1.000000e+00 : f32
    %17 = vector.broadcast %cst_8 : f32 to vector<16x512xf32>
    %18 = arith.addf %17, %16 : vector<16x512xf32>
    %19 = arith.mulf %8, %18 : vector<16x512xf32>
    %20 = arith.truncf %19 : vector<16x512xf32> to vector<16x512xbf16>
    %c0_9 = arith.constant 0 : index
    %c0_10 = arith.constant 0 : index
    %21 = vector.load %arg4[%c0_9, %c0_10] : memref<512x128xbf16, #tpu.memory_space<vmem>>, vector<512x128xbf16>
    %cst_11 = arith.constant dense<0.000000e+00> : vector<16x128xf32>
    %22 = tpu.matmul %20, %21, %cst_11 {dimension_numbers = #tpu.dot_dimension_numbers<[1], [0], [0], [1], [0, 0, 1, 1], [], []>} : vector<16x512xbf16>, vector<512x128xbf16>, vector<16x128xf32> -> vector<16x128xf32>
    %c0_12 = arith.constant 0 : index
    %c0_13 = arith.constant 0 : index
    %23 = vector.load %arg6[%c0_12, %c0_13] : memref<1x128xf32, #tpu.memory_space<vmem>>, vector<1x128xf32>
    %24 = vector.broadcast %23 : vector<1x128xf32> to vector<16x128xf32>
    %25 = arith.addf %22, %24 : vector<16x128xf32>
    %c0_14 = arith.constant 0 : index
    %c0_15 = arith.constant 0 : index
    %26 = vector.load %arg5[%c0_14, %c0_15] : memref<1x512xf32, #tpu.memory_space<vmem>>, vector<1x512xf32>
    %27 = vector.broadcast %26 : vector<1x512xf32> to vector<16x512xf32>
    %28 = arith.mulf %19, %27 : vector<16x512xf32>
    %cst_16 = arith.constant dense<0.000000e+00> : vector<16xf32>
    %29 = vector.multi_reduction <add>, %28, %cst_16 [1] : vector<16x512xf32> to vector<16xf32>
    %30 = vector.shape_cast %29 : vector<16xf32> to vector<16x1xf32>
    %c0_17 = arith.constant 0 : index
    %c0_18 = arith.constant 0 : index
    %31 = vector.load %arg7[%c0_17, %c0_18] : memref<1x1xf32, #tpu.memory_space<vmem>>, vector<1x1xf32>
    %32 = vector.broadcast %31 : vector<1x1xf32> to vector<16x1xf32>
    %33 = arith.addf %30, %32 : vector<16x1xf32>
    %cst_19 = arith.constant -1.000000e+00 : f32
    %34 = vector.broadcast %cst_19 : f32 to vector<16x1xf32>
    %35 = arith.cmpf oeq, %33, %34 : vector<16x1xf32>
    %cst_20 = arith.constant -1.000000e+30 : f32
    %cst_21 = arith.constant 0.000000e+00 : f32
    %36 = vector.broadcast %cst_20 : f32 to vector<16x1xf32>
    %37 = vector.broadcast %cst_21 : f32 to vector<16x1xf32>
    %38 = arith.select %35, %36, %37 : vector<16x1xi1>, vector<16x1xf32>
    %c0_22 = arith.constant 0 : index
    %c0_23 = arith.constant 0 : index
    %39 = vector.load %arg11[%c0_22, %c0_23] : memref<16x1xf32, #tpu.memory_space<vmem>>, vector<16x1xf32>
    tpu.vector_store %arg11[%c0_22, %c0_23], %38 {strides = array<i32>} : memref<16x1xf32, #tpu.memory_space<vmem>>, vector<16x1xf32>,
    %cst_24 = arith.constant dense<0.000000e+00> : vector<16xf32>
    %40 = vector.multi_reduction <add>, %25, %cst_24 [1] : vector<16x128xf32> to vector<16xf32>
    %41 = vector.shape_cast %40 : vector<16xf32> to vector<16x1xf32>
    %cst_25 = arith.constant 1.280000e+02 : f32
    %42 = vector.broadcast %cst_25 : f32 to vector<16x1xf32>
    %43 = arith.divf %41, %42 : vector<16x1xf32>
    %44 = vector.broadcast %43 : vector<16x1xf32> to vector<16x128xf32>
    %45 = arith.subf %25, %44 : vector<16x128xf32>
    %46 = arith.mulf %45, %45 : vector<16x128xf32>
    %cst_26 = arith.constant dense<0.000000e+00> : vector<16xf32>
    %47 = vector.multi_reduction <add>, %46, %cst_26 [1] : vector<16x128xf32> to vector<16xf32>
    %48 = vector.shape_cast %47 : vector<16xf32> to vector<16x1xf32>
    %cst_27 = arith.constant 1.280000e+02 : f32
    %49 = vector.broadcast %cst_27 : f32 to vector<16x1xf32>
    %50 = arith.divf %48, %49 : vector<16x1xf32>
    %cst_28 = arith.constant 9.99999974E-6 : f32
    %51 = vector.broadcast %cst_28 : f32 to vector<16x1xf32>
    %52 = arith.addf %50, %51 : vector<16x1xf32>
    %53 = math.rsqrt %52 : vector<16x1xf32>
    %54 = vector.broadcast %53 : vector<16x1xf32> to vector<16x128xf32>
    %55 = arith.mulf %45, %54 : vector<16x128xf32>
    %c0_29 = arith.constant 0 : index
    %c0_30 = arith.constant 0 : index
    %56 = vector.load %arg8[%c0_29, %c0_30] : memref<1x128xf32, #tpu.memory_space<vmem>>, vector<1x128xf32>
    %57 = vector.broadcast %56 : vector<1x128xf32> to vector<16x128xf32>
    %58 = arith.mulf %55, %57 : vector<16x128xf32>
    %c0_31 = arith.constant 0 : index
    %c0_32 = arith.constant 0 : index
    %59 = vector.load %arg9[%c0_31, %c0_32] : memref<1x128xf32, #tpu.memory_space<vmem>>, vector<1x128xf32>
    %60 = vector.broadcast %59 : vector<1x128xf32> to vector<16x128xf32>
    %61 = arith.addf %58, %60 : vector<16x128xf32>
    %c0_33 = arith.constant 0 : index
    %c0_34 = arith.constant 0 : index
    %62 = vector.load %arg10[%c0_33, %c0_34] : memref<16x128xf32, #tpu.memory_space<vmem>>, vector<16x128xf32>
    tpu.vector_store %arg10[%c0_33, %c0_34], %61 {strides = array<i32>} : memref<16x128xf32, #tpu.memory_space<vmem>>, vector<16x128xf32>,
    return
  }
  func.func @transform_0(%arg0: i32) -> (i32, i32) {
    %c0_i32 = arith.constant 0 : i32
    %c0_i32_0 = arith.constant 0 : i32
    return %arg0, %c0_i32 : i32, i32
  }
  func.func @transform_1(%arg0: i32) -> (i32, i32) {
    %c0_i32 = arith.constant 0 : i32
    %c0_i32_0 = arith.constant 0 : i32
    %c0_i32_1 = arith.constant 0 : i32
    return %c0_i32, %c0_i32_0 : i32, i32
  }
  func.func @transform_2(%arg0: i32) -> (i32, i32) {
    %c0_i32 = arith.constant 0 : i32
    %c0_i32_0 = arith.constant 0 : i32
    %c0_i32_1 = arith.constant 0 : i32
    return %c0_i32, %c0_i32_0 : i32, i32
  }
  func.func @transform_3(%arg0: i32) -> (i32, i32) {
    %c0_i32 = arith.constant 0 : i32
    %c0_i32_0 = arith.constant 0 : i32
    %c0_i32_1 = arith.constant 0 : i32
    return %c0_i32, %c0_i32_0 : i32, i32
  }
  func.func @transform_4(%arg0: i32) -> (i32, i32) {
    %c0_i32 = arith.constant 0 : i32
    %c0_i32_0 = arith.constant 0 : i32
    %c0_i32_1 = arith.constant 0 : i32
    return %c0_i32, %c0_i32_0 : i32, i32
  }
  func.func @transform_5(%arg0: i32) -> (i32, i32) {
    %c0_i32 = arith.constant 0 : i32
    %c0_i32_0 = arith.constant 0 : i32
    %c0_i32_1 = arith.constant 0 : i32
    return %c0_i32, %c0_i32_0 : i32, i32
  }
  func.func @transform_6(%arg0: i32) -> (i32, i32) {
    %c0_i32 = arith.constant 0 : i32
    %c0_i32_0 = arith.constant 0 : i32
    %c0_i32_1 = arith.constant 0 : i32
    return %c0_i32, %c0_i32_0 : i32, i32
  }
  func.func @transform_7(%arg0: i32) -> (i32, i32) {
    %c0_i32 = arith.constant 0 : i32
    %c0_i32_0 = arith.constant 0 : i32
    %c0_i32_1 = arith.constant 0 : i32
    return %c0_i32, %c0_i32_0 : i32, i32
  }
  func.func @transform_8(%arg0: i32) -> (i32, i32) {
    %c0_i32 = arith.constant 0 : i32
    %c0_i32_0 = arith.constant 0 : i32
    %c0_i32_1 = arith.constant 0 : i32
    return %c0_i32, %c0_i32_0 : i32, i32
  }
  func.func @transform_9(%arg0: i32) -> (i32, i32) {
    %c0_i32 = arith.constant 0 : i32
    %c0_i32_0 = arith.constant 0 : i32
    return %arg0, %c0_i32 : i32, i32
  }
  func.func @transform_10(%arg0: i32) -> (i32, i32) {
    %c0_i32 = arith.constant 0 : i32
    %c0_i32_0 = arith.constant 0 : i32
    return %arg0, %c0_i32 : i32, i32
  }
}

module attributes {stable_mosaic.version = 11 : i64} {
  func.func @_pool_head_kernel(%arg0: i32, %arg1: memref<2x8x128xf32, #tpu.memory_space<vmem>>, %arg2: memref<2x8x1xf32, #tpu.memory_space<vmem>>, %arg3: memref<128x128xbf16, #tpu.memory_space<vmem>>, %arg4: memref<1x128xf32, #tpu.memory_space<vmem>>, %arg5: memref<1x128xf32, #tpu.memory_space<vmem>>, %arg6: memref<1x128xf32, #tpu.memory_space<vmem>>, %arg7: memref<1x128xf32, #tpu.memory_space<vmem>>, %arg8: memref<1x1xf32, #tpu.memory_space<vmem>>, %arg9: memref<1x128xf32, #tpu.memory_space<vmem>>, %arg10: memref<1x128xf32, #tpu.memory_space<vmem>>, %arg11: memref<128x32xbf16, #tpu.memory_space<vmem>>, %arg12: memref<1x32xf32, #tpu.memory_space<vmem>>, %arg13: memref<2x1x32xf32, #tpu.memory_space<vmem>>) attributes {dimension_semantics = [#tpu.dimension_semantics<parallel>], iteration_bounds = array<i64: 1>, scalar_prefetch = 0 : i64, scratch_operands = 0 : i64, tpu.core_type = #tpu.core_type<tc>, window_params = [{transform_indices = @transform_0, window_bounds = array<i64: 2, 8, 128>}, {transform_indices = @transform_1, window_bounds = array<i64: 2, 8, 1>}, {pipeline_mode = #tpu.pipeline_mode<synchronous>, transform_indices = @transform_2, window_bounds = array<i64: 128, 128>}, {pipeline_mode = #tpu.pipeline_mode<synchronous>, transform_indices = @transform_3, window_bounds = array<i64: 1, 128>}, {pipeline_mode = #tpu.pipeline_mode<synchronous>, transform_indices = @transform_4, window_bounds = array<i64: 1, 128>}, {pipeline_mode = #tpu.pipeline_mode<synchronous>, transform_indices = @transform_5, window_bounds = array<i64: 1, 128>}, {pipeline_mode = #tpu.pipeline_mode<synchronous>, transform_indices = @transform_6, window_bounds = array<i64: 1, 128>}, {pipeline_mode = #tpu.pipeline_mode<synchronous>, transform_indices = @transform_7, window_bounds = array<i64: 1, 1>}, {pipeline_mode = #tpu.pipeline_mode<synchronous>, transform_indices = @transform_8, window_bounds = array<i64: 1, 128>}, {pipeline_mode = #tpu.pipeline_mode<synchronous>, transform_indices = @transform_9, window_bounds = array<i64: 1, 128>}, {pipeline_mode = #tpu.pipeline_mode<synchronous>, transform_indices = @transform_10, window_bounds = array<i64: 128, 32>}, {pipeline_mode = #tpu.pipeline_mode<synchronous>, transform_indices = @transform_11, window_bounds = array<i64: 1, 32>}, {transform_indices = @transform_12, window_bounds = array<i64: 2, 1, 32>}]} {
    %c0 = arith.constant 0 : index
    %c0_0 = arith.constant 0 : index
    %c0_1 = arith.constant 0 : index
    %0 = vector.load %arg1[%c0, %c0_0, %c0_1] : memref<2x8x128xf32, #tpu.memory_space<vmem>>, vector<2x8x128xf32>
    %c0_2 = arith.constant 0 : index
    %c0_3 = arith.constant 0 : index
    %c0_4 = arith.constant 0 : index
    %1 = vector.load %arg2[%c0_2, %c0_3, %c0_4] : memref<2x8x1xf32, #tpu.memory_space<vmem>>, vector<2x8x1xf32>
    %2 = vector.shape_cast %0 : vector<2x8x128xf32> to vector<16x128xf32>
    %3 = arith.truncf %2 : vector<16x128xf32> to vector<16x128xbf16>
    %c0_5 = arith.constant 0 : index
    %c0_6 = arith.constant 0 : index
    %4 = vector.load %arg3[%c0_5, %c0_6] : memref<128x128xbf16, #tpu.memory_space<vmem>>, vector<128x128xbf16>
    %cst = arith.constant dense<0.000000e+00> : vector<16x128xf32>
    %5 = tpu.matmul %3, %4, %cst {dimension_numbers = #tpu.dot_dimension_numbers<[1], [0], [0], [1], [0, 0, 1, 1], [], []>} : vector<16x128xbf16>, vector<128x128xbf16>, vector<16x128xf32> -> vector<16x128xf32>
    %c0_7 = arith.constant 0 : index
    %c0_8 = arith.constant 0 : index
    %6 = vector.load %arg4[%c0_7, %c0_8] : memref<1x128xf32, #tpu.memory_space<vmem>>, vector<1x128xf32>
    %7 = vector.broadcast %6 : vector<1x128xf32> to vector<16x128xf32>
    %8 = arith.addf %5, %7 : vector<16x128xf32>
    %c0_9 = arith.constant 0 : index
    %c0_10 = arith.constant 0 : index
    %9 = vector.load %arg5[%c0_9, %c0_10] : memref<1x128xf32, #tpu.memory_space<vmem>>, vector<1x128xf32>
    %c0_11 = arith.constant 0 : index
    %c0_12 = arith.constant 0 : index
    %10 = vector.load %arg6[%c0_11, %c0_12] : memref<1x128xf32, #tpu.memory_space<vmem>>, vector<1x128xf32>
    %cst_13 = arith.constant dense<0.000000e+00> : vector<16xf32>
    %11 = vector.multi_reduction <add>, %8, %cst_13 [1] : vector<16x128xf32> to vector<16xf32>
    %12 = vector.shape_cast %11 : vector<16xf32> to vector<16x1xf32>
    %cst_14 = arith.constant 1.280000e+02 : f32
    %13 = vector.broadcast %cst_14 : f32 to vector<16x1xf32>
    %14 = arith.divf %12, %13 : vector<16x1xf32>
    %15 = vector.broadcast %14 : vector<16x1xf32> to vector<16x128xf32>
    %16 = arith.subf %8, %15 : vector<16x128xf32>
    %17 = arith.mulf %16, %16 : vector<16x128xf32>
    %cst_15 = arith.constant dense<0.000000e+00> : vector<16xf32>
    %18 = vector.multi_reduction <add>, %17, %cst_15 [1] : vector<16x128xf32> to vector<16xf32>
    %19 = vector.shape_cast %18 : vector<16xf32> to vector<16x1xf32>
    %cst_16 = arith.constant 1.280000e+02 : f32
    %20 = vector.broadcast %cst_16 : f32 to vector<16x1xf32>
    %21 = arith.divf %19, %20 : vector<16x1xf32>
    %cst_17 = arith.constant 9.99999974E-6 : f32
    %22 = vector.broadcast %cst_17 : f32 to vector<16x1xf32>
    %23 = arith.addf %21, %22 : vector<16x1xf32>
    %24 = math.rsqrt %23 : vector<16x1xf32>
    %25 = vector.broadcast %24 : vector<16x1xf32> to vector<16x128xf32>
    %26 = arith.mulf %16, %25 : vector<16x128xf32>
    %27 = vector.broadcast %9 : vector<1x128xf32> to vector<16x128xf32>
    %28 = arith.mulf %26, %27 : vector<16x128xf32>
    %29 = vector.broadcast %10 : vector<1x128xf32> to vector<16x128xf32>
    %30 = arith.addf %28, %29 : vector<16x128xf32>
    %cst_18 = arith.constant 5.000000e-01 : f32
    %31 = vector.broadcast %cst_18 : f32 to vector<16x128xf32>
    %32 = arith.mulf %31, %30 : vector<16x128xf32>
    %cst_19 = arith.constant 4.471500e-02 : f32
    %33 = vector.broadcast %cst_19 : f32 to vector<16x128xf32>
    %34 = arith.mulf %33, %30 : vector<16x128xf32>
    %35 = arith.mulf %34, %30 : vector<16x128xf32>
    %36 = arith.mulf %35, %30 : vector<16x128xf32>
    %37 = arith.addf %30, %36 : vector<16x128xf32>
    %cst_20 = arith.constant 0.797884583 : f32
    %38 = vector.broadcast %cst_20 : f32 to vector<16x128xf32>
    %39 = arith.mulf %38, %37 : vector<16x128xf32>
    %40 = math.tanh %39 : vector<16x128xf32>
    %cst_21 = arith.constant 1.000000e+00 : f32
    %41 = vector.broadcast %cst_21 : f32 to vector<16x128xf32>
    %42 = arith.addf %41, %40 : vector<16x128xf32>
    %43 = arith.mulf %32, %42 : vector<16x128xf32>
    %c0_22 = arith.constant 0 : index
    %c0_23 = arith.constant 0 : index
    %44 = vector.load %arg7[%c0_22, %c0_23] : memref<1x128xf32, #tpu.memory_space<vmem>>, vector<1x128xf32>
    %45 = vector.broadcast %44 : vector<1x128xf32> to vector<16x128xf32>
    %46 = arith.mulf %43, %45 : vector<16x128xf32>
    %cst_24 = arith.constant dense<0.000000e+00> : vector<16xf32>
    %47 = vector.multi_reduction <add>, %46, %cst_24 [1] : vector<16x128xf32> to vector<16xf32>
    %48 = vector.shape_cast %47 : vector<16xf32> to vector<16x1xf32>
    %c0_25 = arith.constant 0 : index
    %c0_26 = arith.constant 0 : index
    %49 = vector.load %arg8[%c0_25, %c0_26] : memref<1x1xf32, #tpu.memory_space<vmem>>, vector<1x1xf32>
    %50 = vector.broadcast %49 : vector<1x1xf32> to vector<16x1xf32>
    %51 = arith.addf %48, %50 : vector<16x1xf32>
    %52 = vector.shape_cast %51 : vector<16x1xf32> to vector<2x8x1xf32>
    %53 = arith.addf %52, %1 : vector<2x8x1xf32>
    %cst_27 = arith.constant dense<0xFF800000> : vector<2x1xf32>
    %54 = vector.multi_reduction <maximumf>, %53, %cst_27 [1] : vector<2x8x1xf32> to vector<2x1xf32>
    %55 = vector.shape_cast %54 : vector<2x1xf32> to vector<2x1x1xf32>
    %56 = vector.broadcast %55 : vector<2x1x1xf32> to vector<2x8x1xf32>
    %57 = arith.subf %53, %56 : vector<2x8x1xf32>
    %58 = math.exp %57 : vector<2x8x1xf32>
    %cst_28 = arith.constant dense<0.000000e+00> : vector<2x1xf32>
    %59 = vector.multi_reduction <add>, %58, %cst_28 [1] : vector<2x8x1xf32> to vector<2x1xf32>
    %60 = vector.shape_cast %59 : vector<2x1xf32> to vector<2x1x1xf32>
    %61 = tpu.reciprocal %60 {approx = true} : vector<2x1x1xf32> -> vector<2x1x1xf32>
    %62 = vector.broadcast %61 : vector<2x1x1xf32> to vector<2x8x1xf32>
    %63 = arith.mulf %58, %62 : vector<2x8x1xf32>
    %64 = vector.broadcast %63 : vector<2x8x1xf32> to vector<2x8x128xf32>
    %65 = arith.mulf %0, %64 : vector<2x8x128xf32>
    %cst_29 = arith.constant dense<0.000000e+00> : vector<2x128xf32>
    %66 = vector.multi_reduction <add>, %65, %cst_29 [1] : vector<2x8x128xf32> to vector<2x128xf32>
    %c0_30 = arith.constant 0 : index
    %c0_31 = arith.constant 0 : index
    %67 = vector.load %arg9[%c0_30, %c0_31] : memref<1x128xf32, #tpu.memory_space<vmem>>, vector<1x128xf32>
    %68 = vector.broadcast %67 : vector<1x128xf32> to vector<2x128xf32>
    %69 = arith.mulf %66, %68 : vector<2x128xf32>
    %c0_32 = arith.constant 0 : index
    %c0_33 = arith.constant 0 : index
    %70 = vector.load %arg10[%c0_32, %c0_33] : memref<1x128xf32, #tpu.memory_space<vmem>>, vector<1x128xf32>
    %71 = vector.broadcast %70 : vector<1x128xf32> to vector<2x128xf32>
    %72 = arith.addf %69, %71 : vector<2x128xf32>
    %73 = arith.truncf %72 : vector<2x128xf32> to vector<2x128xbf16>
    %c0_34 = arith.constant 0 : index
    %c0_35 = arith.constant 0 : index
    %74 = vector.load %arg11[%c0_34, %c0_35] : memref<128x32xbf16, #tpu.memory_space<vmem>>, vector<128x32xbf16>
    %cst_36 = arith.constant dense<0.000000e+00> : vector<2x32xf32>
    %75 = tpu.matmul %73, %74, %cst_36 {dimension_numbers = #tpu.dot_dimension_numbers<[1], [0], [0], [1], [0, 0, 1, 1], [], []>} : vector<2x128xbf16>, vector<128x32xbf16>, vector<2x32xf32> -> vector<2x32xf32>
    %c0_37 = arith.constant 0 : index
    %c0_38 = arith.constant 0 : index
    %76 = vector.load %arg12[%c0_37, %c0_38] : memref<1x32xf32, #tpu.memory_space<vmem>>, vector<1x32xf32>
    %77 = vector.broadcast %76 : vector<1x32xf32> to vector<2x32xf32>
    %78 = arith.addf %75, %77 : vector<2x32xf32>
    %79 = vector.shape_cast %78 : vector<2x32xf32> to vector<2x1x32xf32>
    %c0_39 = arith.constant 0 : index
    %c0_40 = arith.constant 0 : index
    %c0_41 = arith.constant 0 : index
    %80 = vector.load %arg13[%c0_39, %c0_40, %c0_41] : memref<2x1x32xf32, #tpu.memory_space<vmem>>, vector<2x1x32xf32>
    tpu.vector_store %arg13[%c0_39, %c0_40, %c0_41], %79 {strides = array<i32>} : memref<2x1x32xf32, #tpu.memory_space<vmem>>, vector<2x1x32xf32>,
    return
  }
  func.func @transform_0(%arg0: i32) -> (i32, i32, i32) {
    %c0_i32 = arith.constant 0 : i32
    %c0_i32_0 = arith.constant 0 : i32
    %c0_i32_1 = arith.constant 0 : i32
    return %arg0, %c0_i32, %c0_i32_0 : i32, i32, i32
  }
  func.func @transform_1(%arg0: i32) -> (i32, i32, i32) {
    %c0_i32 = arith.constant 0 : i32
    %c0_i32_0 = arith.constant 0 : i32
    %c0_i32_1 = arith.constant 0 : i32
    return %arg0, %c0_i32, %c0_i32_0 : i32, i32, i32
  }
  func.func @transform_2(%arg0: i32) -> (i32, i32) {
    %c0_i32 = arith.constant 0 : i32
    %c0_i32_0 = arith.constant 0 : i32
    %c0_i32_1 = arith.constant 0 : i32
    return %c0_i32, %c0_i32_0 : i32, i32
  }
  func.func @transform_3(%arg0: i32) -> (i32, i32) {
    %c0_i32 = arith.constant 0 : i32
    %c0_i32_0 = arith.constant 0 : i32
    %c0_i32_1 = arith.constant 0 : i32
    return %c0_i32, %c0_i32_0 : i32, i32
  }
  func.func @transform_4(%arg0: i32) -> (i32, i32) {
    %c0_i32 = arith.constant 0 : i32
    %c0_i32_0 = arith.constant 0 : i32
    %c0_i32_1 = arith.constant 0 : i32
    return %c0_i32, %c0_i32_0 : i32, i32
  }
  func.func @transform_5(%arg0: i32) -> (i32, i32) {
    %c0_i32 = arith.constant 0 : i32
    %c0_i32_0 = arith.constant 0 : i32
    %c0_i32_1 = arith.constant 0 : i32
    return %c0_i32, %c0_i32_0 : i32, i32
  }
  func.func @transform_6(%arg0: i32) -> (i32, i32) {
    %c0_i32 = arith.constant 0 : i32
    %c0_i32_0 = arith.constant 0 : i32
    %c0_i32_1 = arith.constant 0 : i32
    return %c0_i32, %c0_i32_0 : i32, i32
  }
  func.func @transform_7(%arg0: i32) -> (i32, i32) {
    %c0_i32 = arith.constant 0 : i32
    %c0_i32_0 = arith.constant 0 : i32
    %c0_i32_1 = arith.constant 0 : i32
    return %c0_i32, %c0_i32_0 : i32, i32
  }
  func.func @transform_8(%arg0: i32) -> (i32, i32) {
    %c0_i32 = arith.constant 0 : i32
    %c0_i32_0 = arith.constant 0 : i32
    %c0_i32_1 = arith.constant 0 : i32
    return %c0_i32, %c0_i32_0 : i32, i32
  }
  func.func @transform_9(%arg0: i32) -> (i32, i32) {
    %c0_i32 = arith.constant 0 : i32
    %c0_i32_0 = arith.constant 0 : i32
    %c0_i32_1 = arith.constant 0 : i32
    return %c0_i32, %c0_i32_0 : i32, i32
  }
  func.func @transform_10(%arg0: i32) -> (i32, i32) {
    %c0_i32 = arith.constant 0 : i32
    %c0_i32_0 = arith.constant 0 : i32
    %c0_i32_1 = arith.constant 0 : i32
    return %c0_i32, %c0_i32_0 : i32, i32
  }
  func.func @transform_11(%arg0: i32) -> (i32, i32) {
    %c0_i32 = arith.constant 0 : i32
    %c0_i32_0 = arith.constant 0 : i32
    %c0_i32_1 = arith.constant 0 : i32
    return %c0_i32, %c0_i32_0 : i32, i32
  }
  func.func @transform_12(%arg0: i32) -> (i32, i32, i32) {
    %c0_i32 = arith.constant 0 : i32
    %c0_i32_0 = arith.constant 0 : i32
    %c0_i32_1 = arith.constant 0 : i32
    return %arg0, %c0_i32, %c0_i32_0 : i32, i32, i32
  }
}

</mosaic_0001>

<bundles_post_ra>
// kernel: network_forward.7
= control target key start
LH: loop header
LB: loop body
LE: loop exit
PB: predicated region body
PF: predicated region fallthrough
CT: control target
= control target key end

     0   :  { %s829_s0 = inlined_call_operand.vmem [shape: f32[2,8,128], index: 0, kind: input, shape index: {}]   ;;  %s830_s1 = inlined_call_operand.vmem [shape: f32[2,8,1], index: 1, kind: input, shape index: {}]   ;;  %s831_s2 = inlined_call_operand.vmem [shape: bf16[128,128], index: 2, kind: input, shape index: {}]   ;;  %s832_s3 = inlined_call_operand.vmem [shape: f32[1,128], index: 3, kind: input, shape index: {}]   ;;  %s833_s4 = inlined_call_operand.vmem [shape: f32[1,128], index: 4, kind: input, shape index: {}]   ;;  %s834_s5 = inlined_call_operand.vmem [shape: f32[1,128], index: 5, kind: input, shape index: {}]   ;;  %s835_s6 = inlined_call_operand.vmem [shape: f32[1,128], index: 6, kind: input, shape index: {}]   ;;  %s836_s7 = inlined_call_operand.<no memory space> [shape: f32[1,1], index: 7, kind: input, shape index: {}]   ;;  %s837_s8 = inlined_call_operand.vmem [shape: f32[1,128], index: 8, kind: input, shape index: {}]   ;;  %s838_s9 = inlined_call_operand.vmem [shape: f32[1,128], index: 9, kind: input, shape index: {}]   ;;  %s839_s10 = inlined_call_operand.vmem [shape: bf16[128,32], index: 10, kind: input, shape index: {}]   ;;  %s840_s11 = inlined_call_operand.vmem [shape: f32[1,32], index: 11, kind: input, shape index: {}]   ;;  %s841_s12 = inlined_call_operand.hbm [shape: f32[2,1,32], index: 12, kind: output, shape index: {}]  }
   0x1   :  { %v17_v0 = vstv %s836_s7 }
   0x2   :  { %18 = vst [vmem:[#allocation2] sm:$0x1] %v17_v0 }
   0x3   :  { %v575_v1 = vld [vmem:[%s831_s2] sm:$0xff]   ;;  %v631_v2 = vmov 0.0   ;;  %v576_v3 = vld [vmem:[%s831_s2 + $0x8] sm:$0xff]   ;;  %vm632_vm0 = vmmov 0   ;;  %v577_v4 = vld [vmem:[%s831_s2 + $0x10] sm:$0xff]  }
   0x4   :  { %526 = vmatprep.subr.bf16.mxu0 %v631_v2  ;;  %546 = vmatprep.subr.bf16.mxu1 %v631_v2  ;;  %v578_v5 = vld [vmem:[%s831_s2 + $0x18] sm:$0xff]   ;;  %v579_v6 = vld [vmem:[%s831_s2 + $0x20] sm:$0xff]  }
   0x5   :  { %527 = vmatpush3.bf16.msra.mxu0 %v575_v1  ;;  %542 = vmatprep.mubr.msk.bf16.mxu0 %vm632_vm0, %v631_v2 }
   0x6   :  { %528 = vmatprep.subr.bf16.mxu0 %v631_v2  ;;  %562 = vmatprep.mubr.msk.bf16.mxu1 %vm632_vm0, %v631_v2 }
   0x9   :  { %529 = vmatpush3.bf16.msra.mxu0 %v576_v3 }
   0xa   :  { %530 = vmatprep.subr.bf16.mxu0 %v631_v2 }
   0xd   :  { %531 = vmatpush3.bf16.msra.mxu0 %v577_v4 }
   0xe   :  { %532 = vmatprep.subr.bf16.mxu0 %v631_v2 }
  0x11   :  { %533 = vmatpush3.bf16.msra.mxu0 %v578_v5 }
  0x12   :  { %19 = vsyncpa [#allocation4], 0  ;;  %534 = vmatprep.subr.bf16.mxu0 %v631_v2  ;;  %v580_v7 = vld [vmem:[%s831_s2 + $0x28] sm:$0xff]   ;;  %v581_v8 = vld [vmem:[%s831_s2 + $0x30] sm:$0xff]   ;;  %v633_v57 = vmov 0   ;;  %vm237_vm1 = vcmask 7168  }
  0x13   :  { %v582_v9 = vld [vmem:[%s831_s2 + $0x38] sm:$0xff]   ;;  %v743_v10 = vld [vmem:[%s829_s0] sm:$0xff]  ;;  %v748_v11 = vld [vmem:[%s829_s0 + $0x8] sm:$0xff]  ;;  %573 = vset.pattern.permute.xlu0 %v633_v57  ;;  %574 = vset.pattern.permute.xlu1 %v633_v57  ;;  %vm348_vm2 = vcmask 1041409   ;;  %s635_s26 = smov [#allocation3]   ;;  %vm465_vm3 = vcmask 253952  }
  0x14   :  { %v49_v12 = vpack.c.bf16 %v748_v11, %v743_v10  ;;  %v484_v15 = vld [vmem:[%s832_s3] ss:$0 sm:$0xff]  ;;  %v48_v60 = vld [vmem:[%s830_s1 + $0x8] sm:$0xff]  ;;  %s473_s7 = sshll.u32 %s635_s26, 4  ;;  %s474_s7 = int_to_ptr.vmem [resolvable:$true] %s473_s7 }
  0x15   :  { %535 = vmatpush3.bf16.msra.mxu0 %v579_v6  ;;  %v493_v35 = vld [vmem:[%s833_s4] ss:$0 sm:$0xff]  ;;  %s607_s4 = scalar_lea.vmem %s474_s7, 32  ;;  %p612_p1 = scmp.lt.s32.totalorder %s474_s7, %s474_s7 }
  0x16   :  { %536 = vmatprep.subr.bf16.mxu0 %v631_v2  ;;  %v494_v37 = vld [vmem:[%s834_s5] ss:$0 sm:$0xff]  ;;  %p608_p0 = scmp.ne.s32.totalorder %s474_s7, %s607_s4  ;;  %p613_p2 = scmp.lt.s32.totalorder %s607_s4, %s607_s4 }
  0x17   :  { %v495_v49 = vld [vmem:[%s835_s6] ss:$0 sm:$0xff] }
  0x18   :  { %v583_v58 = vld [vmem:[%s839_s10] sm:$0xff]   ;;  %p614_p3 = por %p613_p2, %p612_p1 }
  0x19   :  { %537 = vmatpush3.bf16.msra.mxu0 %v580_v7  ;;  %547 = vmatpush3.bf16.msra.mxu1 %v583_v58  ;;  %v496_v59 = vld [vmem:[#allocation2] ss:$0 sm:$0xff] }
  0x1a   :  { %538 = vmatprep.subr.bf16.mxu0 %v631_v2  ;;  %548 = vmatprep.subr.bf16.mxu1 %v631_v2  ;;  %v47_v0 = vld [vmem:[%s830_s1] sm:$0xff]  ;;  %p615_p4 = pnand %p614_p3, %p608_p0 }
  0x1d   :  { %539 = vmatpush3.bf16.msra.mxu0 %v581_v8 }
  0x1e   :  { %540 = vmatprep.subr.bf16.mxu0 %v631_v2 }
  0x21   :  { %541 = vmatpush3.bf16.msra.mxu0 %v582_v9 }
  0x24   :  { %543 = vmatmul.mubr.bf16.vlgmr.msra.gmra.mrb[0].mxu0 %v49_v12 }
  0xf7   :  { %v155_v13 = vpop.f32.mrb[0].mxu0 }
  0xf8   :  { %v544_v14 = vpop.f32.mrb[1].mxu0  ;;  %v156_v19 = vadd.f32 %v484_v15, %v155_v13 }
  0xf9   :  { %v158_v16 = vpop.f32.mrb[2].mxu0 }
  0xfa   :  { %v159_v17 = vadd.f32 %v484_v15, %v158_v16  ;;  %v545_v18 = vpop.f32.mrb[3].mxu0 }
  0xfc   :  { %166 = vadd.xlane.f32.xlu0 %v159_v17 }
 0x100   :  { %164 = vadd.xlane.f32.xlu0 %v156_v19 }
 0x189   :  { %v167_v20 = vpop.xlane.xlu0 %166 }
 0x18a   :  { %v170_v21 = vmul.f32 0.0078125, %v167_v20 }
 0x18c   :  { %v172_v22 = vsub.f32 %v159_v17, %v170_v21 }
 0x18d   :  { %v165_v23 = vpop.xlane.xlu0 %164 }
 0x18e   :  { %v169_v24 = vmul.f32 0.0078125, %v165_v23  ;;  %v174_v25 = vmul.f32 %v172_v22, %v172_v22 }
 0x190   :  { %v171_v26 = vsub.f32 %v156_v19, %v169_v24  ;;  %177 = vadd.xlane.f32.xlu1 %v174_v25 }
 0x192   :  { %v173_v27 = vmul.f32 %v171_v26, %v171_v26 }
 0x194   :  { %175 = vadd.xlane.f32.xlu1 %v173_v27 }
 0x21d   :  { %v178_v28 = vpop.xlane.xlu1 %177 }
 0x21e   :  { %v180_v29 = vmul.f32 0.0078125, %v178_v28 }
 0x220   :  { %v182_v30 = vadd.f32 1e-05, %v180_v29 }
 0x221   :  { %v176_v31 = vpop.xlane.xlu1 %175 }
 0x222   :  { %591 = vrsqrt.f32 %v182_v30  ;;  %v179_v32 = vmul.f32 0.0078125, %v176_v31 }
 0x224   :  { %v181_v33 = vadd.f32 1e-05, %v179_v32 }
 0x226   :  { %593 = vrsqrt.f32 %v181_v33 }
 0x22c   :  { %v592_v34 = vpop.eup %591 }
 0x22d   :  { %v186_v36 = vmul.f32 %v592_v34, %v172_v22 }
 0x22f   :  { %v194_v38 = vmul.f32 %v493_v35, %v186_v36 }
 0x230   :  { %v594_v39 = vpop.eup %593 }
 0x231   :  { %v202_v40 = vadd.f32 %v494_v37, %v194_v38  ;;  %v185_v41 = vmul.f32 %v594_v39, %v171_v26 }
 0x233   :  { %v206_v42 = vmul.f32 0.70710677, %v202_v40  ;;  %v193_v43 = vmul.f32 %v493_v35, %v185_v41  ;;  %v204_v47 = vmul.f32 0.5, %v202_v40 }
 0x235   :  { %595 = verf.f32 %v206_v42  ;;  %v201_v44 = vadd.f32 %v494_v37, %v193_v43  ;;  %v584_v43 = vld [vmem:[%s839_s10 + $0x8] sm:$0xff]  }
 0x236   :  { %549 = vmatpush3.bf16.msra.mxu1 %v584_v43 }
 0x237   :  { %v205_v45 = vmul.f32 0.70710677, %v201_v44  ;;  %v203_v53 = vmul.f32 0.5, %v201_v44  ;;  %550 = vmatprep.subr.bf16.mxu1 %v631_v2 }
 0x239   :  { %597 = verf.f32 %v205_v45 }
 0x23f   :  { %v596_v46 = vpop.eup %595 }
 0x240   :  { %v210_v48 = vadd.f32 1.0, %v596_v46  ;;  %v585_v46 = vld [vmem:[%s839_s10 + $0x10] sm:$0xff]  }
 0x241   :  { %551 = vmatpush3.bf16.msra.mxu1 %v585_v46 }
 0x242   :  { %v212_v50 = vmul.f32 %v210_v48, %v204_v47  ;;  %552 = vmatprep.subr.bf16.mxu1 %v631_v2  ;;  %v586_v47 = vld [vmem:[%s839_s10 + $0x18] sm:$0xff]   ;;  %v587_v48 = vld [vmem:[%s839_s10 + $0x20] sm:$0xff]  }
 0x243   :  { %v598_v51 = vpop.eup %597 }
 0x244   :  { %v221_v52 = vmul.f32 %v495_v49, %v212_v50  ;;  %v209_v54 = vadd.f32 1.0, %v598_v51  ;;  %v589_v50 = vld [vmem:[%s839_s10 + $0x30] sm:$0xff]   ;;  %v590_v51 = vld [vmem:[%s839_s10 + $0x38] sm:$0xff]  }
 0x245   :  { %553 = vmatpush3.bf16.msra.mxu1 %v586_v47 }
 0x246   :  { %224 = vadd.xlane.f32.xlu0 %v221_v52  ;;  %v211_v55 = vmul.f32 %v209_v54, %v203_v53  ;;  %554 = vmatprep.subr.bf16.mxu1 %v631_v2 }
 0x248   :  { %v220_v56 = vmul.f32 %v495_v49, %v211_v55  ;;  %v588_v49 = vld [vmem:[%s839_s10 + $0x28] sm:$0xff]  }
 0x249   :  { %555 = vmatpush3.bf16.msra.mxu1 %v587_v48 }
 0x24a   :  { %222 = vadd.xlane.f32.xlu1 %v220_v56  ;;  %556 = vmatprep.subr.bf16.mxu1 %v631_v2 }
 0x24d   :  { %557 = vmatpush3.bf16.msra.mxu1 %v588_v49 }
 0x24e   :  { %558 = vmatprep.subr.bf16.mxu1 %v631_v2 }
 0x251   :  { %559 = vmatpush3.bf16.msra.mxu1 %v589_v50 }
 0x252   :  { %560 = vmatprep.subr.bf16.mxu1 %v631_v2 }
 0x255   :  { %561 = vmatpush3.bf16.msra.mxu1 %v590_v51 }
 0x2d3   :  { %v225_v61 = vpop.xlane.xlu0 %224 }
 0x2d4   :  { %v234_v62 = vadd.f32 %v496_v59, %v225_v61 }
 0x2d6   :  { %v236_v63 = vadd.f32 %v234_v62, %v48_v60 }
 0x2d7   :  { %v223_v1 = vpop.xlane.xlu1 %222 }
 0x2d8   :  { %v245_v3 = vsel %vm237_vm1, %v236_v63, -inf  ;;  %v233_v4 = vadd.f32 %v496_v59, %v223_v1 }
 0x2d9   :  { %v246_v5 = vrot.slane %v245_v3, 4 }
 0x2da   :  { %v235_v6 = vadd.f32 %v233_v4, %v47_v0  ;;  %v497_v0 = vld [vmem:[%s837_s8] ss:$0 sm:$0xff] }
 0x2db   :  { %v247_v7 = vmax.f32 %v245_v3, %v246_v5 }
 0x2dc   :  { %v238_v8 = vsel %vm237_vm1, %v235_v6, -inf }
 0x2dd   :  { %v248_v9 = vrot.slane %v247_v7, 2  ;;  %v239_v12 = vrot.slane %v238_v8, 4 }
 0x2df   :  { %v249_v13 = vmax.f32 %v247_v7, %v248_v9  ;;  %v240_v14 = vmax.f32 %v238_v8, %v239_v12 }
 0x2e1   :  { %v250_v15 = vrot.slane %v249_v13, 1  ;;  %v241_v16 = vrot.slane %v240_v14, 2 }
 0x2e3   :  { %v251_v17 = vmax.f32 %v249_v13, %v250_v15  ;;  %v242_v18 = vmax.f32 %v240_v14, %v241_v16 }
 0x2e5   :  { %v253_v19 = vsub.f32 %v236_v63, %v251_v17  ;;  %v243_v20 = vrot.slane %v242_v18, 1  ;;  %v634_v17 = vmov 1966171168  }
 0x2e7   :  { %v256_v21 = vmul.f32 1.442695, %v253_v19  ;;  %v244_v22 = vmax.f32 %v242_v18, %v243_v20  ;;  %v442_v18 = vunpack.c.l.s4 %v634_v17  ;;  %v444_v19 = vlaneseq }
 0x2e9   :  { %599 = vpow2.f32 %v256_v21  ;;  %v252_v23 = vsub.f32 %v235_v6, %v244_v22  ;;  %v443_v20 = vunpack.c.0.s8 %v442_v18  ;;  %v445_v21 = vshrl.u32 %v444_v19, 7  ;;  %v499_v22 = vld [vmem:[%s840_s11] ss:$0 sm:$0xff] }
 0x2eb   :  { %v254_v24 = vmul.f32 1.442695, %v252_v23  ;;  %v446_v23 = vsub.s32 %v443_v20, %v445_v21 }
 0x2ed   :  { %601 = vpow2.f32 %v254_v24 }
 0x2f3   :  { %v600_v25 = vpop.eup %599 }
 0x2f4   :  { %v265_v26 = vsel %vm237_vm1, %v600_v25, 0.0 }
 0x2f5   :  { %v266_v27 = vrot.slane %v265_v26, 4 }
 0x2f7   :  { %v602_v28 = vpop.eup %601  ;;  %v267_v29 = vadd.f32 %v266_v27, %v265_v26 }
 0x2f8   :  { %v258_v30 = vsel %vm237_vm1, %v602_v28, 0.0 }
 0x2f9   :  { %v268_v31 = vrot.slane %v267_v29, 2  ;;  %v259_v32 = vrot.slane %v258_v30, 4 }
 0x2fb   :  { %v269_v33 = vadd.f32 %v268_v31, %v267_v29  ;;  %v260_v34 = vadd.f32 %v259_v32, %v258_v30 }
 0x2fd   :  { %v270_v35 = vrot.slane %v269_v33, 1  ;;  %v261_v36 = vrot.slane %v260_v34, 2 }
 0x2ff   :  { %v271_v37 = vadd.f32 %v270_v35, %v269_v33  ;;  %v262_v38 = vadd.f32 %v261_v36, %v260_v34 }
 0x301   :  { %603 = vrcp.f32 %v271_v37  ;;  %v263_v39 = vrot.slane %v262_v38, 1 }
 0x303   :  { %v264_v40 = vadd.f32 %v263_v39, %v262_v38 }
 0x305   :  { %605 = vrcp.f32 %v264_v40 }
 0x30b   :  { %v604_v41 = vpop.eup %603 }
 0x30c   :  { %v275_v42 = vmul.f32 %v604_v41, %v600_v25 }
 0x30e   :  { %283 = vperm.xlu0 %573, %v275_v42  }
 0x30f   :  { %v606_v44 = vpop.eup %605 }
 0x310   :  { %v274_v45 = vmul.f32 %v606_v44, %v602_v28 }
 0x312   :  { %278 = vperm.xlu1 %574, %v274_v45  }
 0x38d   :  { %v284_v52 = vpop.permute.xlu0 %283 }
 0x38e   :  { %v287_v53 = vmul.f32 %v284_v52, %v748_v11  ;;  %v498_v11 = vld [vmem:[%s838_s9] ss:$0 sm:$0xff] }
 0x390   :  { %v294_v54 = vrot.slane %v287_v53, 4 }
 0x391   :  { %v279_v55 = vpop.permute.xlu1 %278 }
 0x392   :  { %v295_v56 = vadd.f32 %v294_v54, %v287_v53  ;;  %v286_v57 = vmul.f32 %v279_v55, %v743_v10 }
 0x394   :  { %v296_v58 = vrot.slane %v295_v56, 2  ;;  %v288_v59 = vrot.slane %v286_v57, 4 }
 0x396   :  { %v297_v60 = vadd.f32 %v296_v58, %v295_v56  ;;  %v289_v61 = vadd.f32 %v288_v59, %v286_v57 }
 0x398   :  { %v298_v62 = vrot.slane %v297_v60, 1  ;;  %v290_v63 = vrot.slane %v289_v61, 2 }
 0x39a   :  { %v299_v2 = vadd.f32 %v298_v62, %v297_v60  ;;  %v291_v1 = vadd.f32 %v290_v63, %v289_v61 }
 0x39c   :  { %v308_v3 = vmul.f32 %v497_v0, %v299_v2  ;;  %v292_v4 = vrot.slane %v291_v1, 1 }
 0x39e   :  { %v293_v5 = vadd.f32 %v292_v4, %v291_v1  ;;  %v317_v10 = vadd.f32 %v498_v11, %v308_v3 }
 0x3a0   :  { %v307_v6 = vmul.f32 %v497_v0, %v293_v5  ;;  %v319_v7 = vpack.c.bf16 %v317_v10, %v317_v10 }
 0x3a2   :  { %v316_v8 = vadd.f32 %v498_v11, %v307_v6  ;;  %v346_v9 = vunpack.c.l.b16 %v319_v7 }
 0x3a4   :  { %v318_v12 = vpack.c.bf16 %v316_v8, %v316_v8  ;;  %v347_v14 = vrot.slane %v346_v9, 7 }
 0x3a6   :  { %v345_v13 = vunpack.c.l.b16 %v318_v12 }
 0x3a8   :  { %v349_v15 = vsel %vm348_vm2, %v347_v14, %v345_v13 }
 0x3a9   :  { %v350_v16 = vpack.c.b16 %v349_v15, %v349_v15 }
 0x3ab   :  { %563 = vmatmul.mubr.bf16.vlgmr.msra.gmra.mrb[0].mxu1 %v350_v16 }
 0x47e   :  { %v434_v24 = vpop.f32.mrb[0].mxu1 }
 0x47f   :  { %v435_v25 = vadd.f32 %v499_v22, %v434_v24  ;;  %v564_v26 = vpop.f32.mrb[1].mxu1 }
 0x480   :  { %v437_v27 = vpop.f32.mrb[2].mxu1 }
 0x481   :  { %v447_v28 = vrot.slane %v435_v25, %v446_v23  ;;  %v565_v29 = vpop.f32.mrb[3].mxu1 }
 0x483   :  { %v448_v30 = vcombine.high %v447_v28, %v447_v28  ;;  %v455_v31 = vrot.slane %v447_v28, %v446_v23 }
 0x485   :  { %v462_v32 = vrot.slane %v448_v30, %v446_v23  ;;  %466 = vst.msk [vmem:[#allocation3] sm:$0x1] %vm465_vm3, %v455_v31 }
 0x487   :  { %467 = vst.msk [vmem:[#allocation3 + $0x1] sm:$0x1] %vm465_vm3, %v462_v32 }
 0x488   :  { %618 = shalt.err (!%p615_p4)
}
 0x489   :  { %s619_s27 = scalar_lea.hbm %s841_s12, 32 }
 0x48a   :  { %p620_p5 = scmp.ne.s32.totalorder %s841_s12, %s619_s27  ;;  %p623_p6 = scmp.lt.u32.totalorder %s619_s27, %s841_s12 }
 0x48c   :  { %p625_p7 = pnand %p623_p6, %p620_p5 }
 0x48e   :  { %628 = shalt.err (!%p625_p7)
}
 0x48f   :  { %s636_s1 = smov 16   ;;  %s637_s13 = smov 1  }
 0x490   :  { %479 = dma.vmem_to_hbm [thread:$0]  %s474_s7, 32, %s841_s12, [#allocation4], %s636_s1, %s636_s1, %s637_s13  }
 0x491   :  { %629 = dma.done.wait [#allocation4], 32  }
 0x492   :  { %630 = vsyncadd [#allocation4], 4294967264 }
 0x493   :  { %483 = vsyncpa [#allocation4], 1 }

// kernel: network_forward.4
= control target key start
LH: loop header
LB: loop body
LE: loop exit
PB: predicated region body
PF: predicated region fallthrough
CT: control target
= control target key end

     0   :  { %s1259_s0 = inlined_call_operand.vmem [shape: f32[16,128], index: 0, kind: input, shape index: {}]   ;;  %s1260_s1 = inlined_call_operand.hbm [shape: bf16[128,512], index: 1, kind: input, shape index: {}]   ;;  %s1261_s2 = inlined_call_operand.vmem [shape: f32[1,512], index: 2, kind: input, shape index: {}]   ;;  %s1262_s3 = inlined_call_operand.hbm [shape: bf16[512,128], index: 3, kind: input, shape index: {}]   ;;  %s1263_s4 = inlined_call_operand.vmem [shape: f32[1,512], index: 4, kind: input, shape index: {}]   ;;  %s1264_s5 = inlined_call_operand.vmem [shape: f32[1,128], index: 5, kind: input, shape index: {}]   ;;  %s1265_s6 = inlined_call_operand.<no memory space> [shape: f32[1,1], index: 6, kind: input, shape index: {}]   ;;  %s1266_s7 = inlined_call_operand.vmem [shape: f32[1,128], index: 7, kind: input, shape index: {}]   ;;  %s1267_s8 = inlined_call_operand.vmem [shape: f32[1,128], index: 8, kind: input, shape index: {}]   ;;  %s1268_s9 = inlined_call_operand.vmem [shape: f32[16,128], index: 9, kind: output, shape index: {0}]   ;;  %s1269_s10 = inlined_call_operand.vmem [shape: f32[16,1], index: 10, kind: output, shape index: {1}]  }
   0x1   :  { %v16_v0 = vstv %s1265_s6 }
   0x2   :  { %17 = vst [vmem:[#allocation2] sm:$0x1] %v16_v0 }
   0x3   :  { %18 = vsyncpa [#allocation4], 0 }
   0x4   :  { %19 = vsyncpa [#allocation6], 0  ;;  %s1134_s15 = smov [#allocation3]   ;;  %s1086_s19 = scalar_lea.hbm %s1260_s1, 4096 }
   0x5   :  { %s27_s16 = sshll.u32 %s1134_s15, 4  ;;  %p1087_p0 = scmp.ne.s32.totalorder %s1260_s1, %s1086_s19  ;;  %s28_s16 = int_to_ptr.vmem [resolvable:$true] %s27_s16 }
   0x6   :  { %p1090_p1 = scmp.lt.u32.totalorder %s1086_s19, %s1260_s1 }
   0x8   :  { %p1092_p2 = pnand %p1090_p1, %p1087_p0 }
   0xa   :  { %1095 = shalt.err (!%p1092_p2)
}
   0xb   :  { %s1096_s6 = scalar_lea.vmem %s28_s16, 4096  ;;  %p1101_p4 = scmp.lt.s32.totalorder %s28_s16, %s28_s16 }
   0xc   :  { %p1097_p3 = scmp.ne.s32.totalorder %s28_s16, %s1096_s6  ;;  %p1102_p5 = scmp.lt.s32.totalorder %s1096_s6, %s1096_s6 }
   0xe   :  { %p1103_p6 = por %p1102_p5, %p1101_p4 }
  0x10   :  { %p1104_p7 = pnand %p1103_p6, %p1097_p3 }
  0x12   :  { %1107 = shalt.err (!%p1104_p7)
}
  0x13   :  { %s1135_s24 = smov 256   ;;  %s1136_s25 = smov 16  }
  0x14   :  { %33 = dma.hbm_to_vmem [thread:$0]  %s1260_s1, 4096, %s28_s16, [#allocation4], %s1135_s24, %s1135_s24, %s1136_s25  }
  0x15   :  { %s1137_s28 = smov [#allocation5]   ;;  %s1108_s12 = scalar_lea.hbm %s1262_s3, 4096 }
  0x16   :  { %s41_s29 = sshll.u32 %s1137_s28, 4  ;;  %p1109_p8 = scmp.ne.s32.totalorder %s1262_s3, %s1108_s12  ;;  %s42_s29 = int_to_ptr.vmem [resolvable:$true] %s41_s29 }
  0x17   :  { %p1112_p9 = scmp.lt.u32.totalorder %s1108_s12, %s1262_s3 }
  0x19   :  { %p1114_p10 = pnand %p1112_p9, %p1109_p8 }
  0x1b   :  { %1117 = shalt.err (!%p1114_p10)
}
  0x1c   :  { %s1118_s18 = scalar_lea.vmem %s42_s29, 4096  ;;  %p1123_p12 = scmp.lt.s32.totalorder %s42_s29, %s42_s29 }
  0x1d   :  { %p1119_p11 = scmp.ne.s32.totalorder %s42_s29, %s1118_s18  ;;  %p1124_p13 = scmp.lt.s32.totalorder %s1118_s18, %s1118_s18 }
  0x1f   :  { %p1125_p0 = por %p1124_p13, %p1123_p12 }
  0x21   :  { %p1126_p1 = pnand %p1125_p0, %p1119_p11 }
  0x23   :  { %1129 = shalt.err (!%p1126_p1)
}
  0x24   :  { %s1138_s1 = smov 64   ;;  %s1139_s16 = smov 4  }
  0x25   :  { %47 = dma.hbm_to_vmem [thread:$0]  %s1262_s3, 4096, %s42_s29, [#allocation6], %s1138_s1, %s1138_s1, %s1139_s16  }
  0x26   :  { %1130 = dma.done.wait [#allocation4], 4096  }
  0x27   :  { %1131 = vsyncadd [#allocation4], 4294963200 }
  0x28   :  { %1132 = dma.done.wait [#allocation6], 4096  }
  0x29   :  { %1133 = vsyncadd [#allocation6], 4294963200  ;;  %v1140_v1 = vmov 0   ;;  %v986_v2 = vld [vmem:[#allocation3 + $0x4] ss:$16 sps:$4 sm:$0xff]   ;;  %v1038_v41 = vld [vmem:[#allocation5 + $0x48] sm:$0xff]  }
  0x2a   :  { %314 = vmatprep.mubr.bf16.mxu0 %v1140_v1  ;;  %357 = vmatprep.mubr.bf16.mxu1 %v1140_v1  ;;  %v988_v3 = vld [vmem:[#allocation3 + $0xc] ss:$16 sps:$4 sm:$0xff]   ;;  %v990_v4 = vld [vmem:[#allocation3] ss:$16 sps:$4 sm:$0xff]   ;;  %v991_v5 = vld [vmem:[#allocation3 + $0x8] ss:$16 sps:$4 sm:$0xff]  }
  0x2b   :  { %282 = vmatprep.subr.bf16.mxu0 %v986_v2  ;;  %325 = vmatprep.subr.bf16.mxu1 %v988_v3  ;;  %v992_v6 = vld [vmem:[#allocation3 + $0x24] ss:$16 sps:$4 sm:$0xff]   ;;  %v994_v7 = vld [vmem:[#allocation3 + $0x2c] ss:$16 sps:$4 sm:$0xff]   ;;  %v996_v8 = vld [vmem:[#allocation3 + $0x20] ss:$16 sps:$4 sm:$0xff]  }
  0x2c   :  { %283 = vmatpush1.bf16.msra.mxu0 %v990_v4  ;;  %326 = vmatpush1.bf16.msra.mxu1 %v991_v5  ;;  %v997_v9 = vld [vmem:[#allocation3 + $0x28] ss:$16 sps:$4 sm:$0xff]   ;;  %v998_v10 = vld [vmem:[#allocation3 + $0x44] ss:$16 sps:$4 sm:$0xff]   ;;  %v1000_v11 = vld [vmem:[#allocation3 + $0x4c] ss:$16 sps:$4 sm:$0xff]   ;;  %v102_v5 = vlaneseq }
  0x2d   :  { %284 = vmatprep.subr.bf16.mxu0 %v992_v6  ;;  %327 = vmatprep.subr.bf16.mxu1 %v994_v7  ;;  %v1002_v12 = vld [vmem:[#allocation3 + $0x40] ss:$16 sps:$4 sm:$0xff]   ;;  %v1003_v13 = vld [vmem:[#allocation3 + $0x48] ss:$16 sps:$4 sm:$0xff]   ;;  %v1004_v14 = vld [vmem:[#allocation3 + $0x64] ss:$16 sps:$4 sm:$0xff]  }
  0x2e   :  { %v1006_v15 = vld [vmem:[#allocation3 + $0x6c] ss:$16 sps:$4 sm:$0xff]   ;;  %v1008_v16 = vld [vmem:[#allocation3 + $0x60] ss:$16 sps:$4 sm:$0xff]   ;;  %v1009_v17 = vld [vmem:[#allocation3 + $0x68] ss:$16 sps:$4 sm:$0xff]  }
  0x2f   :  { %v1010_v18 = vld [vmem:[#allocation3 + $0x84] ss:$16 sps:$4 sm:$0xff]   ;;  %v1012_v19 = vld [vmem:[#allocation3 + $0x8c] ss:$16 sps:$4 sm:$0xff]   ;;  %v1014_v20 = vld [vmem:[#allocation3 + $0x80] ss:$16 sps:$4 sm:$0xff]  }
  0x30   :  { %285 = vmatpush1.bf16.msra.mxu0 %v996_v8  ;;  %328 = vmatpush1.bf16.msra.mxu1 %v997_v9  ;;  %v1015_v21 = vld [vmem:[#allocation3 + $0x88] ss:$16 sps:$4 sm:$0xff]   ;;  %v1016_v22 = vld [vmem:[#allocation3 + $0xa4] ss:$16 sps:$4 sm:$0xff]   ;;  %v1018_v23 = vld [vmem:[#allocation3 + $0xac] ss:$16 sps:$4 sm:$0xff]  }
  0x31   :  { %286 = vmatprep.subr.bf16.mxu0 %v998_v10  ;;  %329 = vmatprep.subr.bf16.mxu1 %v1000_v11  ;;  %v1020_v24 = vld [vmem:[#allocation3 + $0xa0] ss:$16 sps:$4 sm:$0xff]   ;;  %v1021_v25 = vld [vmem:[#allocation3 + $0xa8] ss:$16 sps:$4 sm:$0xff]   ;;  %v1022_v26 = vld [vmem:[#allocation3 + $0xc4] ss:$16 sps:$4 sm:$0xff]  }
  0x32   :  { %v1024_v27 = vld [vmem:[#allocation3 + $0xcc] ss:$16 sps:$4 sm:$0xff]   ;;  %v1026_v28 = vld [vmem:[#allocation3 + $0xc0] ss:$16 sps:$4 sm:$0xff]   ;;  %v1027_v29 = vld [vmem:[#allocation3 + $0xc8] ss:$16 sps:$4 sm:$0xff]  }
  0x33   :  { %v1028_v30 = vld [vmem:[#allocation3 + $0xe4] ss:$16 sps:$4 sm:$0xff]   ;;  %v1030_v31 = vld [vmem:[#allocation3 + $0xec] ss:$16 sps:$4 sm:$0xff]   ;;  %v1032_v32 = vld [vmem:[#allocation3 + $0xe0] ss:$16 sps:$4 sm:$0xff]  }
  0x34   :  { %287 = vmatpush1.bf16.msra.mxu0 %v1002_v12  ;;  %330 = vmatpush1.bf16.msra.mxu1 %v1003_v13  ;;  %v1033_v33 = vld [vmem:[#allocation3 + $0xe8] ss:$16 sps:$4 sm:$0xff]   ;;  %v65_v34 = vld [vmem:[%s1259_s0] sm:$0xff]  ;;  %v1042_v45 = vld [vmem:[#allocation5 + $0x50] sm:$0xff]   ;;  %v103_v6 = vshrl.u32 %v102_v5, 7  ;;  %vm810_vm0 = vcmask 7168  }
  0x35   :  { %288 = vmatprep.subr.bf16.mxu0 %v1004_v14  ;;  %331 = vmatprep.subr.bf16.mxu1 %v1006_v15  ;;  %v66_v35 = vld [vmem:[%s1259_s0 + $0x8] sm:$0xff]  ;;  %v1043_v46 = vld [vmem:[#allocation5 + $0xd0] sm:$0xff]   ;;  %v1046_v49 = vld [vmem:[#allocation5 + $0x58] sm:$0xff]  }
  0x36   :  { %v1034_v36 = vld [vmem:[#allocation5 + $0x40] sm:$0xff]   ;;  %v67_v40 = vpack.c.bf16 %v66_v35, %v65_v34  ;;  %v1039_v42 = vld [vmem:[#allocation5 + $0xc8] sm:$0xff]   ;;  %v1044_v47 = vld [vmem:[#allocation5 + $0x10] sm:$0xff]   ;;  %v104_v7 = vsub.s32 0, %v103_v6  ;;  %v112_v8 = vsub.s32 2, %v103_v6  ;;  %v108_v10 = vsub.s32 1, %v103_v6 }
  0x37   :  { %v1035_v37 = vld [vmem:[#allocation5 + $0xc0] sm:$0xff]   ;;  %v1040_v43 = vld [vmem:[#allocation5 + $0x8] sm:$0xff]   ;;  %v1045_v48 = vld [vmem:[#allocation5 + $0x90] sm:$0xff]   ;;  %v116_v11 = vsub.s32 3, %v103_v6 }
  0x38   :  { %289 = vmatpush1.bf16.msra.mxu0 %v1008_v16  ;;  %332 = vmatpush1.bf16.msra.mxu1 %v1009_v17  ;;  %v1036_v38 = vld [vmem:[#allocation5] sm:$0xff]   ;;  %v1041_v44 = vld [vmem:[#allocation5 + $0x88] sm:$0xff]   ;;  %v1047_v50 = vld [vmem:[#allocation5 + $0xd8] sm:$0xff]  }
  0x39   :  { %290 = vmatprep.subr.bf16.mxu0 %v1010_v18  ;;  %333 = vmatprep.subr.bf16.mxu1 %v1012_v19  ;;  %v1037_v39 = vld [vmem:[#allocation5 + $0x80] sm:$0xff]   ;;  %v1048_v51 = vld [vmem:[#allocation5 + $0x18] sm:$0xff]   ;;  %v1054_v57 = vld [vmem:[#allocation5 + $0x68] sm:$0xff]  }
  0x3a   :  { %v1049_v52 = vld [vmem:[#allocation5 + $0x98] sm:$0xff]   ;;  %v1050_v53 = vld [vmem:[#allocation5 + $0x60] sm:$0xff]   ;;  %v1055_v58 = vld [vmem:[#allocation5 + $0xe8] sm:$0xff]  }
  0x3b   :  { %v1051_v54 = vld [vmem:[#allocation5 + $0xe0] sm:$0xff]   ;;  %v1056_v59 = vld [vmem:[#allocation5 + $0x28] sm:$0xff]   ;;  %v1058_v61 = vld [vmem:[#allocation5 + $0x70] sm:$0xff]  }
  0x3c   :  { %291 = vmatpush1.bf16.msra.mxu0 %v1014_v20  ;;  %334 = vmatpush1.bf16.msra.mxu1 %v1015_v21  ;;  %v1052_v55 = vld [vmem:[#allocation5 + $0x20] sm:$0xff]   ;;  %v1057_v60 = vld [vmem:[#allocation5 + $0xa8] sm:$0xff]   ;;  %v1059_v62 = vld [vmem:[#allocation5 + $0xf0] sm:$0xff]  }
  0x3d   :  { %292 = vmatprep.subr.bf16.mxu0 %v1016_v22  ;;  %335 = vmatprep.subr.bf16.mxu1 %v1018_v23  ;;  %v1053_v56 = vld [vmem:[#allocation5 + $0xa0] sm:$0xff]   ;;  %v1060_v63 = vld [vmem:[#allocation5 + $0x30] sm:$0xff]   ;;  %v1062_v1 = vld [vmem:[#allocation5 + $0x78] sm:$0xff]  }
  0x3e   :  { %v1061_v0 = vld [vmem:[#allocation5 + $0xb0] sm:$0xff]   ;;  %v1063_v2 = vld [vmem:[#allocation5 + $0xf8] sm:$0xff]  }
  0x3f   :  { %v1064_v3 = vld [vmem:[#allocation5 + $0x38] sm:$0xff]  }
  0x40   :  { %293 = vmatpush1.bf16.msra.mxu0 %v1020_v24  ;;  %336 = vmatpush1.bf16.msra.mxu1 %v1021_v25  ;;  %v1065_v4 = vld [vmem:[#allocation5 + $0xb8] sm:$0xff]  }
  0x41   :  { %294 = vmatprep.subr.bf16.mxu0 %v1022_v26  ;;  %337 = vmatprep.subr.bf16.mxu1 %v1024_v27  ;;  %v100_v9 = vld [vmem:[%s1261_s2] sm:$0xf] }
  0x42   :  { %v105_v12 = vrot.slane %v100_v9, %v104_v7  ;;  %v113_v13 = vrot.slane %v100_v9, %v112_v8  ;;  %v109_v14 = vrot.slane %v100_v9, %v108_v10  ;;  %v117_v15 = vrot.slane %v100_v9, %v116_v11 }
  0x44   :  { %295 = vmatpush1.bf16.msra.mxu0 %v1026_v28  ;;  %338 = vmatpush1.bf16.msra.mxu1 %v1027_v29 }
  0x45   :  { %296 = vmatprep.subr.bf16.mxu0 %v1028_v30  ;;  %339 = vmatprep.subr.bf16.mxu1 %v1030_v31 }
  0x48   :  { %297 = vmatpush1.bf16.msra.mxu0 %v1032_v32  ;;  %340 = vmatpush1.bf16.msra.mxu1 %v1033_v33 }
  0x49   :  { %934 = vmatprep.subr.bf16.mxu0 %v1034_v36  ;;  %956 = vmatprep.subr.bf16.mxu1 %v1035_v37 }
  0x4b   :  { %315 = vmatmul.mubr.bf16.vlgmr.msra.gmra.mrb[0].mxu0 %v67_v40  ;;  %358 = vmatmul.mubr.bf16.vlgmr.msra.gmra.mrb[0].mxu1 %v67_v40  ;;  %v757_v40 = vld [vmem:[%s1263_s4] sm:$0xf] }
  0x4c   :  { %935 = vmatpush3.bf16.msra.mxu0 %v1036_v38  ;;  %957 = vmatpush3.bf16.msra.mxu1 %v1037_v39 }
  0x4d   :  { %936 = vmatprep.subr.bf16.mxu0 %v1038_v41  ;;  %958 = vmatprep.subr.bf16.mxu1 %v1039_v42 }
  0x50   :  { %937 = vmatpush3.bf16.msra.mxu0 %v1040_v43  ;;  %959 = vmatpush3.bf16.msra.mxu1 %v1041_v44 }
  0x51   :  { %938 = vmatprep.subr.bf16.mxu0 %v1042_v45  ;;  %960 = vmatprep.subr.bf16.mxu1 %v1043_v46  ;;  %v762_v45 = vrot.slane %v757_v40, %v104_v7 }
  0x54   :  { %939 = vmatpush3.bf16.msra.mxu0 %v1044_v47  ;;  %961 = vmatpush3.bf16.msra.mxu1 %v1045_v48 }
  0x55   :  { %940 = vmatprep.subr.bf16.mxu0 %v1046_v49  ;;  %962 = vmatprep.subr.bf16.mxu1 %v1047_v50  ;;  %v770_v49 = vrot.slane %v757_v40, %v112_v8 }
  0x58   :  { %941 = vmatpush3.bf16.msra.mxu0 %v1048_v51  ;;  %963 = vmatpush3.bf16.msra.mxu1 %v1049_v52 }
  0x59   :  { %942 = vmatprep.subr.bf16.mxu0 %v1050_v53  ;;  %964 = vmatprep.subr.bf16.mxu1 %v1051_v54  ;;  %v766_v54 = vrot.slane %v757_v40, %v108_v10 }
  0x5c   :  { %943 = vmatpush3.bf16.msra.mxu0 %v1052_v55  ;;  %965 = vmatpush3.bf16.msra.mxu1 %v1053_v56 }
  0x5d   :  { %944 = vmatprep.subr.bf16.mxu0 %v1054_v57  ;;  %966 = vmatprep.subr.bf16.mxu1 %v1055_v58 }
  0x60   :  { %945 = vmatpush3.bf16.msra.mxu0 %v1056_v59  ;;  %967 = vmatpush3.bf16.msra.mxu1 %v1057_v60  ;;  %v774_v59 = vrot.slane %v757_v40, %v116_v11 }
  0x61   :  { %946 = vmatprep.subr.bf16.mxu0 %v1058_v61  ;;  %968 = vmatprep.subr.bf16.mxu1 %v1059_v62 }
  0x64   :  { %947 = vmatpush3.bf16.msra.mxu0 %v1060_v63  ;;  %969 = vmatpush3.bf16.msra.mxu1 %v1061_v0 }
  0x65   :  { %948 = vmatprep.subr.bf16.mxu0 %v1062_v1  ;;  %970 = vmatprep.subr.bf16.mxu1 %v1063_v2 }
  0x68   :  { %949 = vmatpush3.bf16.msra.mxu0 %v1064_v3  ;;  %971 = vmatpush3.bf16.msra.mxu1 %v1065_v4 }
 0x11e   :  { %v316_v16 = vpop.f32.mrb[0].mxu0  ;;  %v359_v17 = vpop.f32.mrb[0].mxu1 }
 0x11f   :  { %v317_v18 = vadd.f32 %v316_v16, %v105_v12  ;;  %v360_v19 = vadd.f32 %v359_v17, %v113_v13  ;;  %v318_v20 = vpop.f32.mrb[1].mxu0  ;;  %v361_v21 = vpop.f32.mrb[1].mxu1 }
 0x120   :  { %v319_v22 = vadd.f32 %v318_v20, %v109_v14  ;;  %v362_v23 = vadd.f32 %v361_v21, %v117_v15  ;;  %v320_v24 = vpop.f32.mrb[2].mxu0  ;;  %v363_v25 = vpop.f32.mrb[2].mxu1 }
 0x121   :  { %v376_v26 = vmul.f32 0.70710677, %v317_v18  ;;  %v378_v27 = vmul.f32 0.70710677, %v360_v19  ;;  %v321_v30 = vadd.f32 %v320_v24, %v105_v12  ;;  %v364_v31 = vadd.f32 %v363_v25, %v113_v13  ;;  %v322_v32 = vpop.f32.mrb[3].mxu0  ;;  %v365_v33 = vpop.f32.mrb[3].mxu1 }
 0x122   :  { %v377_v28 = vmul.f32 0.70710677, %v319_v22  ;;  %v379_v29 = vmul.f32 0.70710677, %v362_v23  ;;  %v323_v34 = vadd.f32 %v322_v32, %v109_v14  ;;  %v366_v35 = vadd.f32 %v365_v33, %v117_v15  ;;  %v898_v33 = vld [vmem:[%s1264_s5] ss:$0 sm:$0xff] }
 0x123   :  { %1066 = verf.f32 %v376_v26  ;;  %v380_v36 = vmul.f32 0.70710677, %v321_v30  ;;  %v382_v37 = vmul.f32 0.70710677, %v364_v31  ;;  %v368_v43 = vmul.f32 0.5, %v317_v18 }
 0x124   :  { %1068 = verf.f32 %v378_v27  ;;  %v381_v38 = vmul.f32 0.70710677, %v323_v34  ;;  %v383_v39 = vmul.f32 0.70710677, %v366_v35  ;;  %v370_v47 = vmul.f32 0.5, %v360_v19 }
 0x125   :  { %1070 = verf.f32 %v377_v28  ;;  %v369_v52 = vmul.f32 0.5, %v319_v22  ;;  %v371_v57 = vmul.f32 0.5, %v362_v23  ;;  %v372_v63 = vmul.f32 0.5, %v321_v30 }
 0x126   :  { %1072 = verf.f32 %v379_v29  ;;  %v374_v3 = vmul.f32 0.5, %v364_v31  ;;  %v373_v9 = vmul.f32 0.5, %v323_v34  ;;  %v375_v13 = vmul.f32 0.5, %v366_v35 }
 0x127   :  { %1074 = verf.f32 %v380_v36 }
 0x128   :  { %1076 = verf.f32 %v382_v37 }
 0x129   :  { %1078 = verf.f32 %v381_v38 }
 0x12a   :  { %1080 = verf.f32 %v383_v39 }
 0x12d   :  { %v1067_v41 = vpop.eup %1066 }
 0x12e   :  { %v1069_v42 = vpop.eup %1068  ;;  %v392_v44 = vadd.f32 1.0, %v1067_v41 }
 0x12f   :  { %v1071_v46 = vpop.eup %1070  ;;  %v394_v48 = vadd.f32 1.0, %v1069_v42 }
 0x130   :  { %v1073_v50 = vpop.eup %1072  ;;  %v400_v51 = vmul.f32 %v392_v44, %v368_v43  ;;  %v393_v53 = vadd.f32 1.0, %v1071_v46 }
 0x131   :  { %v1075_v55 = vpop.eup %1074  ;;  %v402_v56 = vmul.f32 %v394_v48, %v370_v47  ;;  %v395_v58 = vadd.f32 1.0, %v1073_v50 }
 0x132   :  { %v1077_v60 = vpop.eup %1076  ;;  %v779_v61 = vmul.f32 %v762_v45, %v400_v51  ;;  %v401_v62 = vmul.f32 %v393_v53, %v369_v52  ;;  %v396_v0 = vadd.f32 1.0, %v1075_v55 }
 0x133   :  { %v1079_v1 = vpop.eup %1078  ;;  %v403_v2 = vmul.f32 %v395_v58, %v371_v57  ;;  %v398_v4 = vadd.f32 1.0, %v1077_v60  ;;  %v781_v5 = vmul.f32 %v770_v49, %v402_v56 }
 0x134   :  { %v1081_v6 = vpop.eup %1080  ;;  %v780_v7 = vmul.f32 %v766_v54, %v401_v62  ;;  %v404_v8 = vmul.f32 %v396_v0, %v372_v63  ;;  %v397_v10 = vadd.f32 1.0, %v1079_v1 }
 0x135   :  { %v406_v12 = vmul.f32 %v398_v4, %v374_v3  ;;  %v399_v14 = vadd.f32 1.0, %v1081_v6  ;;  %v782_v15 = vmul.f32 %v774_v59, %v403_v2 }
 0x136   :  { %v408_v11 = vpack.c.bf16 %v404_v8, %v400_v51  ;;  %v783_v16 = vmul.f32 %v762_v45, %v404_v8  ;;  %v405_v17 = vmul.f32 %v397_v10, %v373_v9  ;;  %v787_v18 = vadd.f32 %v780_v7, %v779_v61  ;;  %v932_v7 = vld [vmem:[%s1266_s7] ss:$0 sm:$0xff] }
 0x137   :  { %v410_v19 = vpack.c.bf16 %v406_v12, %v402_v56  ;;  %v407_v20 = vmul.f32 %v399_v14, %v375_v13  ;;  %v785_v21 = vmul.f32 %v770_v49, %v406_v12  ;;  %v933_v9 = vld [vmem:[%s1267_s8] ss:$0 sm:$0xff] }
 0x138   :  { %v784_v22 = vmul.f32 %v766_v54, %v405_v17  ;;  %v409_v23 = vpack.c.bf16 %v405_v17, %v401_v62  ;;  %v788_v24 = vadd.f32 %v787_v18, %v781_v5  ;;  %v931_v54 = vld [vmem:[#allocation2] ss:$0 sm:$0xff] }
 0x139   :  { %v411_v25 = vpack.c.bf16 %v407_v20, %v403_v2  ;;  %v786_v26 = vmul.f32 %v774_v59, %v407_v20  ;;  %v1141_v59 = vmov 0.0  }
 0x13a   :  { %707 = vmatprep.mubr.bf16.mxu0 %v409_v23  ;;  %v789_v27 = vadd.f32 %v788_v24, %v782_v15  ;;  %v792_v28 = vadd.f32 %v784_v22, %v783_v16 }
 0x13b   :  { %748 = vmatprep.mubr.bf16.mxu1 %v411_v25  ;;  %708 = vmatmul.mubr.bf16.vlgmr.msra.gmra.mrb[4].mxu0 %v408_v11 }
 0x13c   :  { %749 = vmatmul.mubr.bf16.vlgmr.msra.gmra.mrb[4].mxu1 %v410_v19  ;;  %v793_v29 = vadd.f32 %v792_v28, %v785_v21 }
 0x13e   :  { %v794_v30 = vadd.f32 %v793_v29, %v786_v26 }
 0x20e   :  { %v950_v31 = vpop.f32.mrb[4].mxu0 }
 0x20f   :  { %v972_v32 = vpop.f32.mrb[4].mxu1  ;;  %v951_v34 = vpop.f32.mrb[5].mxu0 }
 0x210   :  { %v952_v35 = vadd.f32 %v951_v34, %v950_v31  ;;  %v973_v36 = vpop.f32.mrb[5].mxu1  ;;  %v953_v37 = vpop.f32.mrb[6].mxu0 }
 0x211   :  { %v974_v38 = vadd.f32 %v973_v36, %v972_v32  ;;  %v975_v39 = vpop.f32.mrb[6].mxu1  ;;  %v954_v40 = vpop.f32.mrb[7].mxu0 }
 0x212   :  { %v710_v41 = vadd.f32 %v952_v35, %v898_v33  ;;  %v955_v42 = vadd.f32 %v954_v40, %v953_v37  ;;  %v976_v43 = vpop.f32.mrb[7].mxu1 }
 0x213   :  { %v977_v44 = vadd.f32 %v976_v43, %v975_v39 }
 0x214   :  { %v713_v45 = vadd.f32 %v955_v42, %v898_v33  ;;  %v751_v46 = vadd.f32 %v974_v38, %v710_v41 }
 0x216   :  { %813 = vadd.xlane.f32.xlu0 %v751_v46  ;;  %v754_v47 = vadd.f32 %v977_v44, %v713_v45 }
 0x21a   :  { %815 = vadd.xlane.f32.xlu0 %v754_v47 }
 0x21e   :  { %790 = vadd.xlane.f32.xlu0 %v789_v27 }
 0x2a3   :  { %v814_v48 = vpop.xlane.xlu0 %813 }
 0x2a4   :  { %v818_v49 = vmul.f32 0.0078125, %v814_v48 }
 0x2a6   :  { %v820_v50 = vsub.f32 %v751_v46, %v818_v49 }
 0x2a7   :  { %v816_v51 = vpop.xlane.xlu0 %815 }
 0x2a8   :  { %v819_v52 = vmul.f32 0.0078125, %v816_v51  ;;  %v822_v53 = vmul.f32 %v820_v50, %v820_v50 }
 0x2aa   :  { %v821_v55 = vsub.f32 %v754_v47, %v819_v52  ;;  %824 = vadd.xlane.f32.xlu1 %v822_v53 }
 0x2ab   :  { %v791_v56 = vpop.xlane.xlu0 %790 }
 0x2ac   :  { %v804_v57 = vadd.f32 %v931_v54, %v791_v56  ;;  %v823_v58 = vmul.f32 %v821_v55, %v821_v55 }
 0x2ae   :  { %vm806_vm1 = vcmp.eq.f32.partialorder %v804_v57, -1.0  ;;  %826 = vadd.xlane.f32.xlu1 %v823_v58 }
 0x2af   :  { %v808_v60 = vsel %vm806_vm1, -1e+30, %v1141_v59 }
 0x2b0   :  { %811 = vst.msk [vmem:[%s1269_s10] sm:$0xff] %vm810_vm0, %v808_v60 }
 0x2b2   :  { %795 = vadd.xlane.f32.xlu1 %v794_v30 }
 0x337   :  { %v825_v61 = vpop.xlane.xlu1 %824 }
 0x338   :  { %v828_v62 = vmul.f32 0.0078125, %v825_v61 }
 0x33a   :  { %v830_v63 = vadd.f32 1e-05, %v828_v62 }
 0x33b   :  { %v827_v0 = vpop.xlane.xlu1 %826 }
 0x33c   :  { %1082 = vrsqrt.f32 %v830_v63  ;;  %v829_v1 = vmul.f32 0.0078125, %v827_v0 }
 0x33e   :  { %v831_v2 = vadd.f32 1e-05, %v829_v1 }
 0x33f   :  { %v796_v3 = vpop.xlane.xlu1 %795 }
 0x340   :  { %1084 = vrsqrt.f32 %v831_v2  ;;  %v805_v4 = vadd.f32 %v931_v54, %v796_v3 }
 0x342   :  { %vm807_vm2 = vcmp.eq.f32.partialorder %v805_v4, -1.0 }
 0x343   :  { %v809_v5 = vsel %vm807_vm2, -1e+30, %v1141_v59 }
 0x344   :  { %812 = vst.msk [vmem:[%s1269_s10 + $0x8] sm:$0xff] %vm810_vm0, %v809_v5 }
 0x346   :  { %v1083_v6 = vpop.eup %1082 }
 0x347   :  { %v834_v8 = vmul.f32 %v1083_v6, %v820_v50 }
 0x349   :  { %v843_v10 = vmul.f32 %v932_v7, %v834_v8 }
 0x34a   :  { %v1085_v12 = vpop.eup %1084 }
 0x34b   :  { %v852_v13 = vadd.f32 %v933_v9, %v843_v10  ;;  %v835_v14 = vmul.f32 %v1085_v12, %v821_v55 }
 0x34d   :  { %854 = vst [vmem:[%s1268_s9] sm:$0xff] %v852_v13  ;;  %v844_v15 = vmul.f32 %v932_v7, %v835_v14 }
 0x34f   :  { %v853_v11 = vadd.f32 %v933_v9, %v844_v15 }
 0x351   :  { %855 = vst [vmem:[%s1268_s9 + $0x8] sm:$0xff] %v853_v11 }
 0x352   :  { %864 = vsyncpa [#allocation4], 1 }
 0x353   :  { %865 = vsyncpa [#allocation6], 1 }

// kernel: network_forward.5
= control target key start
LH: loop header
LB: loop body
LE: loop exit
PB: predicated region body
PF: predicated region fallthrough
CT: control target
= control target key end

     0   :  { %v2240_v1 = vmov 0   ;;  %v2241_v2 = vmov 0.0   ;;  %vm2242_vm0 = vmmov 0   ;;  %v87_v29 = vlaneseq  ;;  %s2243_s20 = smov 96   ;;  %s2245_s21 = smov 32   ;;  %s2788_s2 = inlined_call_operand.vmem [shape: bf16[128,384], index: 2, kind: input, shape index: {}]   ;;  %s2789_s0 = inlined_call_operand.vmem [shape: f32[2,8,128], index: 0, kind: input, shape index: {}]   ;;  %s2790_s3 = inlined_call_operand.vmem [shape: f32[1,384], index: 3, kind: input, shape index: {}]   ;;  %s2791_s1 = inlined_call_operand.vmem [shape: f32[2,1,8], index: 1, kind: input, shape index: {}]   ;;  %s2792_s4 = inlined_call_operand.vmem [shape: bf16[128,128], index: 4, kind: input, shape index: {}]   ;;  %s2793_s5 = inlined_call_operand.vmem [shape: f32[1,128], index: 5, kind: input, shape index: {}]   ;;  %s2794_s8 = inlined_call_operand.vmem [shape: bf16[128,256], index: 8, kind: input, shape index: {}]   ;;  %s2795_s10 = inlined_call_operand.vmem [shape: bf16[256,128], index: 10, kind: input, shape index: {}]   ;;  %s2796_s6 = inlined_call_operand.vmem [shape: f32[1,128], index: 6, kind: input, shape index: {}]   ;;  %s2797_s7 = inlined_call_operand.vmem [shape: f32[1,128], index: 7, kind: input, shape index: {}]   ;;  %s2798_s9 = inlined_call_operand.vmem [shape: f32[1,256], index: 9, kind: input, shape index: {}]   ;;  %s2799_s11 = inlined_call_operand.vmem [shape: f32[1,128], index: 11, kind: input, shape index: {}]   ;;  %s2800_s12 = inlined_call_operand.vmem [shape: f32[1,128], index: 12, kind: input, shape index: {}]   ;;  %s2801_s13 = inlined_call_operand.vmem [shape: f32[1,128], index: 13, kind: input, shape index: {}]   ;;  %s2802_s14 = inlined_call_operand.vmem [shape: f32[2,8,128], index: 14, kind: output, shape index: {}]  }
   0x1   :  { %v2112_v0 = vld [vmem:[%s2788_s2 + $0x4] ss:$12 sps:$4 sm:$0xff]   ;;  %262 = vmatprep.mubr.bf16.mxu0 %v2240_v1  ;;  %1955 = vmatprep.subr.bf16.mxu1 %v2241_v2  ;;  %v2114_v3 = vld [vmem:[%s2788_s2] ss:$12 sps:$4 sm:$0xff]   ;;  %v2115_v4 = vld [vmem:[%s2788_s2 + $0x1c] ss:$12 sps:$4 sm:$0xff]  }
   0x2   :  { %230 = vmatprep.subr.bf16.mxu0 %v2112_v0  ;;  %v2117_v5 = vld [vmem:[%s2788_s2 + $0x18] ss:$12 sps:$4 sm:$0xff]   ;;  %v2118_v6 = vld [vmem:[%s2788_s2 + $0x34] ss:$12 sps:$4 sm:$0xff]   ;;  %v2120_v7 = vld [vmem:[%s2788_s2 + $0x30] ss:$12 sps:$4 sm:$0xff]   ;;  %1971 = vmatprep.mubr.msk.bf16.mxu1 %vm2242_vm0, %v2241_v2 }
   0x3   :  { %231 = vmatpush1.bf16.msra.mxu0 %v2114_v3  ;;  %v2121_v8 = vld [vmem:[%s2788_s2 + $0x4c] ss:$12 sps:$4 sm:$0xff]   ;;  %v2123_v9 = vld [vmem:[%s2788_s2 + $0x48] ss:$12 sps:$4 sm:$0xff]   ;;  %v2124_v10 = vld [vmem:[%s2788_s2 + $0x64] ss:$12 sps:$4 sm:$0xff]  }
   0x4   :  { %232 = vmatprep.subr.bf16.mxu0 %v2115_v4  ;;  %v2136_v11 = vld [vmem:[%s2788_s2 + $0x8] ss:$12 sps:$4 sm:$0xff]   ;;  %v2137_v12 = vld [vmem:[%s2788_s2 + $0x20] ss:$12 sps:$4 sm:$0xff]   ;;  %v2138_v15 = vld [vmem:[%s2788_s2 + $0x38] ss:$12 sps:$4 sm:$0xff]  }
   0x5   :  { %1956 = vmatpush3.bf16.msra.mxu1 %v2136_v11  ;;  %v2126_v13 = vld [vmem:[%s2788_s2 + $0x60] ss:$12 sps:$4 sm:$0xff]   ;;  %v2127_v14 = vld [vmem:[%s2788_s2 + $0x7c] ss:$12 sps:$4 sm:$0xff]   ;;  %v2129_v16 = vld [vmem:[%s2788_s2 + $0x78] ss:$12 sps:$4 sm:$0xff]  }
   0x6   :  { %1957 = vmatprep.subr.bf16.mxu1 %v2241_v2  ;;  %v2130_v17 = vld [vmem:[%s2788_s2 + $0x94] ss:$12 sps:$4 sm:$0xff]   ;;  %v2139_v18 = vld [vmem:[%s2788_s2 + $0x50] ss:$12 sps:$4 sm:$0xff]   ;;  %v2133_v20 = vld [vmem:[%s2788_s2 + $0xac] ss:$12 sps:$4 sm:$0xff]  }
   0x7   :  { %233 = vmatpush1.bf16.msra.mxu0 %v2117_v5  ;;  %v2132_v19 = vld [vmem:[%s2788_s2 + $0x90] ss:$12 sps:$4 sm:$0xff]   ;;  %v2140_v21 = vld [vmem:[%s2788_s2 + $0x68] ss:$12 sps:$4 sm:$0xff]   ;;  %v2392_v23 = vld [vmem:[%s2789_s0] sm:$0xff]  ;;  %v2422_v30 = vshrl.u32 %v87_v29, 7 }
   0x8   :  { %234 = vmatprep.subr.bf16.mxu0 %v2118_v6  ;;  %v2135_v22 = vld [vmem:[%s2788_s2 + $0xa8] ss:$12 sps:$4 sm:$0xff]   ;;  %v2141_v26 = vld [vmem:[%s2788_s2 + $0x80] ss:$12 sps:$4 sm:$0xff]   ;;  %v2142_v27 = vld [vmem:[%s2788_s2 + $0x98] ss:$12 sps:$4 sm:$0xff]  }
   0x9   :  { %1958 = vmatpush3.bf16.msra.mxu1 %v2137_v12  ;;  %v2397_v24 = vld [vmem:[%s2789_s0 + $0x8] sm:$0xff]  ;;  %v2143_v28 = vld [vmem:[%s2788_s2 + $0xb0] ss:$12 sps:$4 sm:$0xff]   ;;  %v93_v31 = vsub.s32 1, %v2422_v30  ;;  %v85_v32 = vld [vmem:[%s2790_s3] sm:$0x7] }
   0xa   :  { %1959 = vmatprep.subr.bf16.mxu1 %v2241_v2  ;;  %v52_v25 = vpack.c.bf16 %v2397_v24, %v2392_v23  ;;  %v89_v34 = vsub.s32 0, %v2422_v30  ;;  %vm332_vm1 = vcmask 261120   ;;  %v97_v50 = vsub.s32 2, %v2422_v30  ;;  %v2464_v60 = vld [vmem:[%s2791_s1] ss:$0 sm:$0xff] }
   0xb   :  { %235 = vmatpush1.bf16.msra.mxu0 %v2120_v7  ;;  %v94_v33 = vrot.slane %v85_v32, %v93_v31  ;;  %vm453_vm2 = vcmask 1043456   ;;  %vm425_vm3 = vcmask 64512   ;;  %v2471_v5 = vld [vmem:[%s2791_s1 + $0x1] ss:$0 sm:$0xff]  ;;  %s2244_s1 = smov 64   ;;  %vm1235_vm4 = vcmask 523264  }
   0xc   :  { %236 = vmatprep.subr.bf16.mxu0 %v2121_v8  ;;  %v90_v40 = vrot.slane %v85_v32, %v89_v34  ;;  %v98_v51 = vrot.slane %v85_v32, %v97_v50  ;;  %vm1238_vm5 = vcmask 785408  }
   0xd   :  { %1960 = vmatpush3.bf16.msra.mxu1 %v2138_v15 }
   0xe   :  { %1961 = vmatprep.subr.bf16.mxu1 %v2241_v2 }
   0xf   :  { %237 = vmatpush1.bf16.msra.mxu0 %v2123_v9 }
  0x10   :  { %238 = vmatprep.subr.bf16.mxu0 %v2124_v10 }
  0x11   :  { %1962 = vmatpush3.bf16.msra.mxu1 %v2139_v18 }
  0x12   :  { %1963 = vmatprep.subr.bf16.mxu1 %v2241_v2 }
  0x13   :  { %239 = vmatpush1.bf16.msra.mxu0 %v2126_v13 }
  0x14   :  { %240 = vmatprep.subr.bf16.mxu0 %v2127_v14 }
  0x15   :  { %1964 = vmatpush3.bf16.msra.mxu1 %v2140_v21 }
  0x16   :  { %1965 = vmatprep.subr.bf16.mxu1 %v2241_v2 }
  0x17   :  { %241 = vmatpush1.bf16.msra.mxu0 %v2129_v16 }
  0x18   :  { %242 = vmatprep.subr.bf16.mxu0 %v2130_v17 }
  0x19   :  { %1966 = vmatpush3.bf16.msra.mxu1 %v2141_v26 }
  0x1a   :  { %1967 = vmatprep.subr.bf16.mxu1 %v2241_v2 }
  0x1b   :  { %243 = vmatpush1.bf16.msra.mxu0 %v2132_v19 }
  0x1c   :  { %244 = vmatprep.subr.bf16.mxu0 %v2133_v20 }
  0x1d   :  { %1968 = vmatpush3.bf16.msra.mxu1 %v2142_v27 }
  0x1e   :  { %1969 = vmatprep.subr.bf16.mxu1 %v2241_v2 }
  0x1f   :  { %245 = vmatpush1.bf16.msra.mxu0 %v2135_v22 }
  0x20   :  { %1999 = vmatprep.subr.bf16.mxu0 %v2241_v2 }
  0x21   :  { %1970 = vmatpush3.bf16.msra.mxu1 %v2143_v28 }
  0x22   :  { %263 = vmatmul.mubr.bf16.vlgmr.msra.gmra.mrb[0].mxu0 %v52_v25  ;;  %1975 = vmatprep.subr.bf16.mxu1 %v2241_v2 }
  0x23   :  { %2001 = vmatprep.mubr.msk.bf16.mxu0 %vm2242_vm0, %v2241_v2 }
  0x24   :  { %1972 = vmatmul.mubr.bf16.vlgmr.msra.gmra.mrb[0].mxu1 %v52_v25 }
  0x25   :  { %1977 = vmatprep.mubr.msk.bf16.mxu1 %vm2242_vm0, %v2241_v2 }
  0xf5   :  { %v264_v35 = vpop.f32.mrb[0].mxu0 }
  0xf6   :  { %v266_v36 = vpop.f32.mrb[1].mxu0  ;;  %v265_v44 = vadd.f32 %v264_v35, %v90_v40 }
  0xf7   :  { %v267_v37 = vadd.f32 %v266_v36, %v94_v33  ;;  %v268_v38 = vpop.f32.mrb[2].mxu0  ;;  %v307_v52 = vpop.f32.mrb[0].mxu1 }
  0xf8   :  { %v270_v39 = vpop.f32.mrb[3].mxu0  ;;  %v2440_v46 = vpack.c.bf16 %v265_v44, %v265_v44  ;;  %v269_v48 = vadd.f32 %v268_v38, %v90_v40  ;;  %v308_v53 = vadd.f32 %v307_v52, %v98_v51  ;;  %v1973_v54 = vpop.f32.mrb[1].mxu1 }
  0xf9   :  { %v2433_v41 = vpack.c.bf16 %v267_v37, %v267_v37  ;;  %v271_v42 = vadd.f32 %v270_v39, %v94_v33  ;;  %v310_v55 = vpop.f32.mrb[2].mxu1 }
  0xfa   :  { %v2449_v49 = vpack.c.bf16 %v269_v48, %v269_v48  ;;  %v2456_v56 = vpack.c.bf16 %v308_v53, %v308_v53  ;;  %v311_v57 = vadd.f32 %v310_v55, %v98_v51  ;;  %v1974_v58 = vpop.f32.mrb[3].mxu1 }
  0xfb   :  { %v337_v43 = vsel %vm332_vm1, %v2433_v41, 0  ;;  %v2438_v45 = vpack.c.bf16 %v271_v42, %v271_v42 }
  0xfc   :  { %1976 = vmatpush3.bf16.xpose.msra.mxu1 %v337_v43  ;;  %v455_v59 = vsel %vm453_vm2, %v2456_v56, 0  ;;  %v2487_v28 = vpack.c.bf16 %v311_v57, %v311_v57 }
  0xfd   :  { %1981 = vmatprep.subr.bf16.mxu1 %v2241_v2  ;;  %v383_v47 = vsel %vm332_vm1, %v2438_v45, 0 }
  0xfe   :  { %v501_v33 = vsel %vm453_vm2, %v2487_v28, 0 }
 0x103   :  { %1978 = vmatmul.mubr.msk.bf16.vlgmr.msra.gmra.mrb[4].mxu1 %vm332_vm1, %v2440_v46 }
 0x104   :  { %1982 = vmatpush3.bf16.xpose.msra.mxu1 %v383_v47  ;;  %1983 = vmatprep.mubr.msk.bf16.mxu1 %vm2242_vm0, %v2241_v2 }
 0x105   :  { %1987 = vmatprep.subr.bf16.mxu1 %v2241_v2 }
 0x10b   :  { %1984 = vmatmul.mubr.msk.bf16.vlgmr.msra.gmra.mrb[8].mxu1 %vm332_vm1, %v2449_v49 }
 0x10c   :  { %1989 = vmatprep.mubr.msk.bf16.mxu1 %vm2242_vm0, %v2241_v2  ;;  %1988 = vmatpush3.bf16.msra.mxu1 %v455_v59 }
 0x10d   :  { %1993 = vmatprep.subr.bf16.mxu1 %v2241_v2 }
 0x1d6   :  { %v373_v61 = vpop.f32.mrb[4].mxu1 }
 0x1d7   :  { %v374_v62 = vadd.f32 %v2464_v60, %v373_v61  ;;  %v1979_v63 = vpop.f32.mrb[5].mxu1 }
 0x1d8   :  { %v376_v0 = vpop.f32.mrb[6].mxu1 }
 0x1d9   :  { %v1980_v3 = vpop.f32.mrb[7].mxu1  ;;  %v426_v4 = vsel %vm425_vm3, %v374_v62, -inf }
 0x1da   :  { %427 = vmax.xlane.f32.xlu0 %v426_v4 }
 0x1de   :  { %v419_v6 = vpop.f32.mrb[8].mxu1 }
 0x1df   :  { %v420_v7 = vadd.f32 %v2471_v5, %v419_v6  ;;  %v1985_v8 = vpop.f32.mrb[9].mxu1 }
 0x1e0   :  { %v422_v9 = vpop.f32.mrb[10].mxu1 }
 0x1e1   :  { %v1986_v10 = vpop.f32.mrb[11].mxu1  ;;  %v429_v11 = vsel %vm425_vm3, %v420_v7, -inf }
 0x1e2   :  { %430 = vmax.xlane.f32.xlu0 %v429_v11 }
 0x1f8   :  { %547 = vrot.lane.b32.xlu0 %v2433_v41, %s2243_s20 }
 0x267   :  { %v428_v12 = vpop.xlane.xlu0 %427 }
 0x268   :  { %v432_v13 = vsub.f32 %v374_v62, %v428_v12 }
 0x26a   :  { %v434_v14 = vmul.f32 1.442695, %v432_v13 }
 0x26c   :  { %2192 = vpow2.f32 %v434_v14 }
 0x26f   :  { %v431_v15 = vpop.xlane.xlu0 %430 }
 0x270   :  { %v433_v20 = vsub.f32 %v420_v7, %v431_v15 }
 0x272   :  { %v436_v21 = vmul.f32 1.442695, %v433_v20 }
 0x273   :  { %v548_v16 = vpop.permute.xlu0 %547 }
 0x274   :  { %v553_v17 = vsel %vm332_vm1, %v548_v16, 0  ;;  %2194 = vpow2.f32 %v436_v21 }
 0x275   :  { %2000 = vmatpush3.bf16.xpose.msra.mxu0 %v553_v17 }
 0x276   :  { %v2193_v18 = vpop.eup %2192  ;;  %2011 = vmatprep.subr.bf16.mxu0 %v2241_v2 }
 0x277   :  { %v438_v19 = vsel %vm425_vm3, %v2193_v18, 0.0 }
 0x278   :  { %439 = vadd.xlane.f32.xlu1 %v438_v19 }
 0x27e   :  { %v2195_v22 = vpop.eup %2194 }
 0x27f   :  { %v441_v25 = vsel %vm425_vm3, %v2195_v22, 0.0 }
 0x289   :  { %599 = vrot.lane.b32.xlu1 %v2438_v45, %s2243_s20 }
 0x2ad   :  { %442 = vadd.xlane.f32.xlu1 %v441_v25 }
 0x2be   :  { %544 = vrot.lane.b32.xlu1 %v2440_v46, %s2243_s20 }
 0x2c2   :  { %596 = vrot.lane.b32.xlu1 %v2449_v49, %s2243_s20 }
 0x305   :  { %v440_v26 = vpop.xlane.xlu1 %439 }
 0x306   :  { %2196 = vrcp.f32 %v440_v26 }
 0x309   :  { %v600_v35 = vpop.permute.xlu1 %599 }
 0x30a   :  { %v605_v42 = vsel %vm332_vm1, %v600_v35, 0 }
 0x310   :  { %v2197_v27 = vpop.eup %2196 }
 0x311   :  { %v446_v29 = vmul.f32 %v2197_v27, %v2193_v18 }
 0x313   :  { %v448_v32 = vpack.c.bf16 %v446_v29, %v446_v29 }
 0x315   :  { %1990 = vmatmul.mubr.msk.bf16.vlgmr.msra.gmra.mrb[12].mxu1 %vm425_vm3, %v448_v32 }
 0x316   :  { %1994 = vmatpush3.bf16.msra.mxu1 %v501_v33  ;;  %1995 = vmatprep.mubr.msk.bf16.mxu1 %vm2242_vm0, %v2241_v2 }
 0x317   :  { %2005 = vmatprep.subr.bf16.mxu1 %v2241_v2 }
 0x33a   :  { %v443_v36 = vpop.xlane.xlu1 %442 }
 0x33b   :  { %2198 = vrcp.f32 %v443_v36 }
 0x33e   :  { %v545_v37 = vpop.permute.xlu1 %544 }
 0x33f   :  { %2002 = vmatmul.mubr.msk.bf16.vlgmr.msra.gmra.mrb[4].mxu0 %vm332_vm1, %v545_v37 }
 0x340   :  { %2013 = vmatprep.mubr.msk.bf16.mxu0 %vm2242_vm0, %v2241_v2 }
 0x342   :  { %v597_v43 = vpop.permute.xlu1 %596 }
 0x345   :  { %v2199_v38 = vpop.eup %2198 }
 0x346   :  { %v447_v39 = vmul.f32 %v2199_v38, %v2195_v22 }
 0x348   :  { %v449_v40 = vpack.c.bf16 %v447_v39, %v447_v39 }
 0x34a   :  { %1996 = vmatmul.mubr.msk.bf16.vlgmr.msra.gmra.mrb[16].mxu1 %vm425_vm3, %v449_v40 }
 0x34b   :  { %2006 = vmatpush3.bf16.xpose.msra.mxu1 %v605_v42  ;;  %2007 = vmatprep.mubr.msk.bf16.mxu1 %vm2242_vm0, %v2241_v2 }
 0x34c   :  { %2017 = vmatprep.subr.bf16.mxu1 %v2241_v2 }
 0x352   :  { %2008 = vmatmul.mubr.msk.bf16.vlgmr.msra.gmra.mrb[20].mxu1 %vm332_vm1, %v597_v43 }
 0x353   :  { %2019 = vmatprep.mubr.msk.bf16.mxu1 %vm2242_vm0, %v2241_v2 }
 0x3e8   :  { %v2506_v44 = vpop.f32.mrb[12].mxu1 }
 0x3e9   :  { %v1991_v47 = vpop.f32.mrb[13].mxu1 }
 0x3ea   :  { %v494_v48 = vpop.f32.mrb[14].mxu1 }
 0x3eb   :  { %v1992_v50 = vpop.f32.mrb[15].mxu1 }
 0x412   :  { %v589_v51 = vpop.f32.mrb[4].mxu0 }
 0x413   :  { %v590_v52 = vadd.f32 %v2464_v60, %v589_v51  ;;  %v2003_v53 = vpop.f32.mrb[5].mxu0 }
 0x414   :  { %v592_v54 = vpop.f32.mrb[6].mxu0 }
 0x415   :  { %v2004_v55 = vpop.f32.mrb[7].mxu0  ;;  %v647_v57 = vsel %vm425_vm3, %v590_v52, -inf }
 0x416   :  { %648 = vmax.xlane.f32.xlu0 %v647_v57 }
 0x41d   :  { %v2510_v58 = vpop.f32.mrb[16].mxu1 }
 0x41e   :  { %v1997_v59 = vpop.f32.mrb[17].mxu1 }
 0x41f   :  { %v540_v61 = vpop.f32.mrb[18].mxu1 }
 0x420   :  { %v1998_v62 = vpop.f32.mrb[19].mxu1 }
 0x425   :  { %v641_v63 = vpop.f32.mrb[20].mxu1 }
 0x426   :  { %v642_v0 = vadd.f32 %v2471_v5, %v641_v63  ;;  %v2009_v3 = vpop.f32.mrb[21].mxu1 }
 0x427   :  { %v644_v4 = vpop.f32.mrb[22].mxu1 }
 0x428   :  { %v2010_v6 = vpop.f32.mrb[23].mxu1  ;;  %v650_v7 = vsel %vm425_vm3, %v642_v0, -inf }
 0x429   :  { %651 = vmax.xlane.f32.xlu1 %v650_v7 }
 0x43a   :  { %721 = vrot.lane.b32.xlu1 %v2487_v28, %s2243_s20 }
 0x43e   :  { %771 = vrot.lane.b32.xlu1 %v2433_v41, %s2244_s1 }
 0x442   :  { %821 = vrot.lane.b32.xlu1 %v2438_v45, %s2244_s1 }
 0x446   :  { %819 = vrot.lane.b32.xlu1 %v2449_v49, %s2244_s1 }
 0x4a3   :  { %v649_v8 = vpop.xlane.xlu0 %648 }
 0x4a4   :  { %v653_v9 = vsub.f32 %v590_v52, %v649_v8 }
 0x4a6   :  { %v655_v10 = vmul.f32 1.442695, %v653_v9 }
 0x4a8   :  { %2200 = vpow2.f32 %v655_v10 }
 0x4b2   :  { %v2201_v11 = vpop.eup %2200 }
 0x4b3   :  { %v659_v12 = vsel %vm425_vm3, %v2201_v11, 0.0 }
 0x4b4   :  { %660 = vadd.xlane.f32.xlu0 %v659_v12 }
 0x4b6   :  { %v652_v13 = vpop.xlane.xlu1 %651 }
 0x4b7   :  { %v654_v14 = vsub.f32 %v642_v0, %v652_v13 }
 0x4b9   :  { %v657_v15 = vmul.f32 1.442695, %v654_v14 }
 0x4ba   :  { %v722_v16 = vpop.permute.xlu1 %721 }
 0x4bb   :  { %2202 = vpow2.f32 %v657_v15  ;;  %v727_v17 = vsel %vm453_vm2, %v722_v16, 0 }
 0x4bc   :  { %2018 = vmatpush3.bf16.msra.mxu1 %v727_v17 }
 0x4bd   :  { %2029 = vmatprep.subr.bf16.mxu1 %v2241_v2 }
 0x4be   :  { %v772_v29 = vpop.permute.xlu1 %771 }
 0x4bf   :  { %v777_v37 = vsel %vm332_vm1, %v772_v29, 0 }
 0x4c2   :  { %v822_v36 = vpop.permute.xlu1 %821 }
 0x4c3   :  { %v827_v39 = vsel %vm332_vm1, %v822_v36, 0 }
 0x4c5   :  { %v2203_v18 = vpop.eup %2202 }
 0x4c6   :  { %v662_v19 = vsel %vm425_vm3, %v2203_v18, 0.0  ;;  %v820_v42 = vpop.permute.xlu1 %819 }
 0x4c7   :  { %663 = vadd.xlane.f32.xlu0 %v662_v19 }
 0x4dd   :  { %672 = vrot.lane.b32.xlu0 %v2456_v56, %s2243_s20 }
 0x4e1   :  { %769 = vrot.lane.b32.xlu0 %v2440_v46, %s2244_s1 }
 0x541   :  { %v661_v20 = vpop.xlane.xlu0 %660 }
 0x542   :  { %2204 = vrcp.f32 %v661_v20 }
 0x54c   :  { %v2205_v21 = vpop.eup %2204 }
 0x54d   :  { %v667_v25 = vmul.f32 %v2205_v21, %v2201_v11 }
 0x54f   :  { %v669_v32 = vpack.c.bf16 %v667_v25, %v667_v25 }
 0x554   :  { %v664_v22 = vpop.xlane.xlu0 %663 }
 0x555   :  { %2206 = vrcp.f32 %v664_v22 }
 0x558   :  { %v673_v26 = vpop.permute.xlu0 %672 }
 0x559   :  { %v678_v27 = vsel %vm453_vm2, %v673_v26, 0 }
 0x55a   :  { %2012 = vmatpush3.bf16.msra.mxu0 %v678_v27 }
 0x55b   :  { %2023 = vmatprep.subr.bf16.mxu0 %v2241_v2 }
 0x55c   :  { %v770_v40 = vpop.permute.xlu0 %769 }
 0x55d   :  { %2014 = vmatmul.mubr.msk.bf16.vlgmr.msra.gmra.mrb[8].mxu0 %vm425_vm3, %v669_v32 }
 0x55e   :  { %2025 = vmatprep.mubr.msk.bf16.mxu0 %vm2242_vm0, %v2241_v2 }
 0x55f   :  { %v2207_v33 = vpop.eup %2206 }
 0x560   :  { %v668_v35 = vmul.f32 %v2207_v33, %v2203_v18 }
 0x562   :  { %v670_v38 = vpack.c.bf16 %v668_v35, %v668_v35 }
 0x563   :  { %2024 = vmatpush3.bf16.xpose.msra.mxu0 %v777_v37 }
 0x564   :  { %2020 = vmatmul.mubr.msk.bf16.vlgmr.msra.gmra.mrb[24].mxu1 %vm425_vm3, %v670_v38  ;;  %2035 = vmatprep.subr.bf16.mxu0 %v2241_v2 }
 0x565   :  { %2030 = vmatpush3.bf16.xpose.msra.mxu1 %v827_v39  ;;  %2031 = vmatprep.mubr.msk.bf16.mxu1 %vm2242_vm0, %v2241_v2 }
 0x566   :  { %2041 = vmatprep.subr.bf16.mxu1 %v2241_v2 }
 0x56a   :  { %2026 = vmatmul.mubr.msk.bf16.vlgmr.msra.gmra.mrb[12].mxu0 %vm332_vm1, %v770_v40 }
 0x56b   :  { %2037 = vmatprep.mubr.msk.bf16.mxu0 %vm2242_vm0, %v2241_v2 }
 0x56c   :  { %2032 = vmatmul.mubr.msk.bf16.vlgmr.msra.gmra.mrb[28].mxu1 %vm332_vm1, %v820_v42 }
 0x56d   :  { %2043 = vmatprep.mubr.msk.bf16.mxu1 %vm2242_vm0, %v2241_v2 }
 0x630   :  { %v2548_v43 = vpop.f32.mrb[8].mxu0 }
 0x631   :  { %v2015_v47 = vpop.f32.mrb[9].mxu0 }
 0x632   :  { %v717_v48 = vpop.f32.mrb[10].mxu0 }
 0x633   :  { %v2016_v50 = vpop.f32.mrb[11].mxu0 }
 0x637   :  { %v2550_v51 = vpop.f32.mrb[24].mxu1 }
 0x638   :  { %v2097_v52 = vpack.i.bf16 %v2550_v51, %v2548_v43  ;;  %v2021_v53 = vpop.f32.mrb[25].mxu1 }
 0x639   :  { %v766_v54 = vpop.f32.mrb[26].mxu1 }
 0x63a   :  { %v2022_v55 = vpop.f32.mrb[27].mxu1 }
 0x63d   :  { %v813_v57 = vpop.f32.mrb[12].mxu0 }
 0x63e   :  { %v814_v59 = vadd.f32 %v2464_v60, %v813_v57  ;;  %v2027_v61 = vpop.f32.mrb[13].mxu0 }
 0x63f   :  { %v816_v62 = vpop.f32.mrb[14].mxu0  ;;  %v863_v63 = vpop.f32.mrb[28].mxu1 }
 0x640   :  { %v864_v0 = vadd.f32 %v2471_v5, %v863_v63  ;;  %v2028_v3 = vpop.f32.mrb[15].mxu0  ;;  %v2033_v4 = vpop.f32.mrb[29].mxu1  ;;  %v869_v6 = vsel %vm425_vm3, %v814_v59, -inf }
 0x641   :  { %870 = vmax.xlane.f32.xlu0 %v869_v6  ;;  %v866_v7 = vpop.f32.mrb[30].mxu1 }
 0x642   :  { %v2034_v8 = vpop.f32.mrb[31].mxu1  ;;  %v872_v9 = vsel %vm425_vm3, %v864_v0, -inf }
 0x643   :  { %873 = vmax.xlane.f32.xlu1 %v872_v9 }
 0x654   :  { %941 = vrot.lane.b32.xlu1 %v2487_v28, %s2244_s1 }
 0x658   :  { %991 = vrot.lane.b32.xlu1 %v2433_v41, %s2245_s21 }
 0x65c   :  { %1041 = vrot.lane.b32.xlu1 %v2438_v45, %s2245_s21 }
 0x660   :  { %1039 = vrot.lane.b32.xlu1 %v2449_v49, %s2245_s21 }
 0x6ce   :  { %v871_v10 = vpop.xlane.xlu0 %870 }
 0x6cf   :  { %v875_v11 = vsub.f32 %v814_v59, %v871_v10 }
 0x6d0   :  { %v874_v12 = vpop.xlane.xlu1 %873 }
 0x6d1   :  { %v877_v13 = vmul.f32 1.442695, %v875_v11  ;;  %v876_v14 = vsub.f32 %v864_v0, %v874_v12 }
 0x6d3   :  { %2208 = vpow2.f32 %v877_v13  ;;  %v879_v15 = vmul.f32 1.442695, %v876_v14 }
 0x6d4   :  { %v942_v16 = vpop.permute.xlu1 %941 }
 0x6d5   :  { %2210 = vpow2.f32 %v879_v15  ;;  %v947_v17 = vsel %vm453_vm2, %v942_v16, 0 }
 0x6d6   :  { %2042 = vmatpush3.bf16.msra.mxu1 %v947_v17 }
 0x6d7   :  { %2053 = vmatprep.subr.bf16.mxu1 %v2241_v2 }
 0x6d8   :  { %v992_v26 = vpop.permute.xlu1 %991 }
 0x6dc   :  { %v1042_v35 = vpop.permute.xlu1 %1041 }
 0x6dd   :  { %v2209_v41 = vpop.eup %2208  ;;  %v1047_v37 = vsel %vm332_vm1, %v1042_v35, 0  ;;  %v2151_v35 = vld [vmem:[%s2792_s4 + $0x38] sm:$0xff]  }
 0x6de   :  { %v881_v45 = vsel %vm425_vm3, %v2209_v41, 0.0 }
 0x6df   :  { %v2211_v18 = vpop.eup %2210  ;;  %882 = vadd.xlane.f32.xlu0 %v881_v45 }
 0x6e0   :  { %v884_v49 = vsel %vm425_vm3, %v2211_v18, 0.0  ;;  %v1040_v39 = vpop.permute.xlu1 %1039 }
 0x6e3   :  { %885 = vadd.xlane.f32.xlu0 %v884_v49 }
 0x6f9   :  { %893 = vrot.lane.b32.xlu0 %v2456_v56, %s2244_s1 }
 0x6fd   :  { %989 = vrot.lane.b32.xlu0 %v2440_v46, %s2245_s21  ;;  %v997_v46 = vsel %vm332_vm1, %v992_v26, 0  ;;  %v2145_v26 = vld [vmem:[%s2792_s4 + $0x8] sm:$0xff]  }
 0x76c   :  { %v883_v19 = vpop.xlane.xlu0 %882 }
 0x76d   :  { %2212 = vrcp.f32 %v883_v19 }
 0x770   :  { %v886_v20 = vpop.xlane.xlu0 %885 }
 0x771   :  { %2214 = vrcp.f32 %v886_v20 }
 0x774   :  { %v894_v21 = vpop.permute.xlu0 %893 }
 0x775   :  { %v899_v22 = vsel %vm453_vm2, %v894_v21, 0 }
 0x776   :  { %2036 = vmatpush3.bf16.msra.mxu0 %v899_v22 }
 0x777   :  { %v2213_v25 = vpop.eup %2212  ;;  %2047 = vmatprep.subr.bf16.mxu0 %v2241_v2 }
 0x778   :  { %v889_v27 = vmul.f32 %v2213_v25, %v2209_v41  ;;  %v990_v38 = vpop.permute.xlu0 %989  ;;  %v2144_v25 = vld [vmem:[%s2792_s4] sm:$0xff]  }
 0x77a   :  { %v891_v29 = vpack.c.bf16 %v889_v27, %v889_v27  ;;  %v2146_v27 = vld [vmem:[%s2792_s4 + $0x10] sm:$0xff]  }
 0x77b   :  { %v2215_v32 = vpop.eup %2214 }
 0x77c   :  { %v890_v33 = vmul.f32 %v2215_v32, %v2211_v18  ;;  %2038 = vmatmul.mubr.msk.bf16.vlgmr.msra.gmra.mrb[16].mxu0 %vm425_vm3, %v891_v29  ;;  %v2148_v29 = vld [vmem:[%s2792_s4 + $0x20] sm:$0xff]   ;;  %v2149_v32 = vld [vmem:[%s2792_s4 + $0x28] sm:$0xff]  }
 0x77d   :  { %2049 = vmatprep.mubr.msk.bf16.mxu0 %vm2242_vm0, %v2241_v2 }
 0x77e   :  { %v892_v36 = vpack.c.bf16 %v890_v33, %v890_v33  ;;  %v2150_v33 = vld [vmem:[%s2792_s4 + $0x30] sm:$0xff]  }
 0x77f   :  { %2048 = vmatpush3.bf16.xpose.msra.mxu0 %v997_v46 }
 0x780   :  { %2044 = vmatmul.mubr.msk.bf16.vlgmr.msra.gmra.mrb[32].mxu1 %vm425_vm3, %v892_v36  ;;  %2059 = vmatprep.subr.bf16.mxu0 %v2241_v2 }
 0x781   :  { %2054 = vmatpush3.bf16.xpose.msra.mxu1 %v1047_v37  ;;  %2055 = vmatprep.mubr.msk.bf16.mxu1 %vm2242_vm0, %v2241_v2 }
 0x782   :  { %2065 = vmatprep.subr.bf16.mxu1 %v2241_v2 }
 0x786   :  { %2050 = vmatmul.mubr.msk.bf16.vlgmr.msra.gmra.mrb[20].mxu0 %vm332_vm1, %v990_v38 }
 0x787   :  { %2061 = vmatprep.mubr.msk.bf16.mxu0 %vm2242_vm0, %v2241_v2 }
 0x788   :  { %2056 = vmatmul.mubr.msk.bf16.vlgmr.msra.gmra.mrb[36].mxu1 %vm332_vm1, %v1040_v39 }
 0x789   :  { %2067 = vmatprep.mubr.msk.bf16.mxu1 %vm2242_vm0, %v2241_v2 }
 0x84f   :  { %v935_v40 = vpop.f32.mrb[16].mxu0 }
 0x850   :  { %v2039_v42 = vpop.f32.mrb[17].mxu0 }
 0x851   :  { %v938_v47 = vpop.f32.mrb[18].mxu0 }
 0x852   :  { %v2040_v48 = vpop.f32.mrb[19].mxu0 }
 0x853   :  { %v983_v50 = vpop.f32.mrb[32].mxu1 }
 0x854   :  { %v2102_v53 = vpack.i.bf16 %v983_v50, %v935_v40  ;;  %v2045_v54 = vpop.f32.mrb[33].mxu1 }
 0x855   :  { %v986_v55 = vpop.f32.mrb[34].mxu1 }
 0x856   :  { %v2046_v57 = vpop.f32.mrb[35].mxu1 }
 0x859   :  { %v1033_v59 = vpop.f32.mrb[20].mxu0 }
 0x85a   :  { %v1034_v61 = vadd.f32 %v2464_v60, %v1033_v59  ;;  %v2051_v62 = vpop.f32.mrb[21].mxu0 }
 0x85b   :  { %v1036_v63 = vpop.f32.mrb[22].mxu0  ;;  %v1083_v0 = vpop.f32.mrb[36].mxu1 }
 0x85c   :  { %v1084_v3 = vadd.f32 %v2471_v5, %v1083_v0  ;;  %v2052_v4 = vpop.f32.mrb[23].mxu0  ;;  %v2057_v6 = vpop.f32.mrb[37].mxu1  ;;  %v1089_v7 = vsel %vm425_vm3, %v1034_v61, -inf }
 0x85d   :  { %1090 = vmax.xlane.f32.xlu0 %v1089_v7  ;;  %v1086_v8 = vpop.f32.mrb[38].mxu1 }
 0x85e   :  { %v2058_v9 = vpop.f32.mrb[39].mxu1  ;;  %v1092_v10 = vsel %vm425_vm3, %v1084_v3, -inf }
 0x85f   :  { %1093 = vmax.xlane.f32.xlu1 %v1092_v10  ;;  %v1837_v9 = vld [vmem:[%s2793_s5] ss:$0 sm:$0xff] }
 0x870   :  { %1161 = vrot.lane.b32.xlu1 %v2487_v28, %s2245_s21 }
 0x874   :  { %2098 = vrot.lane.b32.xlu1 %v2097_v52, %s2245_s21 }
 0x878   :  { %2103 = vrot.lane.b32.xlu1 %v2102_v53, %s2244_s1 }
 0x8ea   :  { %v1091_v60 = vpop.xlane.xlu0 %1090 }
 0x8eb   :  { %v1095_v5 = vsub.f32 %v1034_v61, %v1091_v60 }
 0x8ec   :  { %v1094_v11 = vpop.xlane.xlu1 %1093 }
 0x8ed   :  { %v1097_v12 = vmul.f32 1.442695, %v1095_v5  ;;  %v1096_v13 = vsub.f32 %v1084_v3, %v1094_v11 }
 0x8ef   :  { %2216 = vpow2.f32 %v1097_v12  ;;  %v1099_v14 = vmul.f32 1.442695, %v1096_v13 }
 0x8f0   :  { %v1162_v15 = vpop.permute.xlu1 %1161 }
 0x8f1   :  { %2218 = vpow2.f32 %v1099_v14  ;;  %v1167_v16 = vsel %vm453_vm2, %v1162_v15, 0  ;;  %v2152_v14 = vld [vmem:[%s2794_s8] ss:$8 sps:$4 sm:$0xff]   ;;  %v2154_v15 = vld [vmem:[%s2794_s8 + $0x4] ss:$8 sps:$4 sm:$0xff]  }
 0x8f2   :  { %2066 = vmatpush3.bf16.msra.mxu1 %v1167_v16  ;;  %v2155_v16 = vld [vmem:[%s2794_s8 + $0x10] ss:$8 sps:$4 sm:$0xff]  }
 0x8f3   :  { %1506 = vmatprep.subr.bf16.mxu1 %v2154_v15 }
 0x8f4   :  { %v2099_v50 = vpop.permute.xlu1 %2098 }
 0x8f5   :  { %v2101_v54 = vunpack.i.h.bf16 %v2099_v50 }
 0x8f7   :  { %v1234_v61 = vsel %vm332_vm1, %v2510_v58, %v2101_v54 }
 0x8f8   :  { %v2104_v53 = vpop.permute.xlu1 %2103 }
 0x8f9   :  { %v2217_v28 = vpop.eup %2216  ;;  %v2106_v55 = vunpack.i.h.bf16 %v2104_v53  ;;  %v2105_v57 = vunpack.i.l.bf16 %v2104_v53 }
 0x8fa   :  { %v1101_v17 = vsel %vm425_vm3, %v2217_v28, 0.0 }
 0x8fb   :  { %v2219_v41 = vpop.eup %2218  ;;  %1102 = vadd.xlane.f32.xlu0 %v1101_v17  ;;  %v1237_v4 = vsel %vm1235_vm4, %v1234_v61, %v2106_v55  ;;  %v1847_v55 = vld [vmem:[%s2797_s7] ss:$0 sm:$0xff] }
 0x8fc   :  { %v1104_v43 = vsel %vm425_vm3, %v2219_v41, 0.0 }
 0x8ff   :  { %1105 = vadd.xlane.f32.xlu0 %v1104_v43 }
 0x915   :  { %1113 = vrot.lane.b32.xlu0 %v2456_v56, %s2245_s21 }
 0x988   :  { %v1103_v51 = vpop.xlane.xlu0 %1102 }
 0x989   :  { %2220 = vrcp.f32 %v1103_v51 }
 0x98c   :  { %v1106_v52 = vpop.xlane.xlu0 %1105 }
 0x98d   :  { %2222 = vrcp.f32 %v1106_v52 }
 0x990   :  { %v1114_v45 = vpop.permute.xlu0 %1113 }
 0x991   :  { %v1119_v18 = vsel %vm453_vm2, %v1114_v45, 0 }
 0x992   :  { %2060 = vmatpush3.bf16.msra.mxu0 %v1119_v18  ;;  %v2160_v18 = vld [vmem:[%s2794_s8 + $0x24] ss:$8 sps:$4 sm:$0xff]  }
 0x993   :  { %v2221_v49 = vpop.eup %2220  ;;  %2071 = vmatprep.subr.bf16.mxu0 %v2241_v2 }
 0x994   :  { %v1109_v19 = vmul.f32 %v2221_v49, %v2217_v28  ;;  %v2158_v49 = vld [vmem:[%s2794_s8 + $0x20] ss:$8 sps:$4 sm:$0xff]  }
 0x996   :  { %v1111_v20 = vpack.c.bf16 %v1109_v19, %v1109_v19  ;;  %v2163_v19 = vld [vmem:[%s2794_s8 + $0x34] ss:$8 sps:$4 sm:$0xff]  }
 0x997   :  { %v2223_v21 = vpop.eup %2222 }
 0x998   :  { %v1110_v22 = vmul.f32 %v2223_v21, %v2219_v41  ;;  %2062 = vmatmul.mubr.msk.bf16.vlgmr.msra.gmra.mrb[24].mxu0 %vm425_vm3, %v1111_v20  ;;  %v2161_v20 = vld [vmem:[%s2794_s8 + $0x30] ss:$8 sps:$4 sm:$0xff]   ;;  %v2166_v21 = vld [vmem:[%s2794_s8 + $0x44] ss:$8 sps:$4 sm:$0xff]  }
 0x999   :  { %2087 = vmatprep.mubr.msk.bf16.mxu0 %vm2242_vm0, %v2241_v2  ;;  %2072 = vmatpush3.bf16.msra.mxu0 %v2144_v25  ;;  %v2167_v25 = vld [vmem:[%s2794_s8 + $0x50] ss:$8 sps:$4 sm:$0xff]  }
 0x99a   :  { %v1112_v56 = vpack.c.bf16 %v1110_v22, %v1110_v22  ;;  %2073 = vmatprep.subr.bf16.mxu0 %v2241_v2  ;;  %v2164_v22 = vld [vmem:[%s2794_s8 + $0x40] ss:$8 sps:$4 sm:$0xff]  }
 0x99c   :  { %2068 = vmatmul.mubr.msk.bf16.vlgmr.msra.gmra.mrb[40].mxu1 %vm425_vm3, %v1112_v56  ;;  %v2169_v56 = vld [vmem:[%s2794_s8 + $0x54] ss:$8 sps:$4 sm:$0xff]  }
 0x99d   :  { %1538 = vmatprep.mubr.bf16.mxu1 %v2240_v1  ;;  %2074 = vmatpush3.bf16.msra.mxu0 %v2145_v26  ;;  %v2147_v1 = vld [vmem:[%s2792_s4 + $0x18] sm:$0xff]   ;;  %v2172_v26 = vld [vmem:[%s2794_s8 + $0x64] ss:$8 sps:$4 sm:$0xff]  }
 0x99e   :  { %2075 = vmatprep.subr.bf16.mxu0 %v2241_v2  ;;  %1507 = vmatpush1.bf16.msra.mxu1 %v2152_v14 }
 0x9a1   :  { %2076 = vmatpush3.bf16.msra.mxu0 %v2146_v27  ;;  %v2170_v27 = vld [vmem:[%s2794_s8 + $0x60] ss:$8 sps:$4 sm:$0xff]  }
 0x9a2   :  { %2077 = vmatprep.subr.bf16.mxu0 %v2241_v2 }
 0x9a5   :  { %2078 = vmatpush3.bf16.msra.mxu0 %v2147_v1  ;;  %v2175_v1 = vld [vmem:[%s2794_s8 + $0x74] ss:$8 sps:$4 sm:$0xff]  }
 0x9a6   :  { %2079 = vmatprep.subr.bf16.mxu0 %v2241_v2 }
 0x9a9   :  { %2080 = vmatpush3.bf16.msra.mxu0 %v2148_v29  ;;  %v2173_v29 = vld [vmem:[%s2794_s8 + $0x70] ss:$8 sps:$4 sm:$0xff]  }
 0x9aa   :  { %2081 = vmatprep.subr.bf16.mxu0 %v2241_v2 }
 0x9ad   :  { %2082 = vmatpush3.bf16.msra.mxu0 %v2149_v32  ;;  %v2176_v32 = vld [vmem:[%s2795_s10 + $0x40] sm:$0xff]  }
 0x9ae   :  { %2083 = vmatprep.subr.bf16.mxu0 %v2241_v2 }
 0x9b1   :  { %2084 = vmatpush3.bf16.msra.mxu0 %v2150_v33  ;;  %v2177_v33 = vld [vmem:[%s2795_s10] sm:$0xff]  }
 0x9b2   :  { %2085 = vmatprep.subr.bf16.mxu0 %v2241_v2  ;;  %v2100_v2 = vunpack.i.l.bf16 %v2099_v50  ;;  %v1846_v50 = vld [vmem:[%s2796_s6] ss:$0 sm:$0xff] }
 0x9b4   :  { %v1233_v62 = vsel %vm332_vm1, %v2506_v44, %v2100_v2 }
 0x9b5   :  { %2086 = vmatpush3.bf16.msra.mxu0 %v2151_v35  ;;  %v1236_v3 = vsel %vm1235_vm4, %v1233_v62, %v2105_v57  ;;  %v2178_v35 = vld [vmem:[%s2795_s10 + $0x48] sm:$0xff]  }
 0x9b6   :  { %1933 = vmatprep.subr.bf16.mxu0 %v2176_v32 }
 0xa6b   :  { %v1155_v46 = vpop.f32.mrb[24].mxu0 }
 0xa6c   :  { %v2063_v36 = vpop.f32.mrb[25].mxu0 }
 0xa6d   :  { %v1158_v37 = vpop.f32.mrb[26].mxu0 }
 0xa6e   :  { %v2064_v38 = vpop.f32.mrb[27].mxu0 }
 0xa6f   :  { %v1203_v39 = vpop.f32.mrb[40].mxu1 }
 0xa70   :  { %v2107_v40 = vpack.i.bf16 %v1203_v39, %v1155_v46  ;;  %v2069_v42 = vpop.f32.mrb[41].mxu1  ;;  %v2179_v46 = vld [vmem:[%s2795_s10 + $0x8] sm:$0xff]  }
 0xa71   :  { %v1206_v47 = vpop.f32.mrb[42].mxu1 }
 0xa72   :  { %2108 = vrot.lane.b32.xlu0 %v2107_v40, %s2243_s20  ;;  %v2070_v48 = vpop.f32.mrb[43].mxu1 }
 0xae4   :  { %v2109_v59 = vpop.permute.xlu0 %2108 }
 0xae5   :  { %v2111_v63 = vunpack.i.h.bf16 %v2109_v59  ;;  %v2110_v0 = vunpack.i.l.bf16 %v2109_v59 }
 0xae7   :  { %v1240_v6 = vsel %vm1238_vm5, %v1237_v4, %v2111_v63  ;;  %v1239_v7 = vsel %vm1238_vm5, %v1236_v3, %v2110_v0  ;;  %v2180_v63 = vld [vmem:[%s2795_s10 + $0x50] sm:$0xff]   ;;  %v2182_v3 = vld [vmem:[%s2795_s10 + $0x58] sm:$0xff]  }
 0xae8   :  { %v1241_v8 = vpack.c.bf16 %v1240_v6, %v1239_v7  ;;  %v2181_v0 = vld [vmem:[%s2795_s10 + $0x10] sm:$0xff]   ;;  %v2183_v4 = vld [vmem:[%s2795_s10 + $0x18] sm:$0xff]   ;;  %v2184_v6 = vld [vmem:[%s2795_s10 + $0x60] sm:$0xff]  }
 0xae9   :  { %v2185_v7 = vld [vmem:[%s2795_s10 + $0x20] sm:$0xff]  }
 0xaea   :  { %2088 = vmatmul.mubr.bf16.vlgmr.msra.gmra.mrb[28].mxu0 %v1241_v8  ;;  %v2186_v8 = vld [vmem:[%s2795_s10 + $0x68] sm:$0xff]  }
 0xaeb   :  { %1934 = vmatpush3.bf16.msra.mxu0 %v2177_v33 }
 0xaec   :  { %1935 = vmatprep.subr.bf16.mxu0 %v2178_v35 }
 0xaef   :  { %1936 = vmatpush3.bf16.msra.mxu0 %v2179_v46  ;;  %v1864_v46 = vld [vmem:[%s2799_s11] ss:$0 sm:$0xff] }
 0xaf0   :  { %1937 = vmatprep.subr.bf16.mxu0 %v2180_v63 }
 0xaf3   :  { %1938 = vmatpush3.bf16.msra.mxu0 %v2181_v0 }
 0xaf4   :  { %1939 = vmatprep.subr.bf16.mxu0 %v2182_v3 }
 0xaf7   :  { %1940 = vmatpush3.bf16.msra.mxu0 %v2183_v4 }
 0xaf8   :  { %1941 = vmatprep.subr.bf16.mxu0 %v2184_v6 }
 0xafb   :  { %1942 = vmatpush3.bf16.msra.mxu0 %v2185_v7 }
 0xafc   :  { %1943 = vmatprep.subr.bf16.mxu0 %v2186_v8 }
 0xbbd   :  { %v1347_v10 = vpop.f32.mrb[28].mxu0 }
 0xbbe   :  { %v1348_v60 = vadd.f32 %v1837_v9, %v1347_v10  ;;  %v2089_v5 = vpop.f32.mrb[29].mxu0  ;;  %v2188_v10 = vld [vmem:[%s2795_s10 + $0x70] sm:$0xff]  }
 0xbbf   :  { %v1350_v11 = vpop.f32.mrb[30].mxu0  ;;  %v2190_v5 = vld [vmem:[%s2795_s10 + $0x78] sm:$0xff]  }
 0xbc0   :  { %v1351_v58 = vadd.f32 %v1837_v9, %v1350_v11  ;;  %v2090_v12 = vpop.f32.mrb[31].mxu0  ;;  %v1354_v44 = vadd.f32 %v1348_v60, %v2392_v23  ;;  %v2157_v23 = vld [vmem:[%s2794_s8 + $0x14] ss:$8 sps:$4 sm:$0xff]   ;;  %v2187_v9 = vld [vmem:[%s2795_s10 + $0x28] sm:$0xff]  }
 0xbc1   :  { %1508 = vmatprep.subr.bf16.mxu1 %v2157_v23  ;;  %1944 = vmatpush3.bf16.msra.mxu0 %v2187_v9  ;;  %v2189_v60 = vld [vmem:[%s2795_s10 + $0x30] sm:$0xff]   ;;  %v2191_v11 = vld [vmem:[%s2795_s10 + $0x38] sm:$0xff]   ;;  %v1881_v9 = vld [vmem:[%s2800_s12] ss:$0 sm:$0xff] }
 0xbc2   :  { %1358 = vadd.xlane.f32.xlu1 %v1354_v44  ;;  %v1355_v13 = vadd.f32 %v1351_v58, %v2397_v24  ;;  %1509 = vmatpush1.bf16.msra.mxu1 %v2155_v16  ;;  %v1414_v58 = vld [vmem:[%s2798_s9] sm:$0x3] }
 0xbc3   :  { %1510 = vmatprep.subr.bf16.mxu1 %v2160_v18  ;;  %1945 = vmatprep.subr.bf16.mxu0 %v2188_v10  ;;  %v1419_v12 = vrot.slane %v1414_v58, %v89_v34 }
 0xbc4   :  { %1360 = vadd.xlane.f32.xlu0 %v1355_v13 }
 0xbc5   :  { %1946 = vmatpush3.bf16.msra.mxu0 %v2189_v60 }
 0xbc6   :  { %1511 = vmatpush1.bf16.msra.mxu1 %v2158_v49  ;;  %1947 = vmatprep.subr.bf16.mxu0 %v2190_v5  ;;  %v1882_v5 = vld [vmem:[%s2801_s13] ss:$0 sm:$0xff] }
 0xbc7   :  { %1512 = vmatprep.subr.bf16.mxu1 %v2163_v19 }
 0xbc9   :  { %1948 = vmatpush3.bf16.msra.mxu0 %v2191_v11 }
 0xbca   :  { %1513 = vmatpush1.bf16.msra.mxu1 %v2161_v20 }
 0xbcb   :  { %1514 = vmatprep.subr.bf16.mxu1 %v2166_v21 }
 0xbce   :  { %1515 = vmatpush1.bf16.msra.mxu1 %v2164_v22 }
 0xbcf   :  { %1516 = vmatprep.subr.bf16.mxu1 %v2169_v56 }
 0xbd2   :  { %1517 = vmatpush1.bf16.msra.mxu1 %v2167_v25 }
 0xbd3   :  { %1518 = vmatprep.subr.bf16.mxu1 %v2172_v26 }
 0xbd6   :  { %1519 = vmatpush1.bf16.msra.mxu1 %v2170_v27 }
 0xbd7   :  { %1520 = vmatprep.subr.bf16.mxu1 %v2175_v1 }
 0xbda   :  { %1521 = vmatpush1.bf16.msra.mxu1 %v2173_v29 }
 0xc4f   :  { %v1359_v24 = vpop.xlane.xlu1 %1358 }
 0xc50   :  { %v1363_v28 = vmul.f32 0.0078125, %v1359_v24 }
 0xc51   :  { %v1361_v17 = vpop.xlane.xlu0 %1360 }
 0xc52   :  { %v1365_v41 = vsub.f32 %v1354_v44, %v1363_v28  ;;  %v1364_v43 = vmul.f32 0.0078125, %v1361_v17  ;;  %v1423_v44 = vrot.slane %v1414_v58, %v93_v31 }
 0xc54   :  { %v1366_v51 = vsub.f32 %v1355_v13, %v1364_v43  ;;  %v1367_v52 = vmul.f32 %v1365_v41, %v1365_v41 }
 0xc56   :  { %1369 = vadd.xlane.f32.xlu0 %v1367_v52  ;;  %v1368_v45 = vmul.f32 %v1366_v51, %v1366_v51 }
 0xc5a   :  { %1371 = vadd.xlane.f32.xlu0 %v1368_v45 }
 0xce3   :  { %v1370_v36 = vpop.xlane.xlu0 %1369 }
 0xce4   :  { %v1373_v37 = vmul.f32 0.0078125, %v1370_v36 }
 0xce6   :  { %v1375_v38 = vadd.f32 1e-05, %v1373_v37 }
 0xce7   :  { %v1372_v39 = vpop.xlane.xlu0 %1371 }
 0xce8   :  { %2224 = vrsqrt.f32 %v1375_v38  ;;  %v1374_v40 = vmul.f32 0.0078125, %v1372_v39 }
 0xcea   :  { %v1376_v42 = vadd.f32 1e-05, %v1374_v40 }
 0xcec   :  { %2226 = vrsqrt.f32 %v1376_v42 }
 0xcf2   :  { %v2225_v47 = vpop.eup %2224 }
 0xcf3   :  { %v1379_v48 = vmul.f32 %v2225_v47, %v1365_v41 }
 0xcf5   :  { %v1387_v2 = vmul.f32 %v1846_v50, %v1379_v48 }
 0xcf6   :  { %v2227_v53 = vpop.eup %2226 }
 0xcf7   :  { %v1380_v54 = vmul.f32 %v2227_v53, %v1366_v51  ;;  %v2722_v59 = vadd.f32 %v1847_v55, %v1387_v2 }
 0xcf9   :  { %v1388_v57 = vmul.f32 %v1846_v50, %v1380_v54 }
 0xcfb   :  { %v2724_v61 = vadd.f32 %v1847_v55, %v1388_v57 }
 0xcfd   :  { %v1397_v62 = vpack.c.bf16 %v2724_v61, %v2722_v59 }
 0xcff   :  { %1539 = vmatmul.mubr.bf16.vlgmr.msra.gmra.mrb[44].mxu1 %v1397_v62 }
 0xdd2   :  { %v1540_v13 = vpop.f32.mrb[44].mxu1 }
 0xdd3   :  { %v1541_v14 = vadd.f32 %v1540_v13, %v1419_v12  ;;  %v1542_v15 = vpop.f32.mrb[45].mxu1 }
 0xdd4   :  { %v1543_v16 = vadd.f32 %v1542_v15, %v1423_v44  ;;  %v1544_v23 = vpop.f32.mrb[46].mxu1 }
 0xdd5   :  { %v1553_v24 = vmul.f32 0.70710677, %v1541_v14  ;;  %v1545_v28 = vadd.f32 %v1544_v23, %v1419_v12  ;;  %v1546_v17 = vpop.f32.mrb[47].mxu1  ;;  %v1549_v19 = vmul.f32 0.5, %v1541_v14 }
 0xdd6   :  { %v1554_v41 = vmul.f32 0.70710677, %v1543_v16  ;;  %v1547_v43 = vadd.f32 %v1546_v17, %v1423_v44  ;;  %v1550_v22 = vmul.f32 0.5, %v1543_v16 }
 0xdd7   :  { %2228 = verf.f32 %v1553_v24  ;;  %v1555_v51 = vmul.f32 0.70710677, %v1545_v28  ;;  %v1551_v20 = vmul.f32 0.5, %v1545_v28 }
 0xdd8   :  { %2230 = verf.f32 %v1554_v41  ;;  %v1556_v52 = vmul.f32 0.70710677, %v1547_v43  ;;  %v1552_v56 = vmul.f32 0.5, %v1547_v43 }
 0xdd9   :  { %2232 = verf.f32 %v1555_v51 }
 0xdda   :  { %2234 = verf.f32 %v1556_v52 }
 0xde1   :  { %v2229_v34 = vpop.eup %2228 }
 0xde2   :  { %v2231_v45 = vpop.eup %2230  ;;  %v1561_v30 = vadd.f32 1.0, %v2229_v34 }
 0xde3   :  { %v2233_v31 = vpop.eup %2232  ;;  %v1562_v18 = vadd.f32 1.0, %v2231_v45 }
 0xde4   :  { %v2235_v49 = vpop.eup %2234  ;;  %v1563_v21 = vadd.f32 1.0, %v2233_v31  ;;  %v1565_v26 = vmul.f32 %v1561_v30, %v1549_v19 }
 0xde5   :  { %v1564_v25 = vadd.f32 1.0, %v2235_v49  ;;  %v1566_v1 = vmul.f32 %v1562_v18, %v1550_v22 }
 0xde6   :  { %v1567_v27 = vmul.f32 %v1563_v21, %v1551_v20 }
 0xde7   :  { %v1568_v29 = vmul.f32 %v1564_v25, %v1552_v56 }
 0xde8   :  { %v1569_v32 = vpack.c.bf16 %v1567_v27, %v1565_v26 }
 0xde9   :  { %v1570_v33 = vpack.c.bf16 %v1568_v29, %v1566_v1 }
 0xdeb   :  { %1738 = vmatprep.mubr.bf16.mxu0 %v1570_v33 }
 0xdec   :  { %1739 = vmatmul.mubr.bf16.vlgmr.msra.gmra.mrb[32].mxu0 %v1569_v32 }
 0xebf   :  { %v1949_v35 = vpop.f32.mrb[32].mxu0 }
 0xec0   :  { %v1950_v36 = vpop.f32.mrb[33].mxu0 }
 0xec1   :  { %v1951_v37 = vadd.f32 %v1950_v36, %v1949_v35  ;;  %v1952_v38 = vpop.f32.mrb[34].mxu0 }
 0xec2   :  { %v1953_v39 = vpop.f32.mrb[35].mxu0 }
 0xec3   :  { %v1741_v40 = vadd.f32 %v1951_v37, %v1864_v46  ;;  %v1954_v42 = vadd.f32 %v1953_v39, %v1952_v38 }
 0xec5   :  { %v1744_v47 = vadd.f32 %v1954_v42, %v1864_v46  ;;  %v1747_v48 = vadd.f32 %v1741_v40, %v2722_v59 }
 0xec7   :  { %1751 = vadd.xlane.f32.xlu1 %v1747_v48  ;;  %v1748_v50 = vadd.f32 %v1744_v47, %v2724_v61 }
 0xec9   :  { %1753 = vadd.xlane.f32.xlu0 %v1748_v50 }
 0xf54   :  { %v1752_v53 = vpop.xlane.xlu1 %1751 }
 0xf55   :  { %v1755_v54 = vmul.f32 0.0078125, %v1752_v53 }
 0xf56   :  { %v1754_v2 = vpop.xlane.xlu0 %1753 }
 0xf57   :  { %v1757_v55 = vsub.f32 %v1747_v48, %v1755_v54  ;;  %v1756_v57 = vmul.f32 0.0078125, %v1754_v2 }
 0xf59   :  { %v1758_v62 = vsub.f32 %v1748_v50, %v1756_v57  ;;  %v1759_v63 = vmul.f32 %v1757_v55, %v1757_v55 }
 0xf5b   :  { %1761 = vadd.xlane.f32.xlu1 %v1759_v63  ;;  %v1760_v0 = vmul.f32 %v1758_v62, %v1758_v62 }
 0xf5d   :  { %1763 = vadd.xlane.f32.xlu0 %v1760_v0 }
 0xfe8   :  { %v1762_v3 = vpop.xlane.xlu1 %1761 }
 0xfe9   :  { %v1765_v4 = vmul.f32 0.0078125, %v1762_v3 }
 0xfea   :  { %v1764_v6 = vpop.xlane.xlu0 %1763 }
 0xfeb   :  { %v1767_v7 = vadd.f32 1e-05, %v1765_v4  ;;  %v1766_v8 = vmul.f32 0.0078125, %v1764_v6 }
 0xfed   :  { %2236 = vrsqrt.f32 %v1767_v7  ;;  %v1768_v59 = vadd.f32 1e-05, %v1766_v8 }
 0xfef   :  { %2238 = vrsqrt.f32 %v1768_v59 }
 0xff7   :  { %v2237_v61 = vpop.eup %2236 }
 0xff8   :  { %v1771_v10 = vmul.f32 %v2237_v61, %v1757_v55 }
 0xff9   :  { %v2239_v60 = vpop.eup %2238 }
 0xffa   :  { %v1779_v11 = vmul.f32 %v1881_v9, %v1771_v10  ;;  %v1772_v58 = vmul.f32 %v2239_v60, %v1758_v62 }
 0xffc   :  { %v1787_v12 = vadd.f32 %v1882_v5, %v1779_v11  ;;  %v1780_v44 = vmul.f32 %v1881_v9, %v1772_v58 }
 0xffe   :  { %1789 = vst [vmem:[%s2802_s14] sm:$0xff] %v1787_v12  ;;  %v1788_v13 = vadd.f32 %v1882_v5, %v1780_v44 }
0x1000   :  { %1790 = vst [vmem:[%s2802_s14 + $0x8] sm:$0xff] %v1788_v13 }

// kernel: network_forward.7
= control target key start
LH: loop header
LB: loop body
LE: loop exit
PB: predicated region body
PF: predicated region fallthrough
CT: control target
= control target key end

     0   :  { %s837_s0 = inlined_call_operand.vmem [shape: f32[2,8,128], index: 0, kind: input, shape index: {}]   ;;  %s838_s1 = inlined_call_operand.vmem [shape: f32[2,8,1], index: 1, kind: input, shape index: {}]   ;;  %s839_s2 = inlined_call_operand.vmem [shape: bf16[128,128], index: 2, kind: input, shape index: {}]   ;;  %s840_s3 = inlined_call_operand.vmem [shape: f32[1,128], index: 3, kind: input, shape index: {}]   ;;  %s841_s4 = inlined_call_operand.vmem [shape: f32[1,128], index: 4, kind: input, shape index: {}]   ;;  %s842_s5 = inlined_call_operand.vmem [shape: f32[1,128], index: 5, kind: input, shape index: {}]   ;;  %s843_s6 = inlined_call_operand.vmem [shape: f32[1,128], index: 6, kind: input, shape index: {}]   ;;  %s844_s7 = inlined_call_operand.<no memory space> [shape: f32[1,1], index: 7, kind: input, shape index: {}]   ;;  %s845_s8 = inlined_call_operand.vmem [shape: f32[1,128], index: 8, kind: input, shape index: {}]   ;;  %s846_s9 = inlined_call_operand.vmem [shape: f32[1,128], index: 9, kind: input, shape index: {}]   ;;  %s847_s10 = inlined_call_operand.vmem [shape: bf16[128,32], index: 10, kind: input, shape index: {}]   ;;  %s848_s11 = inlined_call_operand.vmem [shape: f32[1,32], index: 11, kind: input, shape index: {}]   ;;  %s849_s12 = inlined_call_operand.hbm [shape: f32[2,1,32], index: 12, kind: output, shape index: {}]  }
   0x1   :  { %v17_v0 = vstv %s844_s7 }
   0x2   :  { %18 = vst [vmem:[#allocation2] sm:$0x1] %v17_v0 }
   0x3   :  { %v583_v1 = vld [vmem:[%s839_s2] sm:$0xff]   ;;  %v639_v2 = vmov 0.0   ;;  %v584_v3 = vld [vmem:[%s839_s2 + $0x8] sm:$0xff]   ;;  %vm640_vm0 = vmmov 0   ;;  %v585_v4 = vld [vmem:[%s839_s2 + $0x10] sm:$0xff]  }
   0x4   :  { %534 = vmatprep.subr.bf16.mxu0 %v639_v2  ;;  %554 = vmatprep.subr.bf16.mxu1 %v639_v2  ;;  %v586_v5 = vld [vmem:[%s839_s2 + $0x18] sm:$0xff]   ;;  %v587_v6 = vld [vmem:[%s839_s2 + $0x20] sm:$0xff]  }
   0x5   :  { %535 = vmatpush3.bf16.msra.mxu0 %v583_v1  ;;  %550 = vmatprep.mubr.msk.bf16.mxu0 %vm640_vm0, %v639_v2 }
   0x6   :  { %536 = vmatprep.subr.bf16.mxu0 %v639_v2  ;;  %570 = vmatprep.mubr.msk.bf16.mxu1 %vm640_vm0, %v639_v2 }
   0x9   :  { %537 = vmatpush3.bf16.msra.mxu0 %v584_v3 }
   0xa   :  { %538 = vmatprep.subr.bf16.mxu0 %v639_v2 }
   0xd   :  { %539 = vmatpush3.bf16.msra.mxu0 %v585_v4 }
   0xe   :  { %540 = vmatprep.subr.bf16.mxu0 %v639_v2 }
  0x11   :  { %541 = vmatpush3.bf16.msra.mxu0 %v586_v5 }
  0x12   :  { %19 = vsyncpa [#allocation4], 0  ;;  %542 = vmatprep.subr.bf16.mxu0 %v639_v2  ;;  %v588_v7 = vld [vmem:[%s839_s2 + $0x28] sm:$0xff]   ;;  %v589_v8 = vld [vmem:[%s839_s2 + $0x30] sm:$0xff]   ;;  %v641_v1 = vmov 0   ;;  %vm245_vm1 = vcmask 7168  }
  0x13   :  { %v590_v9 = vld [vmem:[%s839_s2 + $0x38] sm:$0xff]   ;;  %v751_v10 = vld [vmem:[%s837_s0] sm:$0xff]  ;;  %v756_v11 = vld [vmem:[%s837_s0 + $0x8] sm:$0xff]  ;;  %581 = vset.pattern.permute.xlu0 %v641_v1  ;;  %582 = vset.pattern.permute.xlu1 %v641_v1  ;;  %vm356_vm2 = vcmask 1041409   ;;  %s643_s26 = smov [#allocation3]   ;;  %vm473_vm3 = vcmask 253952  }
  0x14   :  { %v49_v12 = vpack.c.bf16 %v756_v11, %v751_v10  ;;  %v492_v15 = vld [vmem:[%s840_s3] ss:$0 sm:$0xff]  ;;  %v48_v5 = vld [vmem:[%s838_s1 + $0x8] sm:$0xff] }
  0x15   :  { %543 = vmatpush3.bf16.msra.mxu0 %v587_v6  ;;  %v501_v35 = vld [vmem:[%s841_s4] ss:$0 sm:$0xff]  ;;  %s481_s4 = sshll.u32 %s643_s26, 4  ;;  %s482_s4 = int_to_ptr.vmem [resolvable:$true] %s481_s4 }
  0x16   :  { %544 = vmatprep.subr.bf16.mxu0 %v639_v2  ;;  %v502_v37 = vld [vmem:[%s842_s5] ss:$0 sm:$0xff]  ;;  %s615_s5 = scalar_lea.vmem %s482_s4, 32  ;;  %p620_p1 = scmp.lt.s32.totalorder %s482_s4, %s482_s4 }
  0x17   :  { %v503_v57 = vld [vmem:[%s843_s6] ss:$0 sm:$0xff]  ;;  %p616_p0 = scmp.ne.s32.totalorder %s482_s4, %s615_s5  ;;  %p621_p2 = scmp.lt.s32.totalorder %s615_s5, %s615_s5 }
  0x18   :  { %v591_v3 = vld [vmem:[%s847_s10] sm:$0xff]  }
  0x19   :  { %545 = vmatpush3.bf16.msra.mxu0 %v588_v7  ;;  %555 = vmatpush3.bf16.msra.mxu1 %v591_v3  ;;  %v504_v4 = vld [vmem:[#allocation2] ss:$0 sm:$0xff]  ;;  %p622_p3 = por %p621_p2, %p620_p1 }
  0x1a   :  { %546 = vmatprep.subr.bf16.mxu0 %v639_v2  ;;  %556 = vmatprep.subr.bf16.mxu1 %v639_v2 }
  0x1b   :  { %p623_p4 = pnand %p622_p3, %p616_p0 }
  0x1d   :  { %547 = vmatpush3.bf16.msra.mxu0 %v589_v8 }
  0x1e   :  { %548 = vmatprep.subr.bf16.mxu0 %v639_v2 }
  0x21   :  { %549 = vmatpush3.bf16.msra.mxu0 %v590_v9  ;;  %v47_v9 = vld [vmem:[%s838_s1] sm:$0xff] }
  0x24   :  { %551 = vmatmul.mubr.bf16.vlgmr.msra.gmra.mrb[0].mxu0 %v49_v12 }
  0xf7   :  { %v155_v13 = vpop.f32.mrb[0].mxu0 }
  0xf8   :  { %v552_v14 = vpop.f32.mrb[1].mxu0  ;;  %v156_v19 = vadd.f32 %v492_v15, %v155_v13 }
  0xf9   :  { %v158_v16 = vpop.f32.mrb[2].mxu0 }
  0xfa   :  { %v159_v17 = vadd.f32 %v492_v15, %v158_v16  ;;  %v553_v18 = vpop.f32.mrb[3].mxu0 }
  0xfc   :  { %166 = vadd.xlane.f32.xlu0 %v159_v17 }
 0x100   :  { %164 = vadd.xlane.f32.xlu0 %v156_v19 }
 0x189   :  { %v167_v20 = vpop.xlane.xlu0 %166 }
 0x18a   :  { %v170_v21 = vmul.f32 0.0078125, %v167_v20 }
 0x18c   :  { %v172_v22 = vsub.f32 %v159_v17, %v170_v21 }
 0x18d   :  { %v165_v23 = vpop.xlane.xlu0 %164 }
 0x18e   :  { %v169_v24 = vmul.f32 0.0078125, %v165_v23  ;;  %v174_v25 = vmul.f32 %v172_v22, %v172_v22 }
 0x190   :  { %v171_v26 = vsub.f32 %v156_v19, %v169_v24  ;;  %177 = vadd.xlane.f32.xlu1 %v174_v25 }
 0x192   :  { %v173_v27 = vmul.f32 %v171_v26, %v171_v26 }
 0x194   :  { %175 = vadd.xlane.f32.xlu1 %v173_v27 }
 0x21d   :  { %v178_v28 = vpop.xlane.xlu1 %177 }
 0x21e   :  { %v180_v29 = vmul.f32 0.0078125, %v178_v28 }
 0x220   :  { %v182_v30 = vadd.f32 1e-05, %v180_v29 }
 0x221   :  { %v176_v31 = vpop.xlane.xlu1 %175 }
 0x222   :  { %599 = vrsqrt.f32 %v182_v30  ;;  %v179_v32 = vmul.f32 0.0078125, %v176_v31 }
 0x224   :  { %v181_v33 = vadd.f32 1e-05, %v179_v32 }
 0x226   :  { %601 = vrsqrt.f32 %v181_v33 }
 0x22c   :  { %v600_v34 = vpop.eup %599 }
 0x22d   :  { %v186_v36 = vmul.f32 %v600_v34, %v172_v22 }
 0x22f   :  { %v194_v38 = vmul.f32 %v501_v35, %v186_v36 }
 0x230   :  { %v602_v39 = vpop.eup %601 }
 0x231   :  { %v202_v40 = vadd.f32 %v502_v37, %v194_v38  ;;  %v185_v41 = vmul.f32 %v602_v39, %v171_v26 }
 0x233   :  { %v193_v42 = vmul.f32 %v501_v35, %v185_v41  ;;  %v206_v43 = vmul.f32 0.044715, %v202_v40  ;;  %v204_v55 = vmul.f32 0.5, %v202_v40 }
 0x235   :  { %v201_v44 = vadd.f32 %v502_v37, %v193_v42  ;;  %v208_v45 = vmul.f32 %v206_v43, %v202_v40 }
 0x237   :  { %v210_v46 = vmul.f32 %v208_v45, %v202_v40  ;;  %v205_v47 = vmul.f32 0.044715, %v201_v44  ;;  %v203_v61 = vmul.f32 0.5, %v201_v44 }
 0x239   :  { %v212_v48 = vadd.f32 %v210_v46, %v202_v40  ;;  %v207_v49 = vmul.f32 %v205_v47, %v201_v44 }
 0x23b   :  { %v214_v50 = vmul.f32 0.7978846, %v212_v48  ;;  %v209_v51 = vmul.f32 %v207_v49, %v201_v44 }
 0x23d   :  { %603 = vtanh.f32 %v214_v50  ;;  %v211_v52 = vadd.f32 %v209_v51, %v201_v44  ;;  %v592_v51 = vld [vmem:[%s847_s10 + $0x8] sm:$0xff]  }
 0x23e   :  { %557 = vmatpush3.bf16.msra.mxu1 %v592_v51 }
 0x23f   :  { %v213_v53 = vmul.f32 0.7978846, %v211_v52  ;;  %558 = vmatprep.subr.bf16.mxu1 %v639_v2 }
 0x241   :  { %605 = vtanh.f32 %v213_v53 }
 0x247   :  { %v604_v54 = vpop.eup %603 }
 0x248   :  { %v218_v56 = vadd.f32 1.0, %v604_v54  ;;  %v593_v54 = vld [vmem:[%s847_s10 + $0x10] sm:$0xff]  }
 0x249   :  { %559 = vmatpush3.bf16.msra.mxu1 %v593_v54 }
 0x24a   :  { %v220_v58 = vmul.f32 %v218_v56, %v204_v55  ;;  %560 = vmatprep.subr.bf16.mxu1 %v639_v2  ;;  %v594_v55 = vld [vmem:[%s847_s10 + $0x18] sm:$0xff]   ;;  %v595_v56 = vld [vmem:[%s847_s10 + $0x20] sm:$0xff]  }
 0x24b   :  { %v606_v59 = vpop.eup %605 }
 0x24c   :  { %v229_v60 = vmul.f32 %v503_v57, %v220_v58  ;;  %v217_v62 = vadd.f32 1.0, %v606_v59  ;;  %v597_v58 = vld [vmem:[%s847_s10 + $0x30] sm:$0xff]   ;;  %v598_v59 = vld [vmem:[%s847_s10 + $0x38] sm:$0xff]  }
 0x24d   :  { %561 = vmatpush3.bf16.msra.mxu1 %v594_v55 }
 0x24e   :  { %232 = vadd.xlane.f32.xlu0 %v229_v60  ;;  %v219_v63 = vmul.f32 %v217_v62, %v203_v61  ;;  %562 = vmatprep.subr.bf16.mxu1 %v639_v2 }
 0x250   :  { %v228_v0 = vmul.f32 %v503_v57, %v219_v63  ;;  %v596_v57 = vld [vmem:[%s847_s10 + $0x28] sm:$0xff]  }
 0x251   :  { %563 = vmatpush3.bf16.msra.mxu1 %v595_v56 }
 0x252   :  { %230 = vadd.xlane.f32.xlu1 %v228_v0  ;;  %564 = vmatprep.subr.bf16.mxu1 %v639_v2 }
 0x255   :  { %565 = vmatpush3.bf16.msra.mxu1 %v596_v57 }
 0x256   :  { %566 = vmatprep.subr.bf16.mxu1 %v639_v2 }
 0x259   :  { %567 = vmatpush3.bf16.msra.mxu1 %v597_v58 }
 0x25a   :  { %568 = vmatprep.subr.bf16.mxu1 %v639_v2 }
 0x25d   :  { %569 = vmatpush3.bf16.msra.mxu1 %v598_v59 }
 0x2db   :  { %v233_v6 = vpop.xlane.xlu0 %232 }
 0x2dc   :  { %v242_v7 = vadd.f32 %v504_v4, %v233_v6 }
 0x2de   :  { %v244_v8 = vadd.f32 %v242_v7, %v48_v5 }
 0x2df   :  { %v231_v12 = vpop.xlane.xlu1 %230 }
 0x2e0   :  { %v253_v13 = vsel %vm245_vm1, %v244_v8, -inf  ;;  %v241_v14 = vadd.f32 %v504_v4, %v231_v12 }
 0x2e1   :  { %v254_v15 = vrot.slane %v253_v13, 4 }
 0x2e2   :  { %v243_v16 = vadd.f32 %v241_v14, %v47_v9  ;;  %v505_v9 = vld [vmem:[%s845_s8] ss:$0 sm:$0xff] }
 0x2e3   :  { %v255_v17 = vmax.f32 %v253_v13, %v254_v15 }
 0x2e4   :  { %v246_v18 = vsel %vm245_vm1, %v243_v16, -inf }
 0x2e5   :  { %v256_v19 = vrot.slane %v255_v17, 2  ;;  %v247_v20 = vrot.slane %v246_v18, 4 }
 0x2e7   :  { %v257_v21 = vmax.f32 %v255_v17, %v256_v19  ;;  %v248_v22 = vmax.f32 %v246_v18, %v247_v20 }
 0x2e9   :  { %v258_v23 = vrot.slane %v257_v21, 1  ;;  %v249_v24 = vrot.slane %v248_v22, 2 }
 0x2eb   :  { %v259_v25 = vmax.f32 %v257_v21, %v258_v23  ;;  %v250_v26 = vmax.f32 %v248_v22, %v249_v24 }
 0x2ed   :  { %v261_v27 = vsub.f32 %v244_v8, %v259_v25  ;;  %v251_v28 = vrot.slane %v250_v26, 1  ;;  %v642_v25 = vmov 1966171168  }
 0x2ef   :  { %v264_v29 = vmul.f32 1.442695, %v261_v27  ;;  %v252_v30 = vmax.f32 %v250_v26, %v251_v28  ;;  %v450_v26 = vunpack.c.l.s4 %v642_v25  ;;  %v452_v27 = vlaneseq }
 0x2f1   :  { %607 = vpow2.f32 %v264_v29  ;;  %v260_v31 = vsub.f32 %v243_v16, %v252_v30  ;;  %v451_v28 = vunpack.c.0.s8 %v450_v26  ;;  %v453_v29 = vshrl.u32 %v452_v27, 7  ;;  %v507_v30 = vld [vmem:[%s848_s11] ss:$0 sm:$0xff] }
 0x2f3   :  { %v262_v32 = vmul.f32 1.442695, %v260_v31  ;;  %v454_v31 = vsub.s32 %v451_v28, %v453_v29 }
 0x2f5   :  { %609 = vpow2.f32 %v262_v32 }
 0x2fb   :  { %v608_v33 = vpop.eup %607 }
 0x2fc   :  { %v273_v34 = vsel %vm245_vm1, %v608_v33, 0.0 }
 0x2fd   :  { %v274_v35 = vrot.slane %v273_v34, 4 }
 0x2ff   :  { %v610_v36 = vpop.eup %609  ;;  %v275_v37 = vadd.f32 %v274_v35, %v273_v34 }
 0x300   :  { %v266_v38 = vsel %vm245_vm1, %v610_v36, 0.0 }
 0x301   :  { %v276_v39 = vrot.slane %v275_v37, 2  ;;  %v267_v40 = vrot.slane %v266_v38, 4 }
 0x303   :  { %v277_v41 = vadd.f32 %v276_v39, %v275_v37  ;;  %v268_v42 = vadd.f32 %v267_v40, %v266_v38 }
 0x305   :  { %v278_v43 = vrot.slane %v277_v41, 1  ;;  %v269_v44 = vrot.slane %v268_v42, 2 }
 0x307   :  { %v279_v45 = vadd.f32 %v278_v43, %v277_v41  ;;  %v270_v46 = vadd.f32 %v269_v44, %v268_v42 }
 0x309   :  { %611 = vrcp.f32 %v279_v45  ;;  %v271_v47 = vrot.slane %v270_v46, 1 }
 0x30b   :  { %v272_v48 = vadd.f32 %v271_v47, %v270_v46 }
 0x30d   :  { %613 = vrcp.f32 %v272_v48 }
 0x313   :  { %v612_v49 = vpop.eup %611 }
 0x314   :  { %v283_v50 = vmul.f32 %v612_v49, %v608_v33 }
 0x316   :  { %291 = vperm.xlu0 %581, %v283_v50  }
 0x317   :  { %v614_v52 = vpop.eup %613 }
 0x318   :  { %v282_v53 = vmul.f32 %v614_v52, %v610_v36 }
 0x31a   :  { %286 = vperm.xlu1 %582, %v282_v53  }
 0x395   :  { %v292_v60 = vpop.permute.xlu0 %291 }
 0x396   :  { %v295_v61 = vmul.f32 %v292_v60, %v756_v11  ;;  %v506_v11 = vld [vmem:[%s846_s9] ss:$0 sm:$0xff] }
 0x398   :  { %v302_v62 = vrot.slane %v295_v61, 4 }
 0x399   :  { %v287_v63 = vpop.permute.xlu1 %286 }
 0x39a   :  { %v303_v0 = vadd.f32 %v302_v62, %v295_v61  ;;  %v294_v1 = vmul.f32 %v287_v63, %v751_v10 }
 0x39c   :  { %v304_v3 = vrot.slane %v303_v0, 2  ;;  %v296_v4 = vrot.slane %v294_v1, 4 }
 0x39e   :  { %v305_v5 = vadd.f32 %v304_v3, %v303_v0  ;;  %v297_v6 = vadd.f32 %v296_v4, %v294_v1 }
 0x3a0   :  { %v306_v7 = vrot.slane %v305_v5, 1  ;;  %v298_v8 = vrot.slane %v297_v6, 2 }
 0x3a2   :  { %v307_v2 = vadd.f32 %v306_v7, %v305_v5  ;;  %v299_v12 = vadd.f32 %v298_v8, %v297_v6 }
 0x3a4   :  { %v316_v13 = vmul.f32 %v505_v9, %v307_v2  ;;  %v300_v14 = vrot.slane %v299_v12, 1 }
 0x3a6   :  { %v301_v15 = vadd.f32 %v300_v14, %v299_v12  ;;  %v325_v10 = vadd.f32 %v506_v11, %v316_v13 }
 0x3a8   :  { %v315_v16 = vmul.f32 %v505_v9, %v301_v15  ;;  %v327_v17 = vpack.c.bf16 %v325_v10, %v325_v10 }
 0x3aa   :  { %v324_v18 = vadd.f32 %v506_v11, %v315_v16  ;;  %v354_v19 = vunpack.c.l.b16 %v327_v17 }
 0x3ac   :  { %v326_v20 = vpack.c.bf16 %v324_v18, %v324_v18  ;;  %v355_v22 = vrot.slane %v354_v19, 7 }
 0x3ae   :  { %v353_v21 = vunpack.c.l.b16 %v326_v20 }
 0x3b0   :  { %v357_v23 = vsel %vm356_vm2, %v355_v22, %v353_v21 }
 0x3b1   :  { %v358_v24 = vpack.c.b16 %v357_v23, %v357_v23 }
 0x3b3   :  { %571 = vmatmul.mubr.bf16.vlgmr.msra.gmra.mrb[0].mxu1 %v358_v24 }
 0x486   :  { %v442_v32 = vpop.f32.mrb[0].mxu1 }
 0x487   :  { %v443_v33 = vadd.f32 %v507_v30, %v442_v32  ;;  %v572_v34 = vpop.f32.mrb[1].mxu1 }
 0x488   :  { %v445_v35 = vpop.f32.mrb[2].mxu1 }
 0x489   :  { %v455_v36 = vrot.slane %v443_v33, %v454_v31  ;;  %v573_v37 = vpop.f32.mrb[3].mxu1 }
 0x48b   :  { %v456_v38 = vcombine.high %v455_v36, %v455_v36  ;;  %v463_v39 = vrot.slane %v455_v36, %v454_v31 }
 0x48d   :  { %v470_v40 = vrot.slane %v456_v38, %v454_v31  ;;  %474 = vst.msk [vmem:[#allocation3] sm:$0x1] %vm473_vm3, %v463_v39 }
 0x48f   :  { %475 = vst.msk [vmem:[#allocation3 + $0x1] sm:$0x1] %vm473_vm3, %v470_v40 }
 0x490   :  { %626 = shalt.err (!%p623_p4)
}
 0x491   :  { %s627_s27 = scalar_lea.hbm %s849_s12, 32 }
 0x492   :  { %p628_p5 = scmp.ne.s32.totalorder %s849_s12, %s627_s27  ;;  %p631_p6 = scmp.lt.u32.totalorder %s627_s27, %s849_s12 }
 0x494   :  { %p633_p7 = pnand %p631_p6, %p628_p5 }
 0x496   :  { %636 = shalt.err (!%p633_p7)
}
 0x497   :  { %s644_s1 = smov 16   ;;  %s645_s13 = smov 1  }
 0x498   :  { %487 = dma.vmem_to_hbm [thread:$0]  %s482_s4, 32, %s849_s12, [#allocation4], %s644_s1, %s644_s1, %s645_s13  }
 0x499   :  { %637 = dma.done.wait [#allocation4], 32  }
 0x49a   :  { %638 = vsyncadd [#allocation4], 4294967264 }
 0x49b   :  { %491 = vsyncpa [#allocation4], 1 }

// kernel: network_forward.4
= control target key start
LH: loop header
LB: loop body
LE: loop exit
PB: predicated region body
PF: predicated region fallthrough
CT: control target
= control target key end

     0   :  { %s1369_s0 = inlined_call_operand.vmem [shape: f32[16,128], index: 0, kind: input, shape index: {}]   ;;  %s1370_s1 = inlined_call_operand.hbm [shape: bf16[128,512], index: 1, kind: input, shape index: {}]   ;;  %s1371_s2 = inlined_call_operand.vmem [shape: f32[1,512], index: 2, kind: input, shape index: {}]   ;;  %s1372_s3 = inlined_call_operand.hbm [shape: bf16[512,128], index: 3, kind: input, shape index: {}]   ;;  %s1373_s4 = inlined_call_operand.vmem [shape: f32[1,512], index: 4, kind: input, shape index: {}]   ;;  %s1374_s5 = inlined_call_operand.vmem [shape: f32[1,128], index: 5, kind: input, shape index: {}]   ;;  %s1375_s6 = inlined_call_operand.<no memory space> [shape: f32[1,1], index: 6, kind: input, shape index: {}]   ;;  %s1376_s7 = inlined_call_operand.vmem [shape: f32[1,128], index: 7, kind: input, shape index: {}]   ;;  %s1377_s8 = inlined_call_operand.vmem [shape: f32[1,128], index: 8, kind: input, shape index: {}]   ;;  %s1378_s9 = inlined_call_operand.vmem [shape: f32[16,128], index: 9, kind: output, shape index: {0}]   ;;  %s1379_s10 = inlined_call_operand.vmem [shape: f32[16,1], index: 10, kind: output, shape index: {1}]  }
   0x1   :  { %v16_v0 = vstv %s1375_s6 }
   0x2   :  { %17 = vst [vmem:[#allocation2] sm:$0x1] %v16_v0 }
   0x3   :  { %18 = vsyncpa [#allocation4], 0 }
   0x4   :  { %19 = vsyncpa [#allocation6], 0  ;;  %s1166_s15 = smov [#allocation3]   ;;  %s1118_s19 = scalar_lea.hbm %s1370_s1, 4096 }
   0x5   :  { %s27_s16 = sshll.u32 %s1166_s15, 4  ;;  %p1119_p0 = scmp.ne.s32.totalorder %s1370_s1, %s1118_s19  ;;  %s28_s16 = int_to_ptr.vmem [resolvable:$true] %s27_s16 }
   0x6   :  { %p1122_p1 = scmp.lt.u32.totalorder %s1118_s19, %s1370_s1 }
   0x8   :  { %p1124_p2 = pnand %p1122_p1, %p1119_p0 }
   0xa   :  { %1127 = shalt.err (!%p1124_p2)
}
   0xb   :  { %s1128_s6 = scalar_lea.vmem %s28_s16, 4096  ;;  %p1133_p4 = scmp.lt.s32.totalorder %s28_s16, %s28_s16 }
   0xc   :  { %p1129_p3 = scmp.ne.s32.totalorder %s28_s16, %s1128_s6  ;;  %p1134_p5 = scmp.lt.s32.totalorder %s1128_s6, %s1128_s6 }
   0xe   :  { %p1135_p6 = por %p1134_p5, %p1133_p4 }
  0x10   :  { %p1136_p7 = pnand %p1135_p6, %p1129_p3 }
  0x12   :  { %1139 = shalt.err (!%p1136_p7)
}
  0x13   :  { %s1167_s24 = smov 256   ;;  %s1168_s25 = smov 16  }
  0x14   :  { %33 = dma.hbm_to_vmem [thread:$0]  %s1370_s1, 4096, %s28_s16, [#allocation4], %s1167_s24, %s1167_s24, %s1168_s25  }
  0x15   :  { %s1169_s28 = smov [#allocation5]   ;;  %s1140_s12 = scalar_lea.hbm %s1372_s3, 4096 }
  0x16   :  { %s41_s29 = sshll.u32 %s1169_s28, 4  ;;  %p1141_p8 = scmp.ne.s32.totalorder %s1372_s3, %s1140_s12  ;;  %s42_s29 = int_to_ptr.vmem [resolvable:$true] %s41_s29 }
  0x17   :  { %p1144_p9 = scmp.lt.u32.totalorder %s1140_s12, %s1372_s3 }
  0x19   :  { %p1146_p10 = pnand %p1144_p9, %p1141_p8 }
  0x1b   :  { %1149 = shalt.err (!%p1146_p10)
}
  0x1c   :  { %s1150_s18 = scalar_lea.vmem %s42_s29, 4096  ;;  %p1155_p12 = scmp.lt.s32.totalorder %s42_s29, %s42_s29 }
  0x1d   :  { %p1151_p11 = scmp.ne.s32.totalorder %s42_s29, %s1150_s18  ;;  %p1156_p13 = scmp.lt.s32.totalorder %s1150_s18, %s1150_s18 }
  0x1f   :  { %p1157_p0 = por %p1156_p13, %p1155_p12 }
  0x21   :  { %p1158_p1 = pnand %p1157_p0, %p1151_p11 }
  0x23   :  { %1161 = shalt.err (!%p1158_p1)
}
  0x24   :  { %s1170_s1 = smov 64   ;;  %s1171_s16 = smov 4  }
  0x25   :  { %47 = dma.hbm_to_vmem [thread:$0]  %s1372_s3, 4096, %s42_s29, [#allocation6], %s1170_s1, %s1170_s1, %s1171_s16  }
  0x26   :  { %1162 = dma.done.wait [#allocation4], 4096  }
  0x27   :  { %1163 = vsyncadd [#allocation4], 4294963200 }
  0x28   :  { %1164 = dma.done.wait [#allocation6], 4096  }
  0x29   :  { %1165 = vsyncadd [#allocation6], 4294963200  ;;  %v1172_v1 = vmov 0   ;;  %v1018_v2 = vld [vmem:[#allocation3 + $0x4] ss:$16 sps:$4 sm:$0xff]   ;;  %v1070_v41 = vld [vmem:[#allocation5 + $0x48] sm:$0xff]  }
  0x2a   :  { %314 = vmatprep.mubr.bf16.mxu0 %v1172_v1  ;;  %357 = vmatprep.mubr.bf16.mxu1 %v1172_v1  ;;  %v1020_v3 = vld [vmem:[#allocation3 + $0xc] ss:$16 sps:$4 sm:$0xff]   ;;  %v1022_v4 = vld [vmem:[#allocation3] ss:$16 sps:$4 sm:$0xff]   ;;  %v1023_v5 = vld [vmem:[#allocation3 + $0x8] ss:$16 sps:$4 sm:$0xff]  }
  0x2b   :  { %282 = vmatprep.subr.bf16.mxu0 %v1018_v2  ;;  %325 = vmatprep.subr.bf16.mxu1 %v1020_v3  ;;  %v1024_v6 = vld [vmem:[#allocation3 + $0x24] ss:$16 sps:$4 sm:$0xff]   ;;  %v1026_v7 = vld [vmem:[#allocation3 + $0x2c] ss:$16 sps:$4 sm:$0xff]   ;;  %v1028_v8 = vld [vmem:[#allocation3 + $0x20] ss:$16 sps:$4 sm:$0xff]  }
  0x2c   :  { %283 = vmatpush1.bf16.msra.mxu0 %v1022_v4  ;;  %326 = vmatpush1.bf16.msra.mxu1 %v1023_v5  ;;  %v1029_v9 = vld [vmem:[#allocation3 + $0x28] ss:$16 sps:$4 sm:$0xff]   ;;  %v1030_v10 = vld [vmem:[#allocation3 + $0x44] ss:$16 sps:$4 sm:$0xff]   ;;  %v1032_v11 = vld [vmem:[#allocation3 + $0x4c] ss:$16 sps:$4 sm:$0xff]   ;;  %v102_v5 = vlaneseq }
  0x2d   :  { %284 = vmatprep.subr.bf16.mxu0 %v1024_v6  ;;  %327 = vmatprep.subr.bf16.mxu1 %v1026_v7  ;;  %v1034_v12 = vld [vmem:[#allocation3 + $0x40] ss:$16 sps:$4 sm:$0xff]   ;;  %v1035_v13 = vld [vmem:[#allocation3 + $0x48] ss:$16 sps:$4 sm:$0xff]   ;;  %v1036_v14 = vld [vmem:[#allocation3 + $0x64] ss:$16 sps:$4 sm:$0xff]  }
  0x2e   :  { %v1038_v15 = vld [vmem:[#allocation3 + $0x6c] ss:$16 sps:$4 sm:$0xff]   ;;  %v1040_v16 = vld [vmem:[#allocation3 + $0x60] ss:$16 sps:$4 sm:$0xff]   ;;  %v1041_v17 = vld [vmem:[#allocation3 + $0x68] ss:$16 sps:$4 sm:$0xff]  }
  0x2f   :  { %v1042_v18 = vld [vmem:[#allocation3 + $0x84] ss:$16 sps:$4 sm:$0xff]   ;;  %v1044_v19 = vld [vmem:[#allocation3 + $0x8c] ss:$16 sps:$4 sm:$0xff]   ;;  %v1046_v20 = vld [vmem:[#allocation3 + $0x80] ss:$16 sps:$4 sm:$0xff]  }
  0x30   :  { %285 = vmatpush1.bf16.msra.mxu0 %v1028_v8  ;;  %328 = vmatpush1.bf16.msra.mxu1 %v1029_v9  ;;  %v1047_v21 = vld [vmem:[#allocation3 + $0x88] ss:$16 sps:$4 sm:$0xff]   ;;  %v1048_v22 = vld [vmem:[#allocation3 + $0xa4] ss:$16 sps:$4 sm:$0xff]   ;;  %v1050_v23 = vld [vmem:[#allocation3 + $0xac] ss:$16 sps:$4 sm:$0xff]  }
  0x31   :  { %286 = vmatprep.subr.bf16.mxu0 %v1030_v10  ;;  %329 = vmatprep.subr.bf16.mxu1 %v1032_v11  ;;  %v1052_v24 = vld [vmem:[#allocation3 + $0xa0] ss:$16 sps:$4 sm:$0xff]   ;;  %v1053_v25 = vld [vmem:[#allocation3 + $0xa8] ss:$16 sps:$4 sm:$0xff]   ;;  %v1054_v26 = vld [vmem:[#allocation3 + $0xc4] ss:$16 sps:$4 sm:$0xff]  }
  0x32   :  { %v1056_v27 = vld [vmem:[#allocation3 + $0xcc] ss:$16 sps:$4 sm:$0xff]   ;;  %v1058_v28 = vld [vmem:[#allocation3 + $0xc0] ss:$16 sps:$4 sm:$0xff]   ;;  %v1059_v29 = vld [vmem:[#allocation3 + $0xc8] ss:$16 sps:$4 sm:$0xff]  }
  0x33   :  { %v1060_v30 = vld [vmem:[#allocation3 + $0xe4] ss:$16 sps:$4 sm:$0xff]   ;;  %v1062_v31 = vld [vmem:[#allocation3 + $0xec] ss:$16 sps:$4 sm:$0xff]   ;;  %v1064_v32 = vld [vmem:[#allocation3 + $0xe0] ss:$16 sps:$4 sm:$0xff]  }
  0x34   :  { %287 = vmatpush1.bf16.msra.mxu0 %v1034_v12  ;;  %330 = vmatpush1.bf16.msra.mxu1 %v1035_v13  ;;  %v1065_v33 = vld [vmem:[#allocation3 + $0xe8] ss:$16 sps:$4 sm:$0xff]   ;;  %v65_v34 = vld [vmem:[%s1369_s0] sm:$0xff]  ;;  %v1074_v45 = vld [vmem:[#allocation5 + $0x50] sm:$0xff]   ;;  %v1262_v6 = vshrl.u32 %v102_v5, 7  ;;  %vm842_vm0 = vcmask 7168  }
  0x35   :  { %288 = vmatprep.subr.bf16.mxu0 %v1036_v14  ;;  %331 = vmatprep.subr.bf16.mxu1 %v1038_v15  ;;  %v66_v35 = vld [vmem:[%s1369_s0 + $0x8] sm:$0xff]  ;;  %v1075_v46 = vld [vmem:[#allocation5 + $0xd0] sm:$0xff]   ;;  %v1078_v49 = vld [vmem:[#allocation5 + $0x58] sm:$0xff]  }
  0x36   :  { %v67_v36 = vpack.c.bf16 %v66_v35, %v65_v34  ;;  %v1066_v37 = vld [vmem:[#allocation5 + $0x40] sm:$0xff]   ;;  %v1071_v42 = vld [vmem:[#allocation5 + $0xc8] sm:$0xff]   ;;  %v1076_v47 = vld [vmem:[#allocation5 + $0x10] sm:$0xff]   ;;  %v104_v7 = vsub.s32 0, %v1262_v6  ;;  %v112_v8 = vsub.s32 2, %v1262_v6  ;;  %v108_v10 = vsub.s32 1, %v1262_v6 }
  0x37   :  { %v1067_v38 = vld [vmem:[#allocation5 + $0xc0] sm:$0xff]   ;;  %v1072_v43 = vld [vmem:[#allocation5 + $0x8] sm:$0xff]   ;;  %v1077_v48 = vld [vmem:[#allocation5 + $0x90] sm:$0xff]   ;;  %v116_v11 = vsub.s32 3, %v1262_v6 }
  0x38   :  { %289 = vmatpush1.bf16.msra.mxu0 %v1040_v16  ;;  %332 = vmatpush1.bf16.msra.mxu1 %v1041_v17  ;;  %v1068_v39 = vld [vmem:[#allocation5] sm:$0xff]   ;;  %v1073_v44 = vld [vmem:[#allocation5 + $0x88] sm:$0xff]   ;;  %v1079_v50 = vld [vmem:[#allocation5 + $0xd8] sm:$0xff]  }
  0x39   :  { %290 = vmatprep.subr.bf16.mxu0 %v1042_v18  ;;  %333 = vmatprep.subr.bf16.mxu1 %v1044_v19  ;;  %v1069_v40 = vld [vmem:[#allocation5 + $0x80] sm:$0xff]   ;;  %v1080_v51 = vld [vmem:[#allocation5 + $0x18] sm:$0xff]   ;;  %v1086_v57 = vld [vmem:[#allocation5 + $0x68] sm:$0xff]  }
  0x3a   :  { %v1081_v52 = vld [vmem:[#allocation5 + $0x98] sm:$0xff]   ;;  %v1082_v53 = vld [vmem:[#allocation5 + $0x60] sm:$0xff]   ;;  %v1087_v58 = vld [vmem:[#allocation5 + $0xe8] sm:$0xff]  }
  0x3b   :  { %v1083_v54 = vld [vmem:[#allocation5 + $0xe0] sm:$0xff]   ;;  %v1088_v59 = vld [vmem:[#allocation5 + $0x28] sm:$0xff]   ;;  %v1090_v61 = vld [vmem:[#allocation5 + $0x70] sm:$0xff]  }
  0x3c   :  { %291 = vmatpush1.bf16.msra.mxu0 %v1046_v20  ;;  %334 = vmatpush1.bf16.msra.mxu1 %v1047_v21  ;;  %v1084_v55 = vld [vmem:[#allocation5 + $0x20] sm:$0xff]   ;;  %v1089_v60 = vld [vmem:[#allocation5 + $0xa8] sm:$0xff]   ;;  %v1091_v62 = vld [vmem:[#allocation5 + $0xf0] sm:$0xff]  }
  0x3d   :  { %292 = vmatprep.subr.bf16.mxu0 %v1048_v22  ;;  %335 = vmatprep.subr.bf16.mxu1 %v1050_v23  ;;  %v1085_v56 = vld [vmem:[#allocation5 + $0xa0] sm:$0xff]   ;;  %v1092_v63 = vld [vmem:[#allocation5 + $0x30] sm:$0xff]   ;;  %v1094_v1 = vld [vmem:[#allocation5 + $0x78] sm:$0xff]  }
  0x3e   :  { %v1093_v0 = vld [vmem:[#allocation5 + $0xb0] sm:$0xff]   ;;  %v1095_v2 = vld [vmem:[#allocation5 + $0xf8] sm:$0xff]  }
  0x3f   :  { %v1096_v3 = vld [vmem:[#allocation5 + $0x38] sm:$0xff]  }
  0x40   :  { %293 = vmatpush1.bf16.msra.mxu0 %v1052_v24  ;;  %336 = vmatpush1.bf16.msra.mxu1 %v1053_v25  ;;  %v1097_v4 = vld [vmem:[#allocation5 + $0xb8] sm:$0xff]  }
  0x41   :  { %294 = vmatprep.subr.bf16.mxu0 %v1054_v26  ;;  %337 = vmatprep.subr.bf16.mxu1 %v1056_v27  ;;  %v100_v9 = vld [vmem:[%s1371_s2] sm:$0xf] }
  0x42   :  { %v105_v12 = vrot.slane %v100_v9, %v104_v7  ;;  %v113_v13 = vrot.slane %v100_v9, %v112_v8  ;;  %v109_v14 = vrot.slane %v100_v9, %v108_v10  ;;  %v117_v15 = vrot.slane %v100_v9, %v116_v11 }
  0x44   :  { %295 = vmatpush1.bf16.msra.mxu0 %v1058_v28  ;;  %338 = vmatpush1.bf16.msra.mxu1 %v1059_v29 }
  0x45   :  { %296 = vmatprep.subr.bf16.mxu0 %v1060_v30  ;;  %339 = vmatprep.subr.bf16.mxu1 %v1062_v31 }
  0x48   :  { %297 = vmatpush1.bf16.msra.mxu0 %v1064_v32  ;;  %340 = vmatpush1.bf16.msra.mxu1 %v1065_v33 }
  0x49   :  { %966 = vmatprep.subr.bf16.mxu0 %v1066_v37  ;;  %988 = vmatprep.subr.bf16.mxu1 %v1067_v38 }
  0x4b   :  { %315 = vmatmul.mubr.bf16.vlgmr.msra.gmra.mrb[0].mxu0 %v67_v36  ;;  %358 = vmatmul.mubr.bf16.vlgmr.msra.gmra.mrb[0].mxu1 %v67_v36 }
  0x4c   :  { %967 = vmatpush3.bf16.msra.mxu0 %v1068_v39  ;;  %989 = vmatpush3.bf16.msra.mxu1 %v1069_v40 }
  0x4d   :  { %968 = vmatprep.subr.bf16.mxu0 %v1070_v41  ;;  %990 = vmatprep.subr.bf16.mxu1 %v1071_v42 }
  0x50   :  { %969 = vmatpush3.bf16.msra.mxu0 %v1072_v43  ;;  %991 = vmatpush3.bf16.msra.mxu1 %v1073_v44 }
  0x51   :  { %970 = vmatprep.subr.bf16.mxu0 %v1074_v45  ;;  %992 = vmatprep.subr.bf16.mxu1 %v1075_v46 }
  0x54   :  { %971 = vmatpush3.bf16.msra.mxu0 %v1076_v47  ;;  %993 = vmatpush3.bf16.msra.mxu1 %v1077_v48 }
  0x55   :  { %972 = vmatprep.subr.bf16.mxu0 %v1078_v49  ;;  %994 = vmatprep.subr.bf16.mxu1 %v1079_v50 }
  0x58   :  { %973 = vmatpush3.bf16.msra.mxu0 %v1080_v51  ;;  %995 = vmatpush3.bf16.msra.mxu1 %v1081_v52 }
  0x59   :  { %974 = vmatprep.subr.bf16.mxu0 %v1082_v53  ;;  %996 = vmatprep.subr.bf16.mxu1 %v1083_v54 }
  0x5c   :  { %975 = vmatpush3.bf16.msra.mxu0 %v1084_v55  ;;  %997 = vmatpush3.bf16.msra.mxu1 %v1085_v56 }
  0x5d   :  { %976 = vmatprep.subr.bf16.mxu0 %v1086_v57  ;;  %998 = vmatprep.subr.bf16.mxu1 %v1087_v58 }
  0x60   :  { %977 = vmatpush3.bf16.msra.mxu0 %v1088_v59  ;;  %999 = vmatpush3.bf16.msra.mxu1 %v1089_v60 }
  0x61   :  { %978 = vmatprep.subr.bf16.mxu0 %v1090_v61  ;;  %1000 = vmatprep.subr.bf16.mxu1 %v1091_v62 }
  0x64   :  { %979 = vmatpush3.bf16.msra.mxu0 %v1092_v63  ;;  %1001 = vmatpush3.bf16.msra.mxu1 %v1093_v0 }
  0x65   :  { %980 = vmatprep.subr.bf16.mxu0 %v1094_v1  ;;  %1002 = vmatprep.subr.bf16.mxu1 %v1095_v2 }
  0x68   :  { %981 = vmatpush3.bf16.msra.mxu0 %v1096_v3  ;;  %1003 = vmatpush3.bf16.msra.mxu1 %v1097_v4 }
 0x11e   :  { %v316_v16 = vpop.f32.mrb[0].mxu0  ;;  %v359_v17 = vpop.f32.mrb[0].mxu1 }
 0x11f   :  { %v1279_v18 = vadd.f32 %v316_v16, %v105_v12  ;;  %v1281_v19 = vadd.f32 %v359_v17, %v113_v13  ;;  %v318_v20 = vpop.f32.mrb[1].mxu0  ;;  %v361_v21 = vpop.f32.mrb[1].mxu1 }
 0x120   :  { %v1283_v22 = vadd.f32 %v318_v20, %v109_v14  ;;  %v1285_v23 = vadd.f32 %v361_v21, %v117_v15  ;;  %v320_v24 = vpop.f32.mrb[2].mxu0  ;;  %v363_v25 = vpop.f32.mrb[2].mxu1 }
 0x121   :  { %v376_v26 = vmul.f32 0.044715, %v1279_v18  ;;  %v378_v27 = vmul.f32 0.044715, %v1281_v19  ;;  %v1289_v28 = vadd.f32 %v320_v24, %v105_v12  ;;  %v1291_v29 = vadd.f32 %v363_v25, %v113_v13  ;;  %v322_v30 = vpop.f32.mrb[3].mxu0  ;;  %v365_v31 = vpop.f32.mrb[3].mxu1 }
 0x122   :  { %v377_v32 = vmul.f32 0.044715, %v1283_v22  ;;  %v379_v33 = vmul.f32 0.044715, %v1285_v23  ;;  %v1295_v34 = vadd.f32 %v322_v30, %v109_v14  ;;  %v1297_v35 = vadd.f32 %v365_v31, %v117_v15  ;;  %v789_v13 = vld [vmem:[%s1373_s4] sm:$0xf] }
 0x123   :  { %v384_v36 = vmul.f32 %v376_v26, %v1279_v18  ;;  %v386_v37 = vmul.f32 %v378_v27, %v1281_v19  ;;  %v380_v38 = vmul.f32 0.044715, %v1289_v28  ;;  %v382_v39 = vmul.f32 0.044715, %v1291_v29 }
 0x124   :  { %v385_v40 = vmul.f32 %v377_v32, %v1283_v22  ;;  %v387_v41 = vmul.f32 %v379_v33, %v1285_v23  ;;  %v381_v42 = vmul.f32 0.044715, %v1295_v34  ;;  %v383_v43 = vmul.f32 0.044715, %v1297_v35 }
 0x125   :  { %v392_v44 = vmul.f32 %v384_v36, %v1279_v18  ;;  %v394_v45 = vmul.f32 %v386_v37, %v1281_v19  ;;  %v388_v46 = vmul.f32 %v380_v38, %v1289_v28  ;;  %v390_v47 = vmul.f32 %v382_v39, %v1291_v29 }
 0x126   :  { %v393_v48 = vmul.f32 %v385_v40, %v1283_v22  ;;  %v395_v49 = vmul.f32 %v387_v41, %v1285_v23  ;;  %v389_v50 = vmul.f32 %v381_v42, %v1295_v34  ;;  %v391_v51 = vmul.f32 %v383_v43, %v1297_v35 }
 0x127   :  { %v400_v52 = vadd.f32 %v392_v44, %v1279_v18  ;;  %v402_v53 = vadd.f32 %v394_v45, %v1281_v19  ;;  %v396_v54 = vmul.f32 %v388_v46, %v1289_v28  ;;  %v398_v55 = vmul.f32 %v390_v47, %v1291_v29 }
 0x128   :  { %v397_v56 = vmul.f32 %v389_v50, %v1295_v34  ;;  %v399_v57 = vmul.f32 %v391_v51, %v1297_v35  ;;  %v401_v62 = vadd.f32 %v393_v48, %v1283_v22  ;;  %v403_v2 = vadd.f32 %v395_v49, %v1285_v23 }
 0x129   :  { %v408_v58 = vmul.f32 0.7978846, %v400_v52  ;;  %v410_v59 = vmul.f32 0.7978846, %v402_v53  ;;  %v404_v60 = vadd.f32 %v396_v54, %v1289_v28  ;;  %v406_v61 = vadd.f32 %v398_v55, %v1291_v29 }
 0x12a   :  { %v405_v63 = vadd.f32 %v397_v56, %v1295_v34  ;;  %v409_v3 = vmul.f32 0.7978846, %v401_v62  ;;  %v407_v5 = vadd.f32 %v399_v57, %v1297_v35  ;;  %v411_v9 = vmul.f32 0.7978846, %v403_v2 }
 0x12b   :  { %1098 = vtanh.f32 %v408_v58  ;;  %v412_v0 = vmul.f32 0.7978846, %v404_v60  ;;  %v414_v1 = vmul.f32 0.7978846, %v406_v61  ;;  %v794_v16 = vrot.slane %v789_v13, %v104_v7 }
 0x12c   :  { %1100 = vtanh.f32 %v410_v59  ;;  %v413_v4 = vmul.f32 0.7978846, %v405_v63  ;;  %v415_v12 = vmul.f32 0.7978846, %v407_v5  ;;  %v802_v17 = vrot.slane %v789_v13, %v112_v8 }
 0x12d   :  { %1102 = vtanh.f32 %v412_v0  ;;  %v368_v20 = vmul.f32 0.5, %v1279_v18  ;;  %v798_v25 = vrot.slane %v789_v13, %v108_v10  ;;  %v370_v26 = vmul.f32 0.5, %v1281_v19  ;;  %v930_v0 = vld [vmem:[%s1374_s5] ss:$0 sm:$0xff] }
 0x12e   :  { %1104 = vtanh.f32 %v414_v1  ;;  %v806_v30 = vrot.slane %v789_v13, %v116_v11  ;;  %v369_v32 = vmul.f32 0.5, %v1283_v22  ;;  %v372_v7 = vmul.f32 0.5, %v1289_v28 }
 0x12f   :  { %1106 = vtanh.f32 %v409_v3  ;;  %v373_v18 = vmul.f32 0.5, %v1295_v34  ;;  %v374_v37 = vmul.f32 0.5, %v1291_v29  ;;  %v371_v40 = vmul.f32 0.5, %v1285_v23 }
 0x130   :  { %1108 = vtanh.f32 %v413_v4  ;;  %v375_v6 = vmul.f32 0.5, %v1297_v35 }
 0x131   :  { %1110 = vtanh.f32 %v411_v9 }
 0x132   :  { %1112 = vtanh.f32 %v415_v12 }
 0x135   :  { %v1099_v14 = vpop.eup %1098 }
 0x136   :  { %v1101_v15 = vpop.eup %1100  ;;  %v424_v21 = vadd.f32 1.0, %v1099_v14 }
 0x137   :  { %v1103_v24 = vpop.eup %1102  ;;  %v426_v27 = vadd.f32 1.0, %v1101_v15 }
 0x138   :  { %v1105_v31 = vpop.eup %1104  ;;  %v428_v33 = vadd.f32 1.0, %v1103_v24  ;;  %v432_v8 = vmul.f32 %v424_v21, %v368_v20 }
 0x139   :  { %v1107_v36 = vpop.eup %1106  ;;  %v430_v38 = vadd.f32 1.0, %v1105_v31  ;;  %v434_v10 = vmul.f32 %v426_v27, %v370_v26 }
 0x13a   :  { %v1109_v39 = vpop.eup %1108  ;;  %v425_v19 = vadd.f32 1.0, %v1107_v36  ;;  %v436_v11 = vmul.f32 %v428_v33, %v372_v7  ;;  %v811_v28 = vmul.f32 %v794_v16, %v432_v8  ;;  %v963_v7 = vld [vmem:[#allocation2] ss:$0 sm:$0xff] }
 0x13b   :  { %v1111_v41 = vpop.eup %1110  ;;  %v429_v22 = vadd.f32 1.0, %v1109_v39  ;;  %v438_v42 = vmul.f32 %v430_v38, %v374_v37  ;;  %v813_v43 = vmul.f32 %v802_v17, %v434_v10  ;;  %v1173_v37 = vmov 0.0  }
 0x13c   :  { %v1113_v44 = vpop.eup %1112  ;;  %v433_v45 = vmul.f32 %v425_v19, %v369_v32  ;;  %v427_v46 = vadd.f32 1.0, %v1111_v41  ;;  %v440_v34 = vpack.c.bf16 %v436_v11, %v432_v8  ;;  %v815_v47 = vmul.f32 %v794_v16, %v436_v11 }
 0x13d   :  { %v437_v29 = vmul.f32 %v429_v22, %v373_v18  ;;  %v431_v48 = vadd.f32 1.0, %v1113_v44  ;;  %v442_v49 = vpack.c.bf16 %v438_v42, %v434_v10  ;;  %v817_v50 = vmul.f32 %v802_v17, %v438_v42 }
 0x13e   :  { %v435_v51 = vmul.f32 %v427_v46, %v371_v40  ;;  %v812_v52 = vmul.f32 %v798_v25, %v433_v45 }
 0x13f   :  { %v441_v23 = vpack.c.bf16 %v437_v29, %v433_v45  ;;  %v439_v53 = vmul.f32 %v431_v48, %v375_v6  ;;  %v816_v35 = vmul.f32 %v798_v25, %v437_v29  ;;  %v965_v45 = vld [vmem:[%s1377_s8] ss:$0 sm:$0xff] }
 0x140   :  { %v814_v54 = vmul.f32 %v806_v30, %v435_v51  ;;  %v819_v55 = vadd.f32 %v812_v52, %v811_v28 }
 0x141   :  { %739 = vmatprep.mubr.bf16.mxu0 %v441_v23  ;;  %v443_v56 = vpack.c.bf16 %v439_v53, %v435_v51  ;;  %v818_v57 = vmul.f32 %v806_v30, %v439_v53  ;;  %v824_v58 = vadd.f32 %v816_v35, %v815_v47 }
 0x142   :  { %740 = vmatmul.mubr.bf16.vlgmr.msra.gmra.mrb[4].mxu0 %v440_v34  ;;  %v820_v59 = vadd.f32 %v819_v55, %v813_v43  ;;  %v964_v43 = vld [vmem:[%s1376_s7] ss:$0 sm:$0xff] }
 0x143   :  { %780 = vmatprep.mubr.bf16.mxu1 %v443_v56  ;;  %v825_v60 = vadd.f32 %v824_v58, %v817_v50 }
 0x144   :  { %781 = vmatmul.mubr.bf16.vlgmr.msra.gmra.mrb[4].mxu1 %v442_v49  ;;  %v821_v61 = vadd.f32 %v820_v59, %v814_v54 }
 0x145   :  { %v826_v62 = vadd.f32 %v825_v60, %v818_v57 }
 0x215   :  { %v982_v63 = vpop.f32.mrb[4].mxu0 }
 0x216   :  { %v983_v1 = vpop.f32.mrb[5].mxu0 }
 0x217   :  { %v1004_v2 = vpop.f32.mrb[4].mxu1  ;;  %v984_v3 = vadd.f32 %v983_v1, %v982_v63  ;;  %v985_v4 = vpop.f32.mrb[6].mxu0 }
 0x218   :  { %v1005_v5 = vpop.f32.mrb[5].mxu1  ;;  %v986_v9 = vpop.f32.mrb[7].mxu0 }
 0x219   :  { %v742_v12 = vadd.f32 %v984_v3, %v930_v0  ;;  %v1006_v13 = vadd.f32 %v1005_v5, %v1004_v2  ;;  %v1007_v14 = vpop.f32.mrb[6].mxu1  ;;  %v987_v15 = vadd.f32 %v986_v9, %v985_v4 }
 0x21a   :  { %v1008_v16 = vpop.f32.mrb[7].mxu1 }
 0x21b   :  { %v745_v17 = vadd.f32 %v987_v15, %v930_v0  ;;  %v1009_v20 = vadd.f32 %v1008_v16, %v1007_v14  ;;  %v783_v21 = vadd.f32 %v1006_v13, %v742_v12 }
 0x21d   :  { %845 = vadd.xlane.f32.xlu0 %v783_v21  ;;  %v786_v24 = vadd.f32 %v1009_v20, %v745_v17 }
 0x221   :  { %847 = vadd.xlane.f32.xlu0 %v786_v24 }
 0x225   :  { %822 = vadd.xlane.f32.xlu0 %v821_v61 }
 0x2aa   :  { %v846_v25 = vpop.xlane.xlu0 %845 }
 0x2ab   :  { %v850_v26 = vmul.f32 0.0078125, %v846_v25 }
 0x2ad   :  { %v852_v27 = vsub.f32 %v783_v21, %v850_v26 }
 0x2ae   :  { %v848_v30 = vpop.xlane.xlu0 %847 }
 0x2af   :  { %v851_v31 = vmul.f32 0.0078125, %v848_v30  ;;  %v854_v32 = vmul.f32 %v852_v27, %v852_v27 }
 0x2b1   :  { %v853_v33 = vsub.f32 %v786_v24, %v851_v31  ;;  %856 = vadd.xlane.f32.xlu1 %v854_v32 }
 0x2b2   :  { %v823_v8 = vpop.xlane.xlu0 %822 }
 0x2b3   :  { %v836_v36 = vadd.f32 %v963_v7, %v823_v8  ;;  %v855_v18 = vmul.f32 %v853_v33, %v853_v33 }
 0x2b5   :  { %vm838_vm1 = vcmp.eq.f32.partialorder %v836_v36, -1.0  ;;  %858 = vadd.xlane.f32.xlu1 %v855_v18 }
 0x2b6   :  { %v840_v38 = vsel %vm838_vm1, -1e+30, %v1173_v37 }
 0x2b7   :  { %843 = vst.msk [vmem:[%s1379_s10] sm:$0xff] %vm842_vm0, %v840_v38 }
 0x2b9   :  { %827 = vadd.xlane.f32.xlu1 %v826_v62 }
 0x33e   :  { %v857_v10 = vpop.xlane.xlu1 %856 }
 0x33f   :  { %v860_v39 = vmul.f32 0.0078125, %v857_v10 }
 0x341   :  { %v862_v19 = vadd.f32 1e-05, %v860_v39 }
 0x342   :  { %v859_v40 = vpop.xlane.xlu1 %858 }
 0x343   :  { %1114 = vrsqrt.f32 %v862_v19  ;;  %v861_v6 = vmul.f32 0.0078125, %v859_v40 }
 0x345   :  { %v863_v11 = vadd.f32 1e-05, %v861_v6 }
 0x346   :  { %v828_v41 = vpop.xlane.xlu1 %827 }
 0x347   :  { %1116 = vrsqrt.f32 %v863_v11  ;;  %v837_v22 = vadd.f32 %v963_v7, %v828_v41 }
 0x349   :  { %vm839_vm2 = vcmp.eq.f32.partialorder %v837_v22, -1.0 }
 0x34a   :  { %v841_v42 = vsel %vm839_vm2, -1e+30, %v1173_v37 }
 0x34b   :  { %844 = vst.msk [vmem:[%s1379_s10 + $0x8] sm:$0xff] %vm842_vm0, %v841_v42 }
 0x34d   :  { %v1115_v28 = vpop.eup %1114 }
 0x34e   :  { %v866_v44 = vmul.f32 %v1115_v28, %v852_v27 }
 0x350   :  { %v875_v46 = vmul.f32 %v964_v43, %v866_v44 }
 0x351   :  { %v1117_v34 = vpop.eup %1116 }
 0x352   :  { %v884_v47 = vadd.f32 %v965_v45, %v875_v46  ;;  %v867_v29 = vmul.f32 %v1117_v34, %v853_v33 }
 0x354   :  { %886 = vst [vmem:[%s1378_s9] sm:$0xff] %v884_v47  ;;  %v876_v48 = vmul.f32 %v964_v43, %v867_v29 }
 0x356   :  { %v885_v49 = vadd.f32 %v965_v45, %v876_v48 }
 0x358   :  { %887 = vst [vmem:[%s1378_s9 + $0x8] sm:$0xff] %v885_v49 }
 0x359   :  { %896 = vsyncpa [#allocation4], 1 }
 0x35a   :  { %897 = vsyncpa [#allocation6], 1 }

// kernel: network_forward.5
= control target key start
LH: loop header
LB: loop body
LE: loop exit
PB: predicated region body
PF: predicated region fallthrough
CT: control target
= control target key end

     0   :  { %v2256_v1 = vmov 0   ;;  %v2257_v2 = vmov 0.0   ;;  %vm2258_vm0 = vmmov 0   ;;  %v87_v29 = vlaneseq  ;;  %s2259_s20 = smov 96   ;;  %s2261_s21 = smov 32   ;;  %s2804_s2 = inlined_call_operand.vmem [shape: bf16[128,384], index: 2, kind: input, shape index: {}]   ;;  %s2805_s0 = inlined_call_operand.vmem [shape: f32[2,8,128], index: 0, kind: input, shape index: {}]   ;;  %s2806_s3 = inlined_call_operand.vmem [shape: f32[1,384], index: 3, kind: input, shape index: {}]   ;;  %s2807_s1 = inlined_call_operand.vmem [shape: f32[2,1,8], index: 1, kind: input, shape index: {}]   ;;  %s2808_s4 = inlined_call_operand.vmem [shape: bf16[128,128], index: 4, kind: input, shape index: {}]   ;;  %s2809_s5 = inlined_call_operand.vmem [shape: f32[1,128], index: 5, kind: input, shape index: {}]   ;;  %s2810_s8 = inlined_call_operand.vmem [shape: bf16[128,256], index: 8, kind: input, shape index: {}]   ;;  %s2811_s6 = inlined_call_operand.vmem [shape: f32[1,128], index: 6, kind: input, shape index: {}]   ;;  %s2812_s7 = inlined_call_operand.vmem [shape: f32[1,128], index: 7, kind: input, shape index: {}]   ;;  %s2813_s10 = inlined_call_operand.vmem [shape: bf16[256,128], index: 10, kind: input, shape index: {}]   ;;  %s2814_s9 = inlined_call_operand.vmem [shape: f32[1,256], index: 9, kind: input, shape index: {}]   ;;  %s2815_s11 = inlined_call_operand.vmem [shape: f32[1,128], index: 11, kind: input, shape index: {}]   ;;  %s2816_s12 = inlined_call_operand.vmem [shape: f32[1,128], index: 12, kind: input, shape index: {}]   ;;  %s2817_s13 = inlined_call_operand.vmem [shape: f32[1,128], index: 13, kind: input, shape index: {}]   ;;  %s2818_s14 = inlined_call_operand.vmem [shape: f32[2,8,128], index: 14, kind: output, shape index: {}]  }
   0x1   :  { %v2128_v0 = vld [vmem:[%s2804_s2 + $0x4] ss:$12 sps:$4 sm:$0xff]   ;;  %262 = vmatprep.mubr.bf16.mxu0 %v2256_v1  ;;  %1971 = vmatprep.subr.bf16.mxu1 %v2257_v2  ;;  %v2130_v3 = vld [vmem:[%s2804_s2] ss:$12 sps:$4 sm:$0xff]   ;;  %v2131_v4 = vld [vmem:[%s2804_s2 + $0x1c] ss:$12 sps:$4 sm:$0xff]  }
   0x2   :  { %230 = vmatprep.subr.bf16.mxu0 %v2128_v0  ;;  %v2133_v5 = vld [vmem:[%s2804_s2 + $0x18] ss:$12 sps:$4 sm:$0xff]   ;;  %v2134_v6 = vld [vmem:[%s2804_s2 + $0x34] ss:$12 sps:$4 sm:$0xff]   ;;  %v2136_v7 = vld [vmem:[%s2804_s2 + $0x30] ss:$12 sps:$4 sm:$0xff]   ;;  %1987 = vmatprep.mubr.msk.bf16.mxu1 %vm2258_vm0, %v2257_v2 }
   0x3   :  { %231 = vmatpush1.bf16.msra.mxu0 %v2130_v3  ;;  %v2137_v8 = vld [vmem:[%s2804_s2 + $0x4c] ss:$12 sps:$4 sm:$0xff]   ;;  %v2139_v9 = vld [vmem:[%s2804_s2 + $0x48] ss:$12 sps:$4 sm:$0xff]   ;;  %v2140_v10 = vld [vmem:[%s2804_s2 + $0x64] ss:$12 sps:$4 sm:$0xff]  }
   0x4   :  { %232 = vmatprep.subr.bf16.mxu0 %v2131_v4  ;;  %v2152_v11 = vld [vmem:[%s2804_s2 + $0x8] ss:$12 sps:$4 sm:$0xff]   ;;  %v2153_v12 = vld [vmem:[%s2804_s2 + $0x20] ss:$12 sps:$4 sm:$0xff]   ;;  %v2154_v15 = vld [vmem:[%s2804_s2 + $0x38] ss:$12 sps:$4 sm:$0xff]  }
   0x5   :  { %1972 = vmatpush3.bf16.msra.mxu1 %v2152_v11  ;;  %v2142_v13 = vld [vmem:[%s2804_s2 + $0x60] ss:$12 sps:$4 sm:$0xff]   ;;  %v2143_v14 = vld [vmem:[%s2804_s2 + $0x7c] ss:$12 sps:$4 sm:$0xff]   ;;  %v2145_v16 = vld [vmem:[%s2804_s2 + $0x78] ss:$12 sps:$4 sm:$0xff]  }
   0x6   :  { %1973 = vmatprep.subr.bf16.mxu1 %v2257_v2  ;;  %v2146_v17 = vld [vmem:[%s2804_s2 + $0x94] ss:$12 sps:$4 sm:$0xff]   ;;  %v2155_v18 = vld [vmem:[%s2804_s2 + $0x50] ss:$12 sps:$4 sm:$0xff]   ;;  %v2149_v20 = vld [vmem:[%s2804_s2 + $0xac] ss:$12 sps:$4 sm:$0xff]  }
   0x7   :  { %233 = vmatpush1.bf16.msra.mxu0 %v2133_v5  ;;  %v2148_v19 = vld [vmem:[%s2804_s2 + $0x90] ss:$12 sps:$4 sm:$0xff]   ;;  %v2156_v21 = vld [vmem:[%s2804_s2 + $0x68] ss:$12 sps:$4 sm:$0xff]   ;;  %v2408_v23 = vld [vmem:[%s2805_s0] sm:$0xff]  ;;  %v2438_v30 = vshrl.u32 %v87_v29, 7 }
   0x8   :  { %234 = vmatprep.subr.bf16.mxu0 %v2134_v6  ;;  %v2151_v22 = vld [vmem:[%s2804_s2 + $0xa8] ss:$12 sps:$4 sm:$0xff]   ;;  %v2157_v26 = vld [vmem:[%s2804_s2 + $0x80] ss:$12 sps:$4 sm:$0xff]   ;;  %v2158_v27 = vld [vmem:[%s2804_s2 + $0x98] ss:$12 sps:$4 sm:$0xff]  }
   0x9   :  { %1974 = vmatpush3.bf16.msra.mxu1 %v2153_v12  ;;  %v2413_v24 = vld [vmem:[%s2805_s0 + $0x8] sm:$0xff]  ;;  %v2159_v28 = vld [vmem:[%s2804_s2 + $0xb0] ss:$12 sps:$4 sm:$0xff]   ;;  %v93_v31 = vsub.s32 1, %v2438_v30  ;;  %v85_v32 = vld [vmem:[%s2806_s3] sm:$0x7] }
   0xa   :  { %1975 = vmatprep.subr.bf16.mxu1 %v2257_v2  ;;  %v52_v25 = vpack.c.bf16 %v2413_v24, %v2408_v23  ;;  %v89_v34 = vsub.s32 0, %v2438_v30  ;;  %vm332_vm1 = vcmask 261120   ;;  %v97_v50 = vsub.s32 2, %v2438_v30  ;;  %v2480_v60 = vld [vmem:[%s2807_s1] ss:$0 sm:$0xff] }
   0xb   :  { %235 = vmatpush1.bf16.msra.mxu0 %v2136_v7  ;;  %v94_v33 = vrot.slane %v85_v32, %v93_v31  ;;  %vm453_vm2 = vcmask 1043456   ;;  %vm425_vm3 = vcmask 64512   ;;  %v2487_v5 = vld [vmem:[%s2807_s1 + $0x1] ss:$0 sm:$0xff]  ;;  %s2260_s1 = smov 64   ;;  %vm1235_vm4 = vcmask 523264  }
   0xc   :  { %236 = vmatprep.subr.bf16.mxu0 %v2137_v8  ;;  %v90_v40 = vrot.slane %v85_v32, %v89_v34  ;;  %v98_v51 = vrot.slane %v85_v32, %v97_v50  ;;  %vm1238_vm5 = vcmask 785408  }
   0xd   :  { %1976 = vmatpush3.bf16.msra.mxu1 %v2154_v15 }
   0xe   :  { %1977 = vmatprep.subr.bf16.mxu1 %v2257_v2 }
   0xf   :  { %237 = vmatpush1.bf16.msra.mxu0 %v2139_v9 }
  0x10   :  { %238 = vmatprep.subr.bf16.mxu0 %v2140_v10 }
  0x11   :  { %1978 = vmatpush3.bf16.msra.mxu1 %v2155_v18 }
  0x12   :  { %1979 = vmatprep.subr.bf16.mxu1 %v2257_v2 }
  0x13   :  { %239 = vmatpush1.bf16.msra.mxu0 %v2142_v13 }
  0x14   :  { %240 = vmatprep.subr.bf16.mxu0 %v2143_v14 }
  0x15   :  { %1980 = vmatpush3.bf16.msra.mxu1 %v2156_v21 }
  0x16   :  { %1981 = vmatprep.subr.bf16.mxu1 %v2257_v2 }
  0x17   :  { %241 = vmatpush1.bf16.msra.mxu0 %v2145_v16 }
  0x18   :  { %242 = vmatprep.subr.bf16.mxu0 %v2146_v17 }
  0x19   :  { %1982 = vmatpush3.bf16.msra.mxu1 %v2157_v26 }
  0x1a   :  { %1983 = vmatprep.subr.bf16.mxu1 %v2257_v2 }
  0x1b   :  { %243 = vmatpush1.bf16.msra.mxu0 %v2148_v19 }
  0x1c   :  { %244 = vmatprep.subr.bf16.mxu0 %v2149_v20 }
  0x1d   :  { %1984 = vmatpush3.bf16.msra.mxu1 %v2158_v27 }
  0x1e   :  { %1985 = vmatprep.subr.bf16.mxu1 %v2257_v2 }
  0x1f   :  { %245 = vmatpush1.bf16.msra.mxu0 %v2151_v22 }
  0x20   :  { %2015 = vmatprep.subr.bf16.mxu0 %v2257_v2 }
  0x21   :  { %1986 = vmatpush3.bf16.msra.mxu1 %v2159_v28 }
  0x22   :  { %263 = vmatmul.mubr.bf16.vlgmr.msra.gmra.mrb[0].mxu0 %v52_v25  ;;  %1991 = vmatprep.subr.bf16.mxu1 %v2257_v2 }
  0x23   :  { %2017 = vmatprep.mubr.msk.bf16.mxu0 %vm2258_vm0, %v2257_v2 }
  0x24   :  { %1988 = vmatmul.mubr.bf16.vlgmr.msra.gmra.mrb[0].mxu1 %v52_v25 }
  0x25   :  { %1993 = vmatprep.mubr.msk.bf16.mxu1 %vm2258_vm0, %v2257_v2 }
  0xf5   :  { %v264_v35 = vpop.f32.mrb[0].mxu0 }
  0xf6   :  { %v266_v36 = vpop.f32.mrb[1].mxu0  ;;  %v265_v44 = vadd.f32 %v264_v35, %v90_v40 }
  0xf7   :  { %v267_v37 = vadd.f32 %v266_v36, %v94_v33  ;;  %v268_v38 = vpop.f32.mrb[2].mxu0  ;;  %v307_v52 = vpop.f32.mrb[0].mxu1 }
  0xf8   :  { %v270_v39 = vpop.f32.mrb[3].mxu0  ;;  %v2456_v46 = vpack.c.bf16 %v265_v44, %v265_v44  ;;  %v269_v48 = vadd.f32 %v268_v38, %v90_v40  ;;  %v308_v53 = vadd.f32 %v307_v52, %v98_v51  ;;  %v1989_v54 = vpop.f32.mrb[1].mxu1 }
  0xf9   :  { %v2449_v41 = vpack.c.bf16 %v267_v37, %v267_v37  ;;  %v271_v42 = vadd.f32 %v270_v39, %v94_v33  ;;  %v310_v55 = vpop.f32.mrb[2].mxu1 }
  0xfa   :  { %v2465_v49 = vpack.c.bf16 %v269_v48, %v269_v48  ;;  %v2472_v56 = vpack.c.bf16 %v308_v53, %v308_v53  ;;  %v311_v57 = vadd.f32 %v310_v55, %v98_v51  ;;  %v1990_v58 = vpop.f32.mrb[3].mxu1 }
  0xfb   :  { %v337_v43 = vsel %vm332_vm1, %v2449_v41, 0  ;;  %v2454_v45 = vpack.c.bf16 %v271_v42, %v271_v42 }
  0xfc   :  { %1992 = vmatpush3.bf16.xpose.msra.mxu1 %v337_v43  ;;  %v455_v59 = vsel %vm453_vm2, %v2472_v56, 0  ;;  %v2503_v28 = vpack.c.bf16 %v311_v57, %v311_v57 }
  0xfd   :  { %1997 = vmatprep.subr.bf16.mxu1 %v2257_v2  ;;  %v383_v47 = vsel %vm332_vm1, %v2454_v45, 0 }
  0xfe   :  { %v501_v33 = vsel %vm453_vm2, %v2503_v28, 0 }
 0x103   :  { %1994 = vmatmul.mubr.msk.bf16.vlgmr.msra.gmra.mrb[4].mxu1 %vm332_vm1, %v2456_v46 }
 0x104   :  { %1998 = vmatpush3.bf16.xpose.msra.mxu1 %v383_v47  ;;  %1999 = vmatprep.mubr.msk.bf16.mxu1 %vm2258_vm0, %v2257_v2 }
 0x105   :  { %2003 = vmatprep.subr.bf16.mxu1 %v2257_v2 }
 0x10b   :  { %2000 = vmatmul.mubr.msk.bf16.vlgmr.msra.gmra.mrb[8].mxu1 %vm332_vm1, %v2465_v49 }
 0x10c   :  { %2005 = vmatprep.mubr.msk.bf16.mxu1 %vm2258_vm0, %v2257_v2  ;;  %2004 = vmatpush3.bf16.msra.mxu1 %v455_v59 }
 0x10d   :  { %2009 = vmatprep.subr.bf16.mxu1 %v2257_v2 }
 0x1d6   :  { %v373_v61 = vpop.f32.mrb[4].mxu1 }
 0x1d7   :  { %v374_v62 = vadd.f32 %v2480_v60, %v373_v61  ;;  %v1995_v63 = vpop.f32.mrb[5].mxu1 }
 0x1d8   :  { %v376_v0 = vpop.f32.mrb[6].mxu1 }
 0x1d9   :  { %v1996_v3 = vpop.f32.mrb[7].mxu1  ;;  %v426_v4 = vsel %vm425_vm3, %v374_v62, -inf }
 0x1da   :  { %427 = vmax.xlane.f32.xlu0 %v426_v4 }
 0x1de   :  { %v419_v6 = vpop.f32.mrb[8].mxu1 }
 0x1df   :  { %v420_v7 = vadd.f32 %v2487_v5, %v419_v6  ;;  %v2001_v8 = vpop.f32.mrb[9].mxu1 }
 0x1e0   :  { %v422_v9 = vpop.f32.mrb[10].mxu1 }
 0x1e1   :  { %v2002_v10 = vpop.f32.mrb[11].mxu1  ;;  %v429_v11 = vsel %vm425_vm3, %v420_v7, -inf }
 0x1e2   :  { %430 = vmax.xlane.f32.xlu0 %v429_v11 }
 0x1f8   :  { %547 = vrot.lane.b32.xlu0 %v2449_v41, %s2259_s20 }
 0x267   :  { %v428_v12 = vpop.xlane.xlu0 %427 }
 0x268   :  { %v432_v13 = vsub.f32 %v374_v62, %v428_v12 }
 0x26a   :  { %v434_v14 = vmul.f32 1.442695, %v432_v13 }
 0x26c   :  { %2208 = vpow2.f32 %v434_v14 }
 0x26f   :  { %v431_v15 = vpop.xlane.xlu0 %430 }
 0x270   :  { %v433_v20 = vsub.f32 %v420_v7, %v431_v15 }
 0x272   :  { %v436_v21 = vmul.f32 1.442695, %v433_v20 }
 0x273   :  { %v548_v16 = vpop.permute.xlu0 %547 }
 0x274   :  { %v553_v17 = vsel %vm332_vm1, %v548_v16, 0  ;;  %2210 = vpow2.f32 %v436_v21 }
 0x275   :  { %2016 = vmatpush3.bf16.xpose.msra.mxu0 %v553_v17 }
 0x276   :  { %v2209_v18 = vpop.eup %2208  ;;  %2027 = vmatprep.subr.bf16.mxu0 %v2257_v2 }
 0x277   :  { %v438_v19 = vsel %vm425_vm3, %v2209_v18, 0.0 }
 0x278   :  { %439 = vadd.xlane.f32.xlu1 %v438_v19 }
 0x27e   :  { %v2211_v22 = vpop.eup %2210 }
 0x27f   :  { %v441_v25 = vsel %vm425_vm3, %v2211_v22, 0.0 }
 0x289   :  { %599 = vrot.lane.b32.xlu1 %v2454_v45, %s2259_s20 }
 0x2ad   :  { %442 = vadd.xlane.f32.xlu1 %v441_v25 }
 0x2be   :  { %544 = vrot.lane.b32.xlu1 %v2456_v46, %s2259_s20 }
 0x2c2   :  { %596 = vrot.lane.b32.xlu1 %v2465_v49, %s2259_s20 }
 0x305   :  { %v440_v26 = vpop.xlane.xlu1 %439 }
 0x306   :  { %2212 = vrcp.f32 %v440_v26 }
 0x309   :  { %v600_v35 = vpop.permute.xlu1 %599 }
 0x30a   :  { %v605_v42 = vsel %vm332_vm1, %v600_v35, 0 }
 0x310   :  { %v2213_v27 = vpop.eup %2212 }
 0x311   :  { %v446_v29 = vmul.f32 %v2213_v27, %v2209_v18 }
 0x313   :  { %v448_v32 = vpack.c.bf16 %v446_v29, %v446_v29 }
 0x315   :  { %2006 = vmatmul.mubr.msk.bf16.vlgmr.msra.gmra.mrb[12].mxu1 %vm425_vm3, %v448_v32 }
 0x316   :  { %2010 = vmatpush3.bf16.msra.mxu1 %v501_v33  ;;  %2011 = vmatprep.mubr.msk.bf16.mxu1 %vm2258_vm0, %v2257_v2 }
 0x317   :  { %2021 = vmatprep.subr.bf16.mxu1 %v2257_v2 }
 0x33a   :  { %v443_v36 = vpop.xlane.xlu1 %442 }
 0x33b   :  { %2214 = vrcp.f32 %v443_v36 }
 0x33e   :  { %v545_v37 = vpop.permute.xlu1 %544 }
 0x33f   :  { %2018 = vmatmul.mubr.msk.bf16.vlgmr.msra.gmra.mrb[4].mxu0 %vm332_vm1, %v545_v37 }
 0x340   :  { %2029 = vmatprep.mubr.msk.bf16.mxu0 %vm2258_vm0, %v2257_v2 }
 0x342   :  { %v597_v43 = vpop.permute.xlu1 %596 }
 0x345   :  { %v2215_v38 = vpop.eup %2214 }
 0x346   :  { %v447_v39 = vmul.f32 %v2215_v38, %v2211_v22 }
 0x348   :  { %v449_v40 = vpack.c.bf16 %v447_v39, %v447_v39 }
 0x34a   :  { %2012 = vmatmul.mubr.msk.bf16.vlgmr.msra.gmra.mrb[16].mxu1 %vm425_vm3, %v449_v40 }
 0x34b   :  { %2022 = vmatpush3.bf16.xpose.msra.mxu1 %v605_v42  ;;  %2023 = vmatprep.mubr.msk.bf16.mxu1 %vm2258_vm0, %v2257_v2 }
 0x34c   :  { %2033 = vmatprep.subr.bf16.mxu1 %v2257_v2 }
 0x352   :  { %2024 = vmatmul.mubr.msk.bf16.vlgmr.msra.gmra.mrb[20].mxu1 %vm332_vm1, %v597_v43 }
 0x353   :  { %2035 = vmatprep.mubr.msk.bf16.mxu1 %vm2258_vm0, %v2257_v2 }
 0x3e8   :  { %v2522_v44 = vpop.f32.mrb[12].mxu1 }
 0x3e9   :  { %v2007_v47 = vpop.f32.mrb[13].mxu1 }
 0x3ea   :  { %v494_v48 = vpop.f32.mrb[14].mxu1 }
 0x3eb   :  { %v2008_v50 = vpop.f32.mrb[15].mxu1 }
 0x412   :  { %v589_v51 = vpop.f32.mrb[4].mxu0 }
 0x413   :  { %v590_v52 = vadd.f32 %v2480_v60, %v589_v51  ;;  %v2019_v53 = vpop.f32.mrb[5].mxu0 }
 0x414   :  { %v592_v54 = vpop.f32.mrb[6].mxu0 }
 0x415   :  { %v2020_v55 = vpop.f32.mrb[7].mxu0  ;;  %v647_v57 = vsel %vm425_vm3, %v590_v52, -inf }
 0x416   :  { %648 = vmax.xlane.f32.xlu0 %v647_v57 }
 0x41d   :  { %v2526_v58 = vpop.f32.mrb[16].mxu1 }
 0x41e   :  { %v2013_v59 = vpop.f32.mrb[17].mxu1 }
 0x41f   :  { %v540_v61 = vpop.f32.mrb[18].mxu1 }
 0x420   :  { %v2014_v62 = vpop.f32.mrb[19].mxu1 }
 0x425   :  { %v641_v63 = vpop.f32.mrb[20].mxu1 }
 0x426   :  { %v642_v0 = vadd.f32 %v2487_v5, %v641_v63  ;;  %v2025_v3 = vpop.f32.mrb[21].mxu1 }
 0x427   :  { %v644_v4 = vpop.f32.mrb[22].mxu1 }
 0x428   :  { %v2026_v6 = vpop.f32.mrb[23].mxu1  ;;  %v650_v7 = vsel %vm425_vm3, %v642_v0, -inf }
 0x429   :  { %651 = vmax.xlane.f32.xlu1 %v650_v7 }
 0x43a   :  { %721 = vrot.lane.b32.xlu1 %v2503_v28, %s2259_s20 }
 0x43e   :  { %771 = vrot.lane.b32.xlu1 %v2449_v41, %s2260_s1 }
 0x442   :  { %821 = vrot.lane.b32.xlu1 %v2454_v45, %s2260_s1 }
 0x446   :  { %819 = vrot.lane.b32.xlu1 %v2465_v49, %s2260_s1 }
 0x4a3   :  { %v649_v8 = vpop.xlane.xlu0 %648 }
 0x4a4   :  { %v653_v9 = vsub.f32 %v590_v52, %v649_v8 }
 0x4a6   :  { %v655_v10 = vmul.f32 1.442695, %v653_v9 }
 0x4a8   :  { %2216 = vpow2.f32 %v655_v10 }
 0x4b2   :  { %v2217_v11 = vpop.eup %2216 }
 0x4b3   :  { %v659_v12 = vsel %vm425_vm3, %v2217_v11, 0.0 }
 0x4b4   :  { %660 = vadd.xlane.f32.xlu0 %v659_v12 }
 0x4b6   :  { %v652_v13 = vpop.xlane.xlu1 %651 }
 0x4b7   :  { %v654_v14 = vsub.f32 %v642_v0, %v652_v13 }
 0x4b9   :  { %v657_v15 = vmul.f32 1.442695, %v654_v14 }
 0x4ba   :  { %v722_v16 = vpop.permute.xlu1 %721 }
 0x4bb   :  { %2218 = vpow2.f32 %v657_v15  ;;  %v727_v17 = vsel %vm453_vm2, %v722_v16, 0 }
 0x4bc   :  { %2034 = vmatpush3.bf16.msra.mxu1 %v727_v17 }
 0x4bd   :  { %2045 = vmatprep.subr.bf16.mxu1 %v2257_v2 }
 0x4be   :  { %v772_v29 = vpop.permute.xlu1 %771 }
 0x4bf   :  { %v777_v37 = vsel %vm332_vm1, %v772_v29, 0 }
 0x4c2   :  { %v822_v36 = vpop.permute.xlu1 %821 }
 0x4c3   :  { %v827_v39 = vsel %vm332_vm1, %v822_v36, 0 }
 0x4c5   :  { %v2219_v18 = vpop.eup %2218 }
 0x4c6   :  { %v662_v19 = vsel %vm425_vm3, %v2219_v18, 0.0  ;;  %v820_v42 = vpop.permute.xlu1 %819 }
 0x4c7   :  { %663 = vadd.xlane.f32.xlu0 %v662_v19 }
 0x4dd   :  { %672 = vrot.lane.b32.xlu0 %v2472_v56, %s2259_s20 }
 0x4e1   :  { %769 = vrot.lane.b32.xlu0 %v2456_v46, %s2260_s1 }
 0x541   :  { %v661_v20 = vpop.xlane.xlu0 %660 }
 0x542   :  { %2220 = vrcp.f32 %v661_v20 }
 0x54c   :  { %v2221_v21 = vpop.eup %2220 }
 0x54d   :  { %v667_v25 = vmul.f32 %v2221_v21, %v2217_v11 }
 0x54f   :  { %v669_v32 = vpack.c.bf16 %v667_v25, %v667_v25 }
 0x554   :  { %v664_v22 = vpop.xlane.xlu0 %663 }
 0x555   :  { %2222 = vrcp.f32 %v664_v22 }
 0x558   :  { %v673_v26 = vpop.permute.xlu0 %672 }
 0x559   :  { %v678_v27 = vsel %vm453_vm2, %v673_v26, 0 }
 0x55a   :  { %2028 = vmatpush3.bf16.msra.mxu0 %v678_v27 }
 0x55b   :  { %2039 = vmatprep.subr.bf16.mxu0 %v2257_v2 }
 0x55c   :  { %v770_v40 = vpop.permute.xlu0 %769 }
 0x55d   :  { %2030 = vmatmul.mubr.msk.bf16.vlgmr.msra.gmra.mrb[8].mxu0 %vm425_vm3, %v669_v32 }
 0x55e   :  { %2041 = vmatprep.mubr.msk.bf16.mxu0 %vm2258_vm0, %v2257_v2 }
 0x55f   :  { %v2223_v33 = vpop.eup %2222 }
 0x560   :  { %v668_v35 = vmul.f32 %v2223_v33, %v2219_v18 }
 0x562   :  { %v670_v38 = vpack.c.bf16 %v668_v35, %v668_v35 }
 0x563   :  { %2040 = vmatpush3.bf16.xpose.msra.mxu0 %v777_v37 }
 0x564   :  { %2036 = vmatmul.mubr.msk.bf16.vlgmr.msra.gmra.mrb[24].mxu1 %vm425_vm3, %v670_v38  ;;  %2051 = vmatprep.subr.bf16.mxu0 %v2257_v2 }
 0x565   :  { %2046 = vmatpush3.bf16.xpose.msra.mxu1 %v827_v39  ;;  %2047 = vmatprep.mubr.msk.bf16.mxu1 %vm2258_vm0, %v2257_v2 }
 0x566   :  { %2057 = vmatprep.subr.bf16.mxu1 %v2257_v2 }
 0x56a   :  { %2042 = vmatmul.mubr.msk.bf16.vlgmr.msra.gmra.mrb[12].mxu0 %vm332_vm1, %v770_v40 }
 0x56b   :  { %2053 = vmatprep.mubr.msk.bf16.mxu0 %vm2258_vm0, %v2257_v2 }
 0x56c   :  { %2048 = vmatmul.mubr.msk.bf16.vlgmr.msra.gmra.mrb[28].mxu1 %vm332_vm1, %v820_v42 }
 0x56d   :  { %2059 = vmatprep.mubr.msk.bf16.mxu1 %vm2258_vm0, %v2257_v2 }
 0x630   :  { %v2564_v43 = vpop.f32.mrb[8].mxu0 }
 0x631   :  { %v2031_v47 = vpop.f32.mrb[9].mxu0 }
 0x632   :  { %v717_v48 = vpop.f32.mrb[10].mxu0 }
 0x633   :  { %v2032_v50 = vpop.f32.mrb[11].mxu0 }
 0x637   :  { %v2566_v51 = vpop.f32.mrb[24].mxu1 }
 0x638   :  { %v2113_v52 = vpack.i.bf16 %v2566_v51, %v2564_v43  ;;  %v2037_v53 = vpop.f32.mrb[25].mxu1 }
 0x639   :  { %v766_v54 = vpop.f32.mrb[26].mxu1 }
 0x63a   :  { %v2038_v55 = vpop.f32.mrb[27].mxu1 }
 0x63d   :  { %v813_v57 = vpop.f32.mrb[12].mxu0 }
 0x63e   :  { %v814_v59 = vadd.f32 %v2480_v60, %v813_v57  ;;  %v2043_v61 = vpop.f32.mrb[13].mxu0 }
 0x63f   :  { %v816_v62 = vpop.f32.mrb[14].mxu0  ;;  %v863_v63 = vpop.f32.mrb[28].mxu1 }
 0x640   :  { %v864_v0 = vadd.f32 %v2487_v5, %v863_v63  ;;  %v2044_v3 = vpop.f32.mrb[15].mxu0  ;;  %v2049_v4 = vpop.f32.mrb[29].mxu1  ;;  %v869_v6 = vsel %vm425_vm3, %v814_v59, -inf }
 0x641   :  { %870 = vmax.xlane.f32.xlu0 %v869_v6  ;;  %v866_v7 = vpop.f32.mrb[30].mxu1 }
 0x642   :  { %v2050_v8 = vpop.f32.mrb[31].mxu1  ;;  %v872_v9 = vsel %vm425_vm3, %v864_v0, -inf }
 0x643   :  { %873 = vmax.xlane.f32.xlu1 %v872_v9 }
 0x654   :  { %941 = vrot.lane.b32.xlu1 %v2503_v28, %s2260_s1 }
 0x658   :  { %991 = vrot.lane.b32.xlu1 %v2449_v41, %s2261_s21 }
 0x65c   :  { %1041 = vrot.lane.b32.xlu1 %v2454_v45, %s2261_s21 }
 0x660   :  { %1039 = vrot.lane.b32.xlu1 %v2465_v49, %s2261_s21 }
 0x6ce   :  { %v871_v10 = vpop.xlane.xlu0 %870 }
 0x6cf   :  { %v875_v11 = vsub.f32 %v814_v59, %v871_v10 }
 0x6d0   :  { %v874_v12 = vpop.xlane.xlu1 %873 }
 0x6d1   :  { %v877_v13 = vmul.f32 1.442695, %v875_v11  ;;  %v876_v14 = vsub.f32 %v864_v0, %v874_v12 }
 0x6d3   :  { %2224 = vpow2.f32 %v877_v13  ;;  %v879_v15 = vmul.f32 1.442695, %v876_v14 }
 0x6d4   :  { %v942_v16 = vpop.permute.xlu1 %941 }
 0x6d5   :  { %2226 = vpow2.f32 %v879_v15  ;;  %v947_v17 = vsel %vm453_vm2, %v942_v16, 0 }
 0x6d6   :  { %2058 = vmatpush3.bf16.msra.mxu1 %v947_v17 }
 0x6d7   :  { %2069 = vmatprep.subr.bf16.mxu1 %v2257_v2 }
 0x6d8   :  { %v992_v26 = vpop.permute.xlu1 %991 }
 0x6dc   :  { %v1042_v35 = vpop.permute.xlu1 %1041 }
 0x6dd   :  { %v2225_v41 = vpop.eup %2224  ;;  %v1047_v37 = vsel %vm332_vm1, %v1042_v35, 0  ;;  %v2167_v35 = vld [vmem:[%s2808_s4 + $0x38] sm:$0xff]  }
 0x6de   :  { %v881_v45 = vsel %vm425_vm3, %v2225_v41, 0.0 }
 0x6df   :  { %v2227_v18 = vpop.eup %2226  ;;  %882 = vadd.xlane.f32.xlu0 %v881_v45 }
 0x6e0   :  { %v884_v49 = vsel %vm425_vm3, %v2227_v18, 0.0  ;;  %v1040_v39 = vpop.permute.xlu1 %1039 }
 0x6e3   :  { %885 = vadd.xlane.f32.xlu0 %v884_v49 }
 0x6f9   :  { %893 = vrot.lane.b32.xlu0 %v2472_v56, %s2260_s1 }
 0x6fd   :  { %989 = vrot.lane.b32.xlu0 %v2456_v46, %s2261_s21  ;;  %v997_v46 = vsel %vm332_vm1, %v992_v26, 0  ;;  %v2161_v26 = vld [vmem:[%s2808_s4 + $0x8] sm:$0xff]  }
 0x76c   :  { %v883_v19 = vpop.xlane.xlu0 %882 }
 0x76d   :  { %2228 = vrcp.f32 %v883_v19 }
 0x770   :  { %v886_v20 = vpop.xlane.xlu0 %885 }
 0x771   :  { %2230 = vrcp.f32 %v886_v20 }
 0x774   :  { %v894_v21 = vpop.permute.xlu0 %893 }
 0x775   :  { %v899_v22 = vsel %vm453_vm2, %v894_v21, 0 }
 0x776   :  { %2052 = vmatpush3.bf16.msra.mxu0 %v899_v22 }
 0x777   :  { %v2229_v25 = vpop.eup %2228  ;;  %2063 = vmatprep.subr.bf16.mxu0 %v2257_v2 }
 0x778   :  { %v889_v27 = vmul.f32 %v2229_v25, %v2225_v41  ;;  %v990_v38 = vpop.permute.xlu0 %989  ;;  %v2160_v25 = vld [vmem:[%s2808_s4] sm:$0xff]  }
 0x77a   :  { %v891_v29 = vpack.c.bf16 %v889_v27, %v889_v27  ;;  %v2162_v27 = vld [vmem:[%s2808_s4 + $0x10] sm:$0xff]  }
 0x77b   :  { %v2231_v32 = vpop.eup %2230 }
 0x77c   :  { %v890_v33 = vmul.f32 %v2231_v32, %v2227_v18  ;;  %2054 = vmatmul.mubr.msk.bf16.vlgmr.msra.gmra.mrb[16].mxu0 %vm425_vm3, %v891_v29  ;;  %v2164_v29 = vld [vmem:[%s2808_s4 + $0x20] sm:$0xff]   ;;  %v2165_v32 = vld [vmem:[%s2808_s4 + $0x28] sm:$0xff]  }
 0x77d   :  { %2065 = vmatprep.mubr.msk.bf16.mxu0 %vm2258_vm0, %v2257_v2 }
 0x77e   :  { %v892_v36 = vpack.c.bf16 %v890_v33, %v890_v33  ;;  %v2166_v33 = vld [vmem:[%s2808_s4 + $0x30] sm:$0xff]  }
 0x77f   :  { %2064 = vmatpush3.bf16.xpose.msra.mxu0 %v997_v46 }
 0x780   :  { %2060 = vmatmul.mubr.msk.bf16.vlgmr.msra.gmra.mrb[32].mxu1 %vm425_vm3, %v892_v36  ;;  %2075 = vmatprep.subr.bf16.mxu0 %v2257_v2 }
 0x781   :  { %2070 = vmatpush3.bf16.xpose.msra.mxu1 %v1047_v37  ;;  %2071 = vmatprep.mubr.msk.bf16.mxu1 %vm2258_vm0, %v2257_v2 }
 0x782   :  { %2081 = vmatprep.subr.bf16.mxu1 %v2257_v2 }
 0x786   :  { %2066 = vmatmul.mubr.msk.bf16.vlgmr.msra.gmra.mrb[20].mxu0 %vm332_vm1, %v990_v38 }
 0x787   :  { %2077 = vmatprep.mubr.msk.bf16.mxu0 %vm2258_vm0, %v2257_v2 }
 0x788   :  { %2072 = vmatmul.mubr.msk.bf16.vlgmr.msra.gmra.mrb[36].mxu1 %vm332_vm1, %v1040_v39 }
 0x789   :  { %2083 = vmatprep.mubr.msk.bf16.mxu1 %vm2258_vm0, %v2257_v2 }
 0x84f   :  { %v935_v40 = vpop.f32.mrb[16].mxu0 }
 0x850   :  { %v2055_v42 = vpop.f32.mrb[17].mxu0 }
 0x851   :  { %v938_v47 = vpop.f32.mrb[18].mxu0 }
 0x852   :  { %v2056_v48 = vpop.f32.mrb[19].mxu0 }
 0x853   :  { %v983_v50 = vpop.f32.mrb[32].mxu1 }
 0x854   :  { %v2118_v53 = vpack.i.bf16 %v983_v50, %v935_v40  ;;  %v2061_v54 = vpop.f32.mrb[33].mxu1 }
 0x855   :  { %v986_v55 = vpop.f32.mrb[34].mxu1 }
 0x856   :  { %v2062_v57 = vpop.f32.mrb[35].mxu1 }
 0x859   :  { %v1033_v59 = vpop.f32.mrb[20].mxu0 }
 0x85a   :  { %v1034_v61 = vadd.f32 %v2480_v60, %v1033_v59  ;;  %v2067_v62 = vpop.f32.mrb[21].mxu0 }
 0x85b   :  { %v1036_v63 = vpop.f32.mrb[22].mxu0  ;;  %v1083_v0 = vpop.f32.mrb[36].mxu1 }
 0x85c   :  { %v1084_v3 = vadd.f32 %v2487_v5, %v1083_v0  ;;  %v2068_v4 = vpop.f32.mrb[23].mxu0  ;;  %v2073_v6 = vpop.f32.mrb[37].mxu1  ;;  %v1089_v7 = vsel %vm425_vm3, %v1034_v61, -inf }
 0x85d   :  { %1090 = vmax.xlane.f32.xlu0 %v1089_v7  ;;  %v1086_v8 = vpop.f32.mrb[38].mxu1 }
 0x85e   :  { %v2074_v9 = vpop.f32.mrb[39].mxu1  ;;  %v1092_v10 = vsel %vm425_vm3, %v1084_v3, -inf }
 0x85f   :  { %1093 = vmax.xlane.f32.xlu1 %v1092_v10  ;;  %v1853_v9 = vld [vmem:[%s2809_s5] ss:$0 sm:$0xff] }
 0x870   :  { %1161 = vrot.lane.b32.xlu1 %v2503_v28, %s2261_s21 }
 0x874   :  { %2114 = vrot.lane.b32.xlu1 %v2113_v52, %s2261_s21 }
 0x878   :  { %2119 = vrot.lane.b32.xlu1 %v2118_v53, %s2260_s1 }
 0x8ea   :  { %v1091_v60 = vpop.xlane.xlu0 %1090 }
 0x8eb   :  { %v1095_v5 = vsub.f32 %v1034_v61, %v1091_v60 }
 0x8ec   :  { %v1094_v11 = vpop.xlane.xlu1 %1093 }
 0x8ed   :  { %v1097_v12 = vmul.f32 1.442695, %v1095_v5  ;;  %v1096_v13 = vsub.f32 %v1084_v3, %v1094_v11 }
 0x8ef   :  { %2232 = vpow2.f32 %v1097_v12  ;;  %v1099_v14 = vmul.f32 1.442695, %v1096_v13 }
 0x8f0   :  { %v1162_v15 = vpop.permute.xlu1 %1161 }
 0x8f1   :  { %2234 = vpow2.f32 %v1099_v14  ;;  %v1167_v16 = vsel %vm453_vm2, %v1162_v15, 0  ;;  %v2168_v14 = vld [vmem:[%s2810_s8] ss:$8 sps:$4 sm:$0xff]   ;;  %v2170_v15 = vld [vmem:[%s2810_s8 + $0x4] ss:$8 sps:$4 sm:$0xff]  }
 0x8f2   :  { %2082 = vmatpush3.bf16.msra.mxu1 %v1167_v16  ;;  %v2171_v16 = vld [vmem:[%s2810_s8 + $0x10] ss:$8 sps:$4 sm:$0xff]  }
 0x8f3   :  { %1506 = vmatprep.subr.bf16.mxu1 %v2170_v15 }
 0x8f4   :  { %v2115_v50 = vpop.permute.xlu1 %2114 }
 0x8f5   :  { %v2117_v54 = vunpack.i.h.bf16 %v2115_v50 }
 0x8f7   :  { %v1234_v61 = vsel %vm332_vm1, %v2526_v58, %v2117_v54 }
 0x8f8   :  { %v2120_v53 = vpop.permute.xlu1 %2119 }
 0x8f9   :  { %v2233_v28 = vpop.eup %2232  ;;  %v2122_v55 = vunpack.i.h.bf16 %v2120_v53  ;;  %v2121_v57 = vunpack.i.l.bf16 %v2120_v53 }
 0x8fa   :  { %v1101_v17 = vsel %vm425_vm3, %v2233_v28, 0.0 }
 0x8fb   :  { %v2235_v41 = vpop.eup %2234  ;;  %1102 = vadd.xlane.f32.xlu0 %v1101_v17  ;;  %v1237_v4 = vsel %vm1235_vm4, %v1234_v61, %v2122_v55  ;;  %v2194_v61 = vld [vmem:[%s2813_s10 + $0x48] sm:$0xff]  }
 0x8fc   :  { %v1104_v43 = vsel %vm425_vm3, %v2235_v41, 0.0 }
 0x8ff   :  { %1105 = vadd.xlane.f32.xlu0 %v1104_v43 }
 0x915   :  { %1113 = vrot.lane.b32.xlu0 %v2472_v56, %s2261_s21 }
 0x988   :  { %v1103_v51 = vpop.xlane.xlu0 %1102 }
 0x989   :  { %2236 = vrcp.f32 %v1103_v51 }
 0x98c   :  { %v1106_v52 = vpop.xlane.xlu0 %1105 }
 0x98d   :  { %2238 = vrcp.f32 %v1106_v52 }
 0x990   :  { %v1114_v45 = vpop.permute.xlu0 %1113 }
 0x991   :  { %v1119_v18 = vsel %vm453_vm2, %v1114_v45, 0 }
 0x992   :  { %2076 = vmatpush3.bf16.msra.mxu0 %v1119_v18  ;;  %v2176_v18 = vld [vmem:[%s2810_s8 + $0x24] ss:$8 sps:$4 sm:$0xff]  }
 0x993   :  { %v2237_v49 = vpop.eup %2236  ;;  %2087 = vmatprep.subr.bf16.mxu0 %v2257_v2 }
 0x994   :  { %v1109_v19 = vmul.f32 %v2237_v49, %v2233_v28  ;;  %v2174_v49 = vld [vmem:[%s2810_s8 + $0x20] ss:$8 sps:$4 sm:$0xff]  }
 0x996   :  { %v1111_v20 = vpack.c.bf16 %v1109_v19, %v1109_v19  ;;  %v2179_v19 = vld [vmem:[%s2810_s8 + $0x34] ss:$8 sps:$4 sm:$0xff]  }
 0x997   :  { %v2239_v21 = vpop.eup %2238 }
 0x998   :  { %v1110_v22 = vmul.f32 %v2239_v21, %v2235_v41  ;;  %2078 = vmatmul.mubr.msk.bf16.vlgmr.msra.gmra.mrb[24].mxu0 %vm425_vm3, %v1111_v20  ;;  %v2177_v20 = vld [vmem:[%s2810_s8 + $0x30] ss:$8 sps:$4 sm:$0xff]   ;;  %v2182_v21 = vld [vmem:[%s2810_s8 + $0x44] ss:$8 sps:$4 sm:$0xff]  }
 0x999   :  { %2103 = vmatprep.mubr.msk.bf16.mxu0 %vm2258_vm0, %v2257_v2  ;;  %2088 = vmatpush3.bf16.msra.mxu0 %v2160_v25  ;;  %v2183_v25 = vld [vmem:[%s2810_s8 + $0x50] ss:$8 sps:$4 sm:$0xff]  }
 0x99a   :  { %v1112_v56 = vpack.c.bf16 %v1110_v22, %v1110_v22  ;;  %2089 = vmatprep.subr.bf16.mxu0 %v2257_v2  ;;  %v2180_v22 = vld [vmem:[%s2810_s8 + $0x40] ss:$8 sps:$4 sm:$0xff]  }
 0x99c   :  { %2084 = vmatmul.mubr.msk.bf16.vlgmr.msra.gmra.mrb[40].mxu1 %vm425_vm3, %v1112_v56  ;;  %v2185_v56 = vld [vmem:[%s2810_s8 + $0x54] ss:$8 sps:$4 sm:$0xff]  }
 0x99d   :  { %1538 = vmatprep.mubr.bf16.mxu1 %v2256_v1  ;;  %2090 = vmatpush3.bf16.msra.mxu0 %v2161_v26  ;;  %v2163_v1 = vld [vmem:[%s2808_s4 + $0x18] sm:$0xff]   ;;  %v2188_v26 = vld [vmem:[%s2810_s8 + $0x64] ss:$8 sps:$4 sm:$0xff]  }
 0x99e   :  { %2091 = vmatprep.subr.bf16.mxu0 %v2257_v2  ;;  %1507 = vmatpush1.bf16.msra.mxu1 %v2168_v14 }
 0x9a1   :  { %2092 = vmatpush3.bf16.msra.mxu0 %v2162_v27  ;;  %v2186_v27 = vld [vmem:[%s2810_s8 + $0x60] ss:$8 sps:$4 sm:$0xff]  }
 0x9a2   :  { %2093 = vmatprep.subr.bf16.mxu0 %v2257_v2 }
 0x9a5   :  { %2094 = vmatpush3.bf16.msra.mxu0 %v2163_v1  ;;  %v2191_v1 = vld [vmem:[%s2810_s8 + $0x74] ss:$8 sps:$4 sm:$0xff]  }
 0x9a6   :  { %2095 = vmatprep.subr.bf16.mxu0 %v2257_v2 }
 0x9a9   :  { %2096 = vmatpush3.bf16.msra.mxu0 %v2164_v29  ;;  %v2189_v29 = vld [vmem:[%s2810_s8 + $0x70] ss:$8 sps:$4 sm:$0xff]  }
 0x9aa   :  { %2097 = vmatprep.subr.bf16.mxu0 %v2257_v2 }
 0x9ad   :  { %2098 = vmatpush3.bf16.msra.mxu0 %v2165_v32 }
 0x9ae   :  { %2099 = vmatprep.subr.bf16.mxu0 %v2257_v2 }
 0x9b1   :  { %2100 = vmatpush3.bf16.msra.mxu0 %v2166_v33 }
 0x9b2   :  { %2101 = vmatprep.subr.bf16.mxu0 %v2257_v2  ;;  %v2116_v2 = vunpack.i.l.bf16 %v2115_v50  ;;  %v1863_v50 = vld [vmem:[%s2812_s7] ss:$0 sm:$0xff] }
 0x9b4   :  { %v1233_v62 = vsel %vm332_vm1, %v2522_v44, %v2116_v2 }
 0x9b5   :  { %2102 = vmatpush3.bf16.msra.mxu0 %v2167_v35  ;;  %v1236_v3 = vsel %vm1235_vm4, %v1233_v62, %v2121_v57  ;;  %v2192_v57 = vld [vmem:[%s2813_s10 + $0x40] sm:$0xff]   ;;  %v2195_v62 = vld [vmem:[%s2813_s10 + $0x8] sm:$0xff]  }
 0x9b6   :  { %1949 = vmatprep.subr.bf16.mxu0 %v2192_v57 }
 0xa6b   :  { %v1155_v46 = vpop.f32.mrb[24].mxu0 }
 0xa6c   :  { %v2079_v36 = vpop.f32.mrb[25].mxu0 }
 0xa6d   :  { %v1158_v37 = vpop.f32.mrb[26].mxu0 }
 0xa6e   :  { %v2080_v38 = vpop.f32.mrb[27].mxu0 }
 0xa6f   :  { %v1203_v39 = vpop.f32.mrb[40].mxu1 }
 0xa70   :  { %v2123_v40 = vpack.i.bf16 %v1203_v39, %v1155_v46  ;;  %v2085_v42 = vpop.f32.mrb[41].mxu1 }
 0xa71   :  { %v1206_v47 = vpop.f32.mrb[42].mxu1 }
 0xa72   :  { %2124 = vrot.lane.b32.xlu0 %v2123_v40, %s2259_s20  ;;  %v2086_v48 = vpop.f32.mrb[43].mxu1  ;;  %v1862_v40 = vld [vmem:[%s2811_s6] ss:$0 sm:$0xff] }
 0xae4   :  { %v2125_v59 = vpop.permute.xlu0 %2124 }
 0xae5   :  { %v2127_v63 = vunpack.i.h.bf16 %v2125_v59  ;;  %v2126_v0 = vunpack.i.l.bf16 %v2125_v59  ;;  %v2193_v59 = vld [vmem:[%s2813_s10] sm:$0xff]  }
 0xae7   :  { %v1240_v6 = vsel %vm1238_vm5, %v1237_v4, %v2127_v63  ;;  %v1239_v7 = vsel %vm1238_vm5, %v1236_v3, %v2126_v0  ;;  %v2196_v63 = vld [vmem:[%s2813_s10 + $0x50] sm:$0xff]   ;;  %v2198_v3 = vld [vmem:[%s2813_s10 + $0x58] sm:$0xff]  }
 0xae8   :  { %v1241_v8 = vpack.c.bf16 %v1240_v6, %v1239_v7  ;;  %v2197_v0 = vld [vmem:[%s2813_s10 + $0x10] sm:$0xff]   ;;  %v2199_v4 = vld [vmem:[%s2813_s10 + $0x18] sm:$0xff]   ;;  %v2200_v6 = vld [vmem:[%s2813_s10 + $0x60] sm:$0xff]  }
 0xae9   :  { %v2201_v7 = vld [vmem:[%s2813_s10 + $0x20] sm:$0xff]  }
 0xaea   :  { %2104 = vmatmul.mubr.bf16.vlgmr.msra.gmra.mrb[28].mxu0 %v1241_v8  ;;  %v2202_v8 = vld [vmem:[%s2813_s10 + $0x68] sm:$0xff]  }
 0xaeb   :  { %1950 = vmatpush3.bf16.msra.mxu0 %v2193_v59 }
 0xaec   :  { %1951 = vmatprep.subr.bf16.mxu0 %v2194_v61 }
 0xaef   :  { %1952 = vmatpush3.bf16.msra.mxu0 %v2195_v62 }
 0xaf0   :  { %1953 = vmatprep.subr.bf16.mxu0 %v2196_v63  ;;  %v1880_v63 = vld [vmem:[%s2815_s11] ss:$0 sm:$0xff] }
 0xaf3   :  { %1954 = vmatpush3.bf16.msra.mxu0 %v2197_v0 }
 0xaf4   :  { %1955 = vmatprep.subr.bf16.mxu0 %v2198_v3 }
 0xaf7   :  { %1956 = vmatpush3.bf16.msra.mxu0 %v2199_v4 }
 0xaf8   :  { %1957 = vmatprep.subr.bf16.mxu0 %v2200_v6 }
 0xafb   :  { %1958 = vmatpush3.bf16.msra.mxu0 %v2201_v7 }
 0xafc   :  { %1959 = vmatprep.subr.bf16.mxu0 %v2202_v8 }
 0xbbd   :  { %v1347_v10 = vpop.f32.mrb[28].mxu0 }
 0xbbe   :  { %v1348_v60 = vadd.f32 %v1853_v9, %v1347_v10  ;;  %v2105_v5 = vpop.f32.mrb[29].mxu0  ;;  %v2204_v10 = vld [vmem:[%s2813_s10 + $0x70] sm:$0xff]  }
 0xbbf   :  { %v1350_v11 = vpop.f32.mrb[30].mxu0  ;;  %v2206_v5 = vld [vmem:[%s2813_s10 + $0x78] sm:$0xff]  }
 0xbc0   :  { %v1351_v58 = vadd.f32 %v1853_v9, %v1350_v11  ;;  %v2106_v12 = vpop.f32.mrb[31].mxu0  ;;  %v1354_v44 = vadd.f32 %v1348_v60, %v2408_v23  ;;  %v2173_v23 = vld [vmem:[%s2810_s8 + $0x14] ss:$8 sps:$4 sm:$0xff]   ;;  %v2203_v9 = vld [vmem:[%s2813_s10 + $0x28] sm:$0xff]  }
 0xbc1   :  { %1508 = vmatprep.subr.bf16.mxu1 %v2173_v23  ;;  %1960 = vmatpush3.bf16.msra.mxu0 %v2203_v9  ;;  %v2205_v60 = vld [vmem:[%s2813_s10 + $0x30] sm:$0xff]   ;;  %v2207_v11 = vld [vmem:[%s2813_s10 + $0x38] sm:$0xff]  }
 0xbc2   :  { %1358 = vadd.xlane.f32.xlu1 %v1354_v44  ;;  %v1355_v13 = vadd.f32 %v1351_v58, %v2413_v24  ;;  %1509 = vmatpush1.bf16.msra.mxu1 %v2171_v16  ;;  %v1414_v58 = vld [vmem:[%s2814_s9] sm:$0x3] }
 0xbc3   :  { %1510 = vmatprep.subr.bf16.mxu1 %v2176_v18  ;;  %1961 = vmatprep.subr.bf16.mxu0 %v2204_v10  ;;  %v1419_v12 = vrot.slane %v1414_v58, %v89_v34 }
 0xbc4   :  { %1360 = vadd.xlane.f32.xlu0 %v1355_v13 }
 0xbc5   :  { %1962 = vmatpush3.bf16.msra.mxu0 %v2205_v60 }
 0xbc6   :  { %1511 = vmatpush1.bf16.msra.mxu1 %v2174_v49  ;;  %1963 = vmatprep.subr.bf16.mxu0 %v2206_v5 }
 0xbc7   :  { %1512 = vmatprep.subr.bf16.mxu1 %v2179_v19 }
 0xbc9   :  { %1964 = vmatpush3.bf16.msra.mxu0 %v2207_v11 }
 0xbca   :  { %1513 = vmatpush1.bf16.msra.mxu1 %v2177_v20 }
 0xbcb   :  { %1514 = vmatprep.subr.bf16.mxu1 %v2182_v21 }
 0xbce   :  { %1515 = vmatpush1.bf16.msra.mxu1 %v2180_v22 }
 0xbcf   :  { %1516 = vmatprep.subr.bf16.mxu1 %v2185_v56 }
 0xbd2   :  { %1517 = vmatpush1.bf16.msra.mxu1 %v2183_v25 }
 0xbd3   :  { %1518 = vmatprep.subr.bf16.mxu1 %v2188_v26 }
 0xbd6   :  { %1519 = vmatpush1.bf16.msra.mxu1 %v2186_v27 }
 0xbd7   :  { %1520 = vmatprep.subr.bf16.mxu1 %v2191_v1 }
 0xbda   :  { %1521 = vmatpush1.bf16.msra.mxu1 %v2189_v29 }
 0xc4f   :  { %v1359_v24 = vpop.xlane.xlu1 %1358 }
 0xc50   :  { %v1363_v28 = vmul.f32 0.0078125, %v1359_v24 }
 0xc51   :  { %v1361_v17 = vpop.xlane.xlu0 %1360 }
 0xc52   :  { %v1365_v41 = vsub.f32 %v1354_v44, %v1363_v28  ;;  %v1364_v43 = vmul.f32 0.0078125, %v1361_v17  ;;  %v1423_v44 = vrot.slane %v1414_v58, %v93_v31 }
 0xc54   :  { %v1366_v51 = vsub.f32 %v1355_v13, %v1364_v43  ;;  %v1367_v52 = vmul.f32 %v1365_v41, %v1365_v41 }
 0xc56   :  { %1369 = vadd.xlane.f32.xlu0 %v1367_v52  ;;  %v1368_v45 = vmul.f32 %v1366_v51, %v1366_v51 }
 0xc5a   :  { %1371 = vadd.xlane.f32.xlu0 %v1368_v45 }
 0xce3   :  { %v1370_v32 = vpop.xlane.xlu0 %1369 }
 0xce4   :  { %v1373_v33 = vmul.f32 0.0078125, %v1370_v32 }
 0xce6   :  { %v1375_v35 = vadd.f32 1e-05, %v1373_v33 }
 0xce7   :  { %v1372_v46 = vpop.xlane.xlu0 %1371 }
 0xce8   :  { %2240 = vrsqrt.f32 %v1375_v35  ;;  %v1374_v36 = vmul.f32 0.0078125, %v1372_v46 }
 0xcea   :  { %v1376_v37 = vadd.f32 1e-05, %v1374_v36 }
 0xcec   :  { %2242 = vrsqrt.f32 %v1376_v37 }
 0xcf2   :  { %v2241_v38 = vpop.eup %2240 }
 0xcf3   :  { %v1379_v39 = vmul.f32 %v2241_v38, %v1365_v41 }
 0xcf5   :  { %v1387_v48 = vmul.f32 %v1862_v40, %v1379_v39 }
 0xcf6   :  { %v2243_v42 = vpop.eup %2242 }
 0xcf7   :  { %v1380_v47 = vmul.f32 %v2243_v42, %v1366_v51  ;;  %v2726_v54 = vadd.f32 %v1863_v50, %v1387_v48 }
 0xcf9   :  { %v1388_v53 = vmul.f32 %v1862_v40, %v1380_v47 }
 0xcfb   :  { %v2728_v2 = vadd.f32 %v1863_v50, %v1388_v53 }
 0xcfd   :  { %v1397_v55 = vpack.c.bf16 %v2728_v2, %v2726_v54 }
 0xcff   :  { %1539 = vmatmul.mubr.bf16.vlgmr.msra.gmra.mrb[44].mxu1 %v1397_v55 }
 0xdd2   :  { %v1540_v13 = vpop.f32.mrb[44].mxu1 }
 0xdd3   :  { %v1541_v14 = vadd.f32 %v1540_v13, %v1419_v12  ;;  %v1542_v15 = vpop.f32.mrb[45].mxu1 }
 0xdd4   :  { %v1543_v16 = vadd.f32 %v1542_v15, %v1423_v44  ;;  %v1544_v23 = vpop.f32.mrb[46].mxu1 }
 0xdd5   :  { %v1553_v24 = vmul.f32 0.044715, %v1541_v14  ;;  %v1545_v28 = vadd.f32 %v1544_v23, %v1419_v12  ;;  %v1546_v17 = vpop.f32.mrb[47].mxu1  ;;  %v1549_v38 = vmul.f32 0.5, %v1541_v14 }
 0xdd6   :  { %v1554_v41 = vmul.f32 0.044715, %v1543_v16  ;;  %v1547_v43 = vadd.f32 %v1546_v17, %v1423_v44  ;;  %v1550_v42 = vmul.f32 0.5, %v1543_v16 }
 0xdd7   :  { %v1557_v51 = vmul.f32 %v1553_v24, %v1541_v14  ;;  %v1555_v52 = vmul.f32 0.044715, %v1545_v28  ;;  %v1551_v39 = vmul.f32 0.5, %v1545_v28 }
 0xdd8   :  { %v1558_v45 = vmul.f32 %v1554_v41, %v1543_v16  ;;  %v1556_v18 = vmul.f32 0.044715, %v1547_v43  ;;  %v1552_v47 = vmul.f32 0.5, %v1547_v43  ;;  %v1897_v41 = vld [vmem:[%s2816_s12] ss:$0 sm:$0xff] }
 0xdd9   :  { %v1561_v49 = vmul.f32 %v1557_v51, %v1541_v14  ;;  %v1559_v19 = vmul.f32 %v1555_v52, %v1545_v28  ;;  %v1898_v52 = vld [vmem:[%s2817_s13] ss:$0 sm:$0xff] }
 0xdda   :  { %v1562_v34 = vmul.f32 %v1558_v45, %v1543_v16  ;;  %v1560_v20 = vmul.f32 %v1556_v18, %v1547_v43 }
 0xddb   :  { %v1565_v30 = vadd.f32 %v1561_v49, %v1541_v14  ;;  %v1563_v31 = vmul.f32 %v1559_v19, %v1545_v28 }
 0xddc   :  { %v1564_v21 = vmul.f32 %v1560_v20, %v1547_v43  ;;  %v1566_v22 = vadd.f32 %v1562_v34, %v1543_v16 }
 0xddd   :  { %v1569_v56 = vmul.f32 0.7978846, %v1565_v30  ;;  %v1567_v25 = vadd.f32 %v1563_v31, %v1545_v28 }
 0xdde   :  { %v1568_v26 = vadd.f32 %v1564_v21, %v1547_v43  ;;  %v1570_v27 = vmul.f32 0.7978846, %v1566_v22 }
 0xddf   :  { %2244 = vtanh.f32 %v1569_v56  ;;  %v1571_v1 = vmul.f32 0.7978846, %v1567_v25 }
 0xde0   :  { %v1572_v29 = vmul.f32 0.7978846, %v1568_v26  ;;  %2246 = vtanh.f32 %v1570_v27 }
 0xde1   :  { %2248 = vtanh.f32 %v1571_v1 }
 0xde2   :  { %2250 = vtanh.f32 %v1572_v29 }
 0xde9   :  { %v2245_v32 = vpop.eup %2244 }
 0xdea   :  { %v2247_v33 = vpop.eup %2246  ;;  %v1577_v35 = vadd.f32 1.0, %v2245_v32 }
 0xdeb   :  { %v2249_v46 = vpop.eup %2248  ;;  %v1578_v36 = vadd.f32 1.0, %v2247_v33 }
 0xdec   :  { %v2251_v37 = vpop.eup %2250  ;;  %v1579_v40 = vadd.f32 1.0, %v2249_v46  ;;  %v1581_v50 = vmul.f32 %v1577_v35, %v1549_v38 }
 0xded   :  { %v1580_v48 = vadd.f32 1.0, %v2251_v37  ;;  %v1582_v55 = vmul.f32 %v1578_v36, %v1550_v42 }
 0xdee   :  { %v1583_v53 = vmul.f32 %v1579_v40, %v1551_v39 }
 0xdef   :  { %v1584_v57 = vmul.f32 %v1580_v48, %v1552_v47 }
 0xdf0   :  { %v1585_v59 = vpack.c.bf16 %v1583_v53, %v1581_v50 }
 0xdf1   :  { %v1586_v61 = vpack.c.bf16 %v1584_v57, %v1582_v55 }
 0xdf3   :  { %1754 = vmatprep.mubr.bf16.mxu0 %v1586_v61 }
 0xdf4   :  { %1755 = vmatmul.mubr.bf16.vlgmr.msra.gmra.mrb[32].mxu0 %v1585_v59 }
 0xec7   :  { %v1965_v62 = vpop.f32.mrb[32].mxu0 }
 0xec8   :  { %v1966_v0 = vpop.f32.mrb[33].mxu0 }
 0xec9   :  { %v1967_v3 = vadd.f32 %v1966_v0, %v1965_v62  ;;  %v1968_v4 = vpop.f32.mrb[34].mxu0 }
 0xeca   :  { %v1969_v6 = vpop.f32.mrb[35].mxu0 }
 0xecb   :  { %v1757_v7 = vadd.f32 %v1967_v3, %v1880_v63  ;;  %v1970_v8 = vadd.f32 %v1969_v6, %v1968_v4 }
 0xecd   :  { %v1760_v9 = vadd.f32 %v1970_v8, %v1880_v63  ;;  %v1763_v10 = vadd.f32 %v1757_v7, %v2726_v54 }
 0xecf   :  { %1767 = vadd.xlane.f32.xlu1 %v1763_v10  ;;  %v1764_v60 = vadd.f32 %v1760_v9, %v2728_v2 }
 0xed1   :  { %1769 = vadd.xlane.f32.xlu0 %v1764_v60 }
 0xf5c   :  { %v1768_v5 = vpop.xlane.xlu1 %1767 }
 0xf5d   :  { %v1771_v11 = vmul.f32 0.0078125, %v1768_v5 }
 0xf5e   :  { %v1770_v58 = vpop.xlane.xlu0 %1769 }
 0xf5f   :  { %v1773_v12 = vsub.f32 %v1763_v10, %v1771_v11  ;;  %v1772_v44 = vmul.f32 0.0078125, %v1770_v58 }
 0xf61   :  { %v1774_v13 = vsub.f32 %v1764_v60, %v1772_v44  ;;  %v1775_v14 = vmul.f32 %v1773_v12, %v1773_v12 }
 0xf63   :  { %1777 = vadd.xlane.f32.xlu1 %v1775_v14  ;;  %v1776_v15 = vmul.f32 %v1774_v13, %v1774_v13 }
 0xf65   :  { %1779 = vadd.xlane.f32.xlu0 %v1776_v15 }
 0xff0   :  { %v1778_v16 = vpop.xlane.xlu1 %1777 }
 0xff1   :  { %v1781_v23 = vmul.f32 0.0078125, %v1778_v16 }
 0xff2   :  { %v1780_v24 = vpop.xlane.xlu0 %1779 }
 0xff3   :  { %v1783_v28 = vadd.f32 1e-05, %v1781_v23  ;;  %v1782_v17 = vmul.f32 0.0078125, %v1780_v24 }
 0xff5   :  { %2252 = vrsqrt.f32 %v1783_v28  ;;  %v1784_v54 = vadd.f32 1e-05, %v1782_v17 }
 0xff7   :  { %2254 = vrsqrt.f32 %v1784_v54 }
 0xfff   :  { %v2253_v2 = vpop.eup %2252 }
0x1000   :  { %v1787_v43 = vmul.f32 %v2253_v2, %v1773_v12 }
0x1001   :  { %v2255_v51 = vpop.eup %2254 }
0x1002   :  { %v1795_v45 = vmul.f32 %v1897_v41, %v1787_v43  ;;  %v1788_v18 = vmul.f32 %v2255_v51, %v1774_v13 }
0x1004   :  { %v1803_v49 = vadd.f32 %v1898_v52, %v1795_v45  ;;  %v1796_v19 = vmul.f32 %v1897_v41, %v1788_v18 }
0x1006   :  { %1805 = vst [vmem:[%s2818_s14] sm:$0xff] %v1803_v49  ;;  %v1804_v34 = vadd.f32 %v1898_v52, %v1796_v19 }
0x1008   :  { %1806 = vst [vmem:[%s2818_s14 + $0x8] sm:$0xff] %v1804_v34 }

</bundles_post_ra>
